<compile_context>
chip_gen: v7x
topology: tpu7x:2x2x1
jax: 0.10.0
libtpu: 0.0.40
codegen_flags: <defaults>
</compile_context>

<pallas_src>
import functools

import jax
import jax.numpy as jnp
from jax.experimental import pallas as pl
from jax.experimental.pallas import tpu as pltpu

NEG_SLOPE = 0.2                     # LeakyReLU(0.2)
BN_EPS = 1e-5                       # nn.BatchNorm2d default eps
LANE = 128
COMPUTE_DTYPE = jnp.bfloat16        # HBM storage / MXU operand dtype (f32 accum)
VMEM_LIMIT = 32 * 1024 * 1024       # blocks stay small; safe on v5e/v6e/v7x


def _round_up(x, m):
    return ((x + m - 1) // m) * m


def _pick_bb(batch, rows_pad, cpad):
    """Images per grid step.

    Large enough to amortize per-step overhead and fill the MXU M dim in the
    late layers, but (a) the f32 accumulator stays under a few MB and (b) the
    grid keeps >= 2 blocks whenever B >= 2 so both v7x TensorCores /
    v5e-v6e megacore lanes get work.
    """
    acc_budget = 4 << 20                                   # f32 acc bytes/step
    cap = max(1, min(8, acc_budget // (rows_pad * cpad * 4)))
    bb = 1
    for d in range(1, cap + 1):
        if batch % d == 0 and (batch // d >= 2 or batch == 1):
            bb = d
    return bb


# ------------------------------ Pallas kernel -------------------------------

def _fused_conv_kernel(x_ref, w_ref, y_ref, *stat_refs, tap_offsets, rows_out,
                       rows_pad, row_w, valid_w, apply_lrelu, compute_stats):
    """Fused shifted-tap conv (+ optional LeakyReLU) (+ optional BN stats).

    x_ref : (BB, Lx, Cin)          bf16  padded inputs, rows flattened (H*W)
    w_ref : (taps, Cin, Cpad)      bf16  per-tap weight slices (grid-resident)
    y_ref : (BB*rows_pad, Cpad)    bf16  "extended" conv output
    stat_refs (optional): sum_ref, sq_ref : (1, 1, Cpad) f32
    """
    bb, _, cin = x_ref.shape
    m = bb * rows_pad

    def tap_operand(t):
        # Direct bf16 slice of the ref (no f32 slab round-trip); the whole
        # batch block is flattened into the matmul M dimension.
        off = tap_offsets[t]
        return x_ref[:, off:off + rows_pad, :].reshape(m, cin)

    # First tap initializes the accumulator (no zeros+add pass).
    acc = jnp.dot(tap_operand(0), w_ref[0], preferred_element_type=jnp.float32)
    for t in range(1, len(tap_offsets)):
        acc = acc + jnp.dot(tap_operand(t), w_ref[t],
                            preferred_element_type=jnp.float32)

    if apply_lrelu:
        acc = jnp.maximum(acc, NEG_SLOPE * acc)

    y_ref[...] = acc.astype(y_ref.dtype)

    if compute_stats:
        sum_ref, sq_ref = stat_refs
        # Mask out (a) wrap-around columns of the extended rows and
        # (b) the rows padded to reach a sublane-aligned rows_pad.
        r = jax.lax.broadcasted_iota(jnp.int32, (m, 1), 0) % rows_pad
        valid = (r % row_w) < valid_w
        if rows_pad > rows_out:
            valid = jnp.logical_and(valid, r < rows_out)
        masked = acc * valid.astype(jnp.float32)
        sum_ref[0] = jnp.sum(masked, axis=0, keepdims=True)
        sq_ref[0] = jnp.sum(masked * acc, axis=0, keepdims=True)


def pallas_fused_conv(x_flat, w_taps, *, rows_out, rows_pad, row_w, valid_w,
                      tap_offsets, apply_lrelu, compute_stats):
    """x_flat:(B,Lx,Cin) bf16, w_taps:(taps,Cin,Cpad) bf16 -> (y2d, sums, sqs)."""
    B, Lx, Cin = x_flat.shape
    taps, _, Cpad = w_taps.shape
    BB = _pick_bb(B, rows_pad, Cpad)
    nblk = B // BB
    M = BB * rows_pad

    kernel = functools.partial(
        _fused_conv_kernel, tap_offsets=tuple(tap_offsets), rows_out=rows_out,
        rows_pad=rows_pad, row_w=row_w, valid_w=valid_w,
        apply_lrelu=apply_lrelu, compute_stats=compute_stats)

    in_specs = [
        pl.BlockSpec((BB, Lx, Cin), lambda i: (i, 0, 0)),
        # Constant index_map -> the weight tile is fetched once and stays
        # resident across the whole grid (no per-step weight DMA).
        pl.BlockSpec((taps, Cin, Cpad), lambda i: (0, 0, 0)),
    ]
    y_shape = jax.ShapeDtypeStruct((B * rows_pad, Cpad), COMPUTE_DTYPE)
    y_spec = pl.BlockSpec((M, Cpad), lambda i: (i, 0))      # lane-dense stores

    if compute_stats:
        out_shape = (y_shape,
                     jax.ShapeDtypeStruct((nblk, 1, Cpad), jnp.float32),
                     jax.ShapeDtypeStruct((nblk, 1, Cpad), jnp.float32))
        out_specs = (y_spec,
                     pl.BlockSpec((1, 1, Cpad), lambda i: (i, 0, 0)),
                     pl.BlockSpec((1, 1, Cpad), lambda i: (i, 0, 0)))
    else:
        out_shape = y_shape
        out_specs = y_spec

    out = pl.pallas_call(
        kernel,
        out_shape=out_shape,
        grid=(nblk,),
        in_specs=in_specs,
        out_specs=out_specs,
        compiler_params=pltpu.CompilerParams(
            dimension_semantics=("parallel",),
            vmem_limit_bytes=VMEM_LIMIT),
    )(x_flat, w_taps)

    if compute_stats:
        y, s, q = out
        return y, jnp.sum(s[:, 0, :], axis=0), jnp.sum(q[:, 0, :], axis=0)
    return out, None, None


# --------------------------------- JAX glue ---------------------------------

def _prep_conv_weight(w_oihw, stride, cin_pad, cout_pad):
    """PyTorch (Co,Ci,kh,kw) -> (taps, K, Cout_pad) matching the kernel layout."""
    co, ci, kh, kw = w_oihw.shape
    if stride == 2:
        # 4x4 stride-2 conv == 2x2 stride-1 conv over the space-to-depth input.
        w2 = w_oihw.reshape(co, ci, 2, 2, 2, 2)          # (co, ci, a, ph, b, pw)
        w2 = jnp.transpose(w2, (2, 4, 3, 5, 1, 0))       # (a, b, ph, pw, ci, co)
        w2 = w2.reshape(4, 4 * ci, co)
        w2 = jnp.pad(w2, ((0, 0), (0, cin_pad - 4 * ci), (0, cout_pad - co)))
    else:
        # All kh*kw taps folded into K (conv1): rows ordered (kh, kw, ci_pad).
        w2 = jnp.transpose(w_oihw, (2, 3, 1, 0))         # (kh, kw, ci, co)
        w2 = jnp.pad(w2, ((0, 0), (0, 0), (0, cin_pad - ci), (0, cout_pad - co)))
        w2 = w2.reshape(1, kh * kw * cin_pad, cout_pad)
    return w2.astype(COMPUTE_DTYPE)


def conv_layer(a, w_oihw, stride, *, fuse_lrelu, need_stats):
    """a:(B,H,W,C) already-activated input (any float dtype); pad=1, stride 1|2."""
    B, H, W, C = a.shape
    cout, _, k, _ = w_oihw.shape
    a = a.astype(COMPUTE_DTYPE)                          # bf16 inter-layer traffic

    xp = jnp.pad(a, ((0, 0), (1, 1), (1, 1), (0, 0)))
    if stride == 2:
        hp, wp = H + 2, W + 2
        z = xp.reshape(B, hp // 2, 2, wp // 2, 2, C)
        z = jnp.transpose(z, (0, 1, 3, 2, 4, 5)).reshape(B, hp // 2, wp // 2, 4 * C)
        kk = 2
    else:
        z = xp
        kk = k
    _, Hz, Wz, Cz = z.shape
    cin_pad = _round_up(Cz, 8)
    if cin_pad != Cz:
        z = jnp.pad(z, ((0, 0), (0, 0), (0, 0), (0, cin_pad - Cz)))

    Ho, Wo = Hz - kk + 1, Wz - kk + 1
    rows_out = Ho * Wz
    rows_pad = _round_up(rows_out, 8)
    tap_offsets = [di * Wz + dj for di in range(kk) for dj in range(kk)]
    need_rows = tap_offsets[-1] + rows_pad

    x_flat = z.reshape(B, Hz * Wz, cin_pad)
    x_flat = jnp.pad(x_flat, ((0, 0), (0, need_rows - Hz * Wz), (0, 0)))

    if stride == 1:
        # conv1: fold the kk*kk taps into K (tiny channels) -> single matmul.
        x_in = jnp.concatenate(
            [x_flat[:, off:off + rows_pad, :] for off in tap_offsets], axis=-1)
        tap_offsets = [0]
    else:
        x_in = x_flat

    cout_pad = _round_up(cout, LANE)
    w_taps = _prep_conv_weight(w_oihw, stride, cin_pad, cout_pad)

    y2d, sums, sqs = pallas_fused_conv(
        x_in, w_taps, rows_out=rows_out, rows_pad=rows_pad, row_w=Wz,
        valid_w=Wo, tap_offsets=tap_offsets, apply_lrelu=fuse_lrelu,
        compute_stats=need_stats)
    y_ext = y2d.reshape(B, rows_pad, cout_pad)
    return y_ext, sums, sqs, (Ho, Wo, Wz, rows_out, cout)


def _extract_valid(y_ext, dims, batch):
    Ho, Wo, Wz, rows_out, cout = dims
    cpad = y_ext.shape[-1]
    y = y_ext[:, :rows_out, :].reshape(batch, Ho, Wz, cpad)
    return y[:, :, :Wo, :cout]


def bn_lrelu_finalize(y_ext, sums, sqs, gamma, beta, dims, batch):
    """Training-mode BatchNorm2d (batch mean, biased var) + LeakyReLU(0.2) -> bf16."""
    Ho, Wo, _, _, cout = dims
    count = batch * Ho * Wo
    mean = sums[:cout] / count
    var = jnp.maximum(sqs[:cout] / count - mean * mean, 0.0)
    scale = gamma * jax.lax.rsqrt(var + BN_EPS)
    shift = beta - mean * scale
    y = _extract_valid(y_ext, dims, batch).astype(jnp.float32)
    y = y * scale + shift
    y = jnp.maximum(y, NEG_SLOPE * y)
    return y.astype(COMPUTE_DTYPE)


def init_params(key, ndf=64, input_nc=3):
    ks = jax.random.split(key, 12)

    def conv_w(k, cout, cin, kh, kw):
        bound = 1.0 / jnp.sqrt(cin * kh * kw)
        return jax.random.uniform(k, (cout, cin, kh, kw), jnp.float32, -bound, bound)

    fc_in = 4 * 4 * ndf * 8
    fc_bound = 1.0 / jnp.sqrt(fc_in)
    return {
        "w1": conv_w(ks[0], ndf, input_nc, 3, 3),
        "w2": conv_w(ks[1], ndf * 2, ndf, 4, 4),
        "w3": conv_w(ks[2], ndf * 4, ndf * 2, 4, 4),
        "w4": conv_w(ks[3], ndf * 8, ndf * 4, 4, 4),
        "bn2_gamma": 1.0 + 0.1 * jax.random.uniform(ks[4], (ndf * 2,), jnp.float32),
        "bn2_beta": 0.1 * jax.random.uniform(ks[5], (ndf * 2,), jnp.float32),
        "bn3_gamma": 1.0 + 0.1 * jax.random.uniform(ks[6], (ndf * 4,), jnp.float32),
        "bn3_beta": 0.1 * jax.random.uniform(ks[7], (ndf * 4,), jnp.float32),
        "bn4_gamma": 1.0 + 0.1 * jax.random.uniform(ks[8], (ndf * 8,), jnp.float32),
        "bn4_beta": 0.1 * jax.random.uniform(ks[9], (ndf * 8,), jnp.float32),
        # Linear(4*4*ndf*8 -> 1): stored as (in, 1) = PyTorch weight.T
        "w_fc": jax.random.uniform(ks[10], (fc_in, 1), jnp.float32, -fc_bound, fc_bound),
        "b_fc": jax.random.uniform(ks[11], (1, 1), jnp.float32, -fc_bound, fc_bound),
    }


def dcgan_discriminator_forward(x_nchw, params, ndf):
    B = x_nchw.shape[0]
    x = jnp.transpose(x_nchw, (0, 2, 3, 1))                       # NHWC

    # Conv(3x3, s1, p1) + LeakyReLU (fused into the conv kernel).
    y1, _, _, d1 = conv_layer(x, params["w1"], 1, fuse_lrelu=True, need_stats=False)
    a1 = _extract_valid(y1, d1, B)                                # bf16

    # Conv(4x4, s2, p1) + BatchNorm(train) + LeakyReLU, three times.
    y2, s2, q2, d2 = conv_layer(a1, params["w2"], 2, fuse_lrelu=False, need_stats=True)
    a2 = bn_lrelu_finalize(y2, s2, q2, params["bn2_gamma"], params["bn2_beta"], d2, B)

    y3, s3, q3, d3 = conv_layer(a2, params["w3"], 2, fuse_lrelu=False, need_stats=True)
    a3 = bn_lrelu_finalize(y3, s3, q3, params["bn3_gamma"], params["bn3_beta"], d3, B)

    y4, s4, q4, d4 = conv_layer(a3, params["w4"], 2, fuse_lrelu=False, need_stats=True)
    a4 = bn_lrelu_finalize(y4, s4, q4, params["bn4_gamma"], params["bn4_beta"], d4, B)

    # Final Linear(4*4*8*ndf -> 1): plain XLA (fuses with conv4's BN epilogue;
    # a dedicated kernel is pure launch overhead at this size).  The NCHW
    # flatten permutation is folded into the tiny FC weight.
    c4 = 8 * ndf
    feat = a4.reshape(B, 4 * 4 * c4).astype(jnp.float32)          # (h, w, c) order
    w_hwc = jnp.transpose(params["w_fc"].reshape(c4, 4, 4), (1, 2, 0)).reshape(-1, 1)
    return jnp.dot(feat, w_hwc) + params["b_fc"]                  # (B, 1)


if __name__ == "__main__":
    # 32x32 input is required by the 4*4*ndf*8 flatten; small ndf and batch.
    NDF, INPUT_NC, BATCH = 16, 3, 2
    key = jax.random.PRNGKey(0)
    k_x, k_p = jax.random.split(key)
    x = jax.random.normal(k_x, (BATCH, INPUT_NC, 32, 32), jnp.float32)   # NCHW
    params = init_params(k_p, ndf=NDF, input_nc=INPUT_NC)

    fwd = jax.jit(functools.partial(dcgan_discriminator_forward, ndf=NDF))
    out = jax.block_until_ready(fwd(x, params))
    assert out.shape == (BATCH, 1), out.shape
    print("KERNEL_OK")
</pallas_src>

<mosaic_0001>
module attributes {stable_mosaic.version = 11 : i64} {
  func.func @_fused_conv_kernel(%arg0: i32, %arg1: memref<1x1088x72xbf16, #tpu.memory_space<vmem>>, %arg2: memref<1x72x128xbf16, #tpu.memory_space<vmem>>, %arg3: memref<1088x128xbf16, #tpu.memory_space<vmem>>) attributes {dimension_semantics = [#tpu.dimension_semantics<parallel>], iteration_bounds = array<i64: 2>, scalar_prefetch = 0 : i64, scratch_operands = 0 : i64, tpu.core_type = #tpu.core_type<tc>, window_params = [{transform_indices = @transform_0, window_bounds = array<i64: 1, 1088, 72>}, {pipeline_mode = #tpu.pipeline_mode<synchronous>, transform_indices = @transform_1, window_bounds = array<i64: 1, 72, 128>}, {transform_indices = @transform_2, window_bounds = array<i64: 1088, 128>}]} {
    %c0 = arith.constant 0 : index
    %c0_0 = arith.constant 0 : index
    %c0_1 = arith.constant 0 : index
    %0 = vector.load %arg1[%c0, %c0_0, %c0_1] : memref<1x1088x72xbf16, #tpu.memory_space<vmem>>, vector<1x1088x72xbf16>
    %1 = vector.shape_cast %0 : vector<1x1088x72xbf16> to vector<1088x72xbf16>
    %c0_2 = arith.constant 0 : index
    %c0_3 = arith.constant 0 : index
    %c0_4 = arith.constant 0 : index
    %2 = vector.load %arg2[%c0_2, %c0_3, %c0_4] : memref<1x72x128xbf16, #tpu.memory_space<vmem>>, vector<1x72x128xbf16>
    %3 = vector.shape_cast %2 : vector<1x72x128xbf16> to vector<72x128xbf16>
    %cst = arith.constant dense<0.000000e+00> : vector<1088x128xf32>
    %4 = tpu.matmul %1, %3, %cst {dimension_numbers = #tpu.dot_dimension_numbers<[1], [0], [0], [1], [0, 0, 1, 1], [], []>} : vector<1088x72xbf16>, vector<72x128xbf16>, vector<1088x128xf32> -> vector<1088x128xf32>
    %cst_5 = arith.constant 2.000000e-01 : f32
    %5 = vector.broadcast %cst_5 : f32 to vector<1088x128xf32>
    %6 = arith.mulf %5, %4 : vector<1088x128xf32>
    %7 = arith.maximumf %4, %6 : vector<1088x128xf32>
    %8 = arith.truncf %7 : vector<1088x128xf32> to vector<1088x128xbf16>
    %c0_6 = arith.constant 0 : index
    %c0_7 = arith.constant 0 : index
    %9 = vector.load %arg3[%c0_6, %c0_7] : memref<1088x128xbf16, #tpu.memory_space<vmem>>, vector<1088x128xbf16>
    tpu.vector_store %arg3[%c0_6, %c0_7], %8 {strides = array<i32>} : memref<1088x128xbf16, #tpu.memory_space<vmem>>, vector<1088x128xbf16>,
    return
  }
  func.func @transform_0(%arg0: i32) -> (i32, i32, i32) {
    %c0_i32 = arith.constant 0 : i32
    %c0_i32_0 = arith.constant 0 : i32
    %c0_i32_1 = arith.constant 0 : i32
    return %arg0, %c0_i32, %c0_i32_0 : i32, i32, i32
  }
  func.func @transform_1(%arg0: i32) -> (i32, i32, i32) {
    %c0_i32 = arith.constant 0 : i32
    %c0_i32_0 = arith.constant 0 : i32
    %c0_i32_1 = arith.constant 0 : i32
    %c0_i32_2 = arith.constant 0 : i32
    return %c0_i32, %c0_i32_0, %c0_i32_1 : i32, i32, i32
  }
  func.func @transform_2(%arg0: i32) -> (i32, i32) {
    %c0_i32 = arith.constant 0 : i32
    %c0_i32_0 = arith.constant 0 : i32
    return %arg0, %c0_i32 : i32, i32
  }
}

module attributes {stable_mosaic.version = 11 : i64} {
  func.func @_fused_conv_kernel(%arg0: i32, %arg1: memref<1x290x64xbf16, #tpu.memory_space<vmem>>, %arg2: memref<4x64x128xbf16, #tpu.memory_space<vmem>>, %arg3: memref<272x128xbf16, #tpu.memory_space<vmem>>, %arg4: memref<1x1x128xf32, #tpu.memory_space<vmem>>, %arg5: memref<1x1x128xf32, #tpu.memory_space<vmem>>) attributes {dimension_semantics = [#tpu.dimension_semantics<parallel>], iteration_bounds = array<i64: 2>, scalar_prefetch = 0 : i64, scratch_operands = 0 : i64, tpu.core_type = #tpu.core_type<tc>, window_params = [{transform_indices = @transform_0, window_bounds = array<i64: 1, 290, 64>}, {pipeline_mode = #tpu.pipeline_mode<synchronous>, transform_indices = @transform_1, window_bounds = array<i64: 4, 64, 128>}, {transform_indices = @transform_2, window_bounds = array<i64: 272, 128>}, {transform_indices = @transform_3, window_bounds = array<i64: 1, 1, 128>}, {transform_indices = @transform_4, window_bounds = array<i64: 1, 1, 128>}]} {
    %c0 = arith.constant 0 : index
    %c0_0 = arith.constant 0 : index
    %c0_1 = arith.constant 0 : index
    %0 = vector.load %arg1[%c0, %c0_0, %c0_1] : memref<1x290x64xbf16, #tpu.memory_space<vmem>>, vector<1x272x64xbf16>
    %1 = vector.shape_cast %0 : vector<1x272x64xbf16> to vector<272x64xbf16>
    %c0_2 = arith.constant 0 : index
    %c0_3 = arith.constant 0 : index
    %c0_4 = arith.constant 0 : index
    %2 = vector.load %arg2[%c0_2, %c0_3, %c0_4] : memref<4x64x128xbf16, #tpu.memory_space<vmem>>, vector<1x64x128xbf16>
    %3 = vector.shape_cast %2 : vector<1x64x128xbf16> to vector<64x128xbf16>
    %cst = arith.constant dense<0.000000e+00> : vector<272x128xf32>
    %4 = tpu.matmul %1, %3, %cst {dimension_numbers = #tpu.dot_dimension_numbers<[1], [0], [0], [1], [0, 0, 1, 1], [], []>} : vector<272x64xbf16>, vector<64x128xbf16>, vector<272x128xf32> -> vector<272x128xf32>
    %c0_5 = arith.constant 0 : index
    %c1 = arith.constant 1 : index
    %c0_6 = arith.constant 0 : index
    %5 = vector.load %arg1[%c0_5, %c1, %c0_6] : memref<1x290x64xbf16, #tpu.memory_space<vmem>>, vector<1x272x64xbf16>
    %6 = vector.shape_cast %5 : vector<1x272x64xbf16> to vector<272x64xbf16>
    %c1_7 = arith.constant 1 : index
    %c0_8 = arith.constant 0 : index
    %c0_9 = arith.constant 0 : index
    %7 = vector.load %arg2[%c1_7, %c0_8, %c0_9] : memref<4x64x128xbf16, #tpu.memory_space<vmem>>, vector<1x64x128xbf16>
    %8 = vector.shape_cast %7 : vector<1x64x128xbf16> to vector<64x128xbf16>
    %cst_10 = arith.constant dense<0.000000e+00> : vector<272x128xf32>
    %9 = tpu.matmul %6, %8, %cst_10 {dimension_numbers = #tpu.dot_dimension_numbers<[1], [0], [0], [1], [0, 0, 1, 1], [], []>} : vector<272x64xbf16>, vector<64x128xbf16>, vector<272x128xf32> -> vector<272x128xf32>
    %10 = arith.addf %4, %9 : vector<272x128xf32>
    %c0_11 = arith.constant 0 : index
    %c17 = arith.constant 17 : index
    %c0_12 = arith.constant 0 : index
    %11 = vector.load %arg1[%c0_11, %c17, %c0_12] : memref<1x290x64xbf16, #tpu.memory_space<vmem>>, vector<1x272x64xbf16>
    %12 = vector.shape_cast %11 : vector<1x272x64xbf16> to vector<272x64xbf16>
    %c2 = arith.constant 2 : index
    %c0_13 = arith.constant 0 : index
    %c0_14 = arith.constant 0 : index
    %13 = vector.load %arg2[%c2, %c0_13, %c0_14] : memref<4x64x128xbf16, #tpu.memory_space<vmem>>, vector<1x64x128xbf16>
    %14 = vector.shape_cast %13 : vector<1x64x128xbf16> to vector<64x128xbf16>
    %cst_15 = arith.constant dense<0.000000e+00> : vector<272x128xf32>
    %15 = tpu.matmul %12, %14, %cst_15 {dimension_numbers = #tpu.dot_dimension_numbers<[1], [0], [0], [1], [0, 0, 1, 1], [], []>} : vector<272x64xbf16>, vector<64x128xbf16>, vector<272x128xf32> -> vector<272x128xf32>
    %16 = arith.addf %10, %15 : vector<272x128xf32>
    %c0_16 = arith.constant 0 : index
    %c18 = arith.constant 18 : index
    %c0_17 = arith.constant 0 : index
    %17 = vector.load %arg1[%c0_16, %c18, %c0_17] : memref<1x290x64xbf16, #tpu.memory_space<vmem>>, vector<1x272x64xbf16>
    %18 = vector.shape_cast %17 : vector<1x272x64xbf16> to vector<272x64xbf16>
    %c3 = arith.constant 3 : index
    %c0_18 = arith.constant 0 : index
    %c0_19 = arith.constant 0 : index
    %19 = vector.load %arg2[%c3, %c0_18, %c0_19] : memref<4x64x128xbf16, #tpu.memory_space<vmem>>, vector<1x64x128xbf16>
    %20 = vector.shape_cast %19 : vector<1x64x128xbf16> to vector<64x128xbf16>
    %cst_20 = arith.constant dense<0.000000e+00> : vector<272x128xf32>
    %21 = tpu.matmul %18, %20, %cst_20 {dimension_numbers = #tpu.dot_dimension_numbers<[1], [0], [0], [1], [0, 0, 1, 1], [], []>} : vector<272x64xbf16>, vector<64x128xbf16>, vector<272x128xf32> -> vector<272x128xf32>
    %22 = arith.addf %16, %21 : vector<272x128xf32>
    %23 = arith.truncf %22 : vector<272x128xf32> to vector<272x128xbf16>
    %c0_21 = arith.constant 0 : index
    %c0_22 = arith.constant 0 : index
    %24 = vector.load %arg3[%c0_21, %c0_22] : memref<272x128xbf16, #tpu.memory_space<vmem>>, vector<272x128xbf16>
    tpu.vector_store %arg3[%c0_21, %c0_22], %23 {strides = array<i32>} : memref<272x128xbf16, #tpu.memory_space<vmem>>, vector<272x128xbf16>,
    %25 = tpu.iota {dimensions = array<i32: 0>} : vector<272x1xi32>
    %c272_i32 = arith.constant 272 : i32
    %c0_i32 = arith.constant 0 : i32
    %26 = arith.cmpi eq, %c272_i32, %c0_i32 : i32
    %c1_i32 = arith.constant 1 : i32
    %27 = arith.select %26, %c1_i32, %c272_i32 : i32
    %28 = vector.broadcast %27 : i32 to vector<272x1xi32>
    %29 = arith.remsi %25, %28 : vector<272x1xi32>
    %c0_i32_23 = arith.constant 0 : i32
    %30 = vector.broadcast %c0_i32_23 : i32 to vector<272x1xi32>
    %31 = arith.cmpi ne, %29, %30 : vector<272x1xi32>
    %c0_i32_24 = arith.constant 0 : i32
    %32 = vector.broadcast %c0_i32_24 : i32 to vector<272x1xi32>
    %33 = arith.cmpi slt, %29, %32 : vector<272x1xi32>
    %c0_i32_25 = arith.constant 0 : i32
    %34 = arith.cmpi slt, %27, %c0_i32_25 : i32
    %35 = vector.broadcast %34 : i1 to vector<272x1xi1>
    %36 = vector.broadcast %35 : vector<272x1xi1> to vector<272x1xi1>
    %37 = arith.xori %33, %36 : vector<272x1xi1>
    %38 = arith.andi %37, %31 : vector<272x1xi1>
    %39 = vector.broadcast %27 : i32 to vector<272x1xi32>
    %40 = arith.addi %29, %39 : vector<272x1xi32>
    %41 = arith.select %38, %40, %29 : vector<272x1xi1>, vector<272x1xi32>
    %c17_i32 = arith.constant 17 : i32
    %c0_i32_26 = arith.constant 0 : i32
    %42 = arith.cmpi eq, %c17_i32, %c0_i32_26 : i32
    %c1_i32_27 = arith.constant 1 : i32
    %43 = arith.select %42, %c1_i32_27, %c17_i32 : i32
    %44 = vector.broadcast %43 : i32 to vector<272x1xi32>
    %45 = arith.remsi %41, %44 : vector<272x1xi32>
    %c0_i32_28 = arith.constant 0 : i32
    %46 = vector.broadcast %c0_i32_28 : i32 to vector<272x1xi32>
    %47 = arith.cmpi ne, %45, %46 : vector<272x1xi32>
    %c0_i32_29 = arith.constant 0 : i32
    %48 = vector.broadcast %c0_i32_29 : i32 to vector<272x1xi32>
    %49 = arith.cmpi slt, %45, %48 : vector<272x1xi32>
    %c0_i32_30 = arith.constant 0 : i32
    %50 = arith.cmpi slt, %43, %c0_i32_30 : i32
    %51 = vector.broadcast %50 : i1 to vector<272x1xi1>
    %52 = vector.broadcast %51 : vector<272x1xi1> to vector<272x1xi1>
    %53 = arith.xori %49, %52 : vector<272x1xi1>
    %54 = arith.andi %53, %47 : vector<272x1xi1>
    %55 = vector.broadcast %43 : i32 to vector<272x1xi32>
    %56 = arith.addi %45, %55 : vector<272x1xi32>
    %57 = arith.select %54, %56, %45 : vector<272x1xi1>, vector<272x1xi32>
    %c16_i32 = arith.constant 16 : i32
    %58 = vector.broadcast %c16_i32 : i32 to vector<272x1xi32>
    %59 = arith.cmpi slt, %57, %58 : vector<272x1xi32>
    %60 = arith.extui %59 : vector<272x1xi1> to vector<272x1xi32>
    %61 = arith.sitofp %60 : vector<272x1xi32> to vector<272x1xf32>
    %62 = vector.broadcast %61 : vector<272x1xf32> to vector<272x128xf32>
    %63 = arith.mulf %22, %62 : vector<272x128xf32>
    %cst_31 = arith.constant dense<0.000000e+00> : vector<128xf32>
    %64 = vector.multi_reduction <add>, %63, %cst_31 [0] : vector<272x128xf32> to vector<128xf32>
    %65 = vector.shape_cast %64 : vector<128xf32> to vector<1x128xf32>
    %c0_32 = arith.constant 0 : index
    %c0_33 = arith.constant 0 : index
    %c0_34 = arith.constant 0 : index
    %66 = vector.load %arg4[%c0_32, %c0_33, %c0_34] : memref<1x1x128xf32, #tpu.memory_space<vmem>>, vector<1x1x128xf32>
    %67 = vector.shape_cast %66 : vector<1x1x128xf32> to vector<1x128xf32>
    %68 = vector.shape_cast %65 : vector<1x128xf32> to vector<1x1x128xf32>
    tpu.vector_store %arg4[%c0_32, %c0_33, %c0_34], %68 {strides = array<i32>} : memref<1x1x128xf32, #tpu.memory_space<vmem>>, vector<1x1x128xf32>,
    %69 = arith.mulf %63, %22 : vector<272x128xf32>
    %cst_35 = arith.constant dense<0.000000e+00> : vector<128xf32>
    %70 = vector.multi_reduction <add>, %69, %cst_35 [0] : vector<272x128xf32> to vector<128xf32>
    %71 = vector.shape_cast %70 : vector<128xf32> to vector<1x128xf32>
    %c0_36 = arith.constant 0 : index
    %c0_37 = arith.constant 0 : index
    %c0_38 = arith.constant 0 : index
    %72 = vector.load %arg5[%c0_36, %c0_37, %c0_38] : memref<1x1x128xf32, #tpu.memory_space<vmem>>, vector<1x1x128xf32>
    %73 = vector.shape_cast %72 : vector<1x1x128xf32> to vector<1x128xf32>
    %74 = vector.shape_cast %71 : vector<1x128xf32> to vector<1x1x128xf32>
    tpu.vector_store %arg5[%c0_36, %c0_37, %c0_38], %74 {strides = array<i32>} : memref<1x1x128xf32, #tpu.memory_space<vmem>>, vector<1x1x128xf32>,
    return
  }
  func.func @transform_0(%arg0: i32) -> (i32, i32, i32) {
    %c0_i32 = arith.constant 0 : i32
    %c0_i32_0 = arith.constant 0 : i32
    %c0_i32_1 = arith.constant 0 : i32
    return %arg0, %c0_i32, %c0_i32_0 : i32, i32, i32
  }
  func.func @transform_1(%arg0: i32) -> (i32, i32, i32) {
    %c0_i32 = arith.constant 0 : i32
    %c0_i32_0 = arith.constant 0 : i32
    %c0_i32_1 = arith.constant 0 : i32
    %c0_i32_2 = arith.constant 0 : i32
    return %c0_i32, %c0_i32_0, %c0_i32_1 : i32, i32, i32
  }
  func.func @transform_2(%arg0: i32) -> (i32, i32) {
    %c0_i32 = arith.constant 0 : i32
    %c0_i32_0 = arith.constant 0 : i32
    return %arg0, %c0_i32 : i32, i32
  }
  func.func @transform_3(%arg0: i32) -> (i32, i32, i32) {
    %c0_i32 = arith.constant 0 : i32
    %c0_i32_0 = arith.constant 0 : i32
    %c0_i32_1 = arith.constant 0 : i32
    return %arg0, %c0_i32, %c0_i32_0 : i32, i32, i32
  }
  func.func @transform_4(%arg0: i32) -> (i32, i32, i32) {
    %c0_i32 = arith.constant 0 : i32
    %c0_i32_0 = arith.constant 0 : i32
    %c0_i32_1 = arith.constant 0 : i32
    return %arg0, %c0_i32, %c0_i32_0 : i32, i32, i32
  }
}

module attributes {stable_mosaic.version = 11 : i64} {
  func.func @_fused_conv_kernel(%arg0: i32, %arg1: memref<1x82x128xbf16, #tpu.memory_space<vmem>>, %arg2: memref<4x128x128xbf16, #tpu.memory_space<vmem>>, %arg3: memref<72x128xbf16, #tpu.memory_space<vmem>>, %arg4: memref<1x1x128xf32, #tpu.memory_space<vmem>>, %arg5: memref<1x1x128xf32, #tpu.memory_space<vmem>>) attributes {dimension_semantics = [#tpu.dimension_semantics<parallel>], iteration_bounds = array<i64: 2>, scalar_prefetch = 0 : i64, scratch_operands = 0 : i64, tpu.core_type = #tpu.core_type<tc>, window_params = [{transform_indices = @transform_0, window_bounds = array<i64: 1, 82, 128>}, {pipeline_mode = #tpu.pipeline_mode<synchronous>, transform_indices = @transform_1, window_bounds = array<i64: 4, 128, 128>}, {transform_indices = @transform_2, window_bounds = array<i64: 72, 128>}, {transform_indices = @transform_3, window_bounds = array<i64: 1, 1, 128>}, {transform_indices = @transform_4, window_bounds = array<i64: 1, 1, 128>}]} {
    %c0 = arith.constant 0 : index
    %c0_0 = arith.constant 0 : index
    %c0_1 = arith.constant 0 : index
    %0 = vector.load %arg1[%c0, %c0_0, %c0_1] : memref<1x82x128xbf16, #tpu.memory_space<vmem>>, vector<1x72x128xbf16>
    %1 = vector.shape_cast %0 : vector<1x72x128xbf16> to vector<72x128xbf16>
    %c0_2 = arith.constant 0 : index
    %c0_3 = arith.constant 0 : index
    %c0_4 = arith.constant 0 : index
    %2 = vector.load %arg2[%c0_2, %c0_3, %c0_4] : memref<4x128x128xbf16, #tpu.memory_space<vmem>>, vector<1x128x128xbf16>
    %3 = vector.shape_cast %2 : vector<1x128x128xbf16> to vector<128x128xbf16>
    %cst = arith.constant dense<0.000000e+00> : vector<72x128xf32>
    %4 = tpu.matmul %1, %3, %cst {dimension_numbers = #tpu.dot_dimension_numbers<[1], [0], [0], [1], [0, 0, 1, 1], [], []>} : vector<72x128xbf16>, vector<128x128xbf16>, vector<72x128xf32> -> vector<72x128xf32>
    %c0_5 = arith.constant 0 : index
    %c1 = arith.constant 1 : index
    %c0_6 = arith.constant 0 : index
    %5 = vector.load %arg1[%c0_5, %c1, %c0_6] : memref<1x82x128xbf16, #tpu.memory_space<vmem>>, vector<1x72x128xbf16>
    %6 = vector.shape_cast %5 : vector<1x72x128xbf16> to vector<72x128xbf16>
    %c1_7 = arith.constant 1 : index
    %c0_8 = arith.constant 0 : index
    %c0_9 = arith.constant 0 : index
    %7 = vector.load %arg2[%c1_7, %c0_8, %c0_9] : memref<4x128x128xbf16, #tpu.memory_space<vmem>>, vector<1x128x128xbf16>
    %8 = vector.shape_cast %7 : vector<1x128x128xbf16> to vector<128x128xbf16>
    %cst_10 = arith.constant dense<0.000000e+00> : vector<72x128xf32>
    %9 = tpu.matmul %6, %8, %cst_10 {dimension_numbers = #tpu.dot_dimension_numbers<[1], [0], [0], [1], [0, 0, 1, 1], [], []>} : vector<72x128xbf16>, vector<128x128xbf16>, vector<72x128xf32> -> vector<72x128xf32>
    %10 = arith.addf %4, %9 : vector<72x128xf32>
    %c0_11 = arith.constant 0 : index
    %c9 = arith.constant 9 : index
    %c0_12 = arith.constant 0 : index
    %11 = vector.load %arg1[%c0_11, %c9, %c0_12] : memref<1x82x128xbf16, #tpu.memory_space<vmem>>, vector<1x72x128xbf16>
    %12 = vector.shape_cast %11 : vector<1x72x128xbf16> to vector<72x128xbf16>
    %c2 = arith.constant 2 : index
    %c0_13 = arith.constant 0 : index
    %c0_14 = arith.constant 0 : index
    %13 = vector.load %arg2[%c2, %c0_13, %c0_14] : memref<4x128x128xbf16, #tpu.memory_space<vmem>>, vector<1x128x128xbf16>
    %14 = vector.shape_cast %13 : vector<1x128x128xbf16> to vector<128x128xbf16>
    %cst_15 = arith.constant dense<0.000000e+00> : vector<72x128xf32>
    %15 = tpu.matmul %12, %14, %cst_15 {dimension_numbers = #tpu.dot_dimension_numbers<[1], [0], [0], [1], [0, 0, 1, 1], [], []>} : vector<72x128xbf16>, vector<128x128xbf16>, vector<72x128xf32> -> vector<72x128xf32>
    %16 = arith.addf %10, %15 : vector<72x128xf32>
    %c0_16 = arith.constant 0 : index
    %c10 = arith.constant 10 : index
    %c0_17 = arith.constant 0 : index
    %17 = vector.load %arg1[%c0_16, %c10, %c0_17] : memref<1x82x128xbf16, #tpu.memory_space<vmem>>, vector<1x72x128xbf16>
    %18 = vector.shape_cast %17 : vector<1x72x128xbf16> to vector<72x128xbf16>
    %c3 = arith.constant 3 : index
    %c0_18 = arith.constant 0 : index
    %c0_19 = arith.constant 0 : index
    %19 = vector.load %arg2[%c3, %c0_18, %c0_19] : memref<4x128x128xbf16, #tpu.memory_space<vmem>>, vector<1x128x128xbf16>
    %20 = vector.shape_cast %19 : vector<1x128x128xbf16> to vector<128x128xbf16>
    %cst_20 = arith.constant dense<0.000000e+00> : vector<72x128xf32>
    %21 = tpu.matmul %18, %20, %cst_20 {dimension_numbers = #tpu.dot_dimension_numbers<[1], [0], [0], [1], [0, 0, 1, 1], [], []>} : vector<72x128xbf16>, vector<128x128xbf16>, vector<72x128xf32> -> vector<72x128xf32>
    %22 = arith.addf %16, %21 : vector<72x128xf32>
    %23 = arith.truncf %22 : vector<72x128xf32> to vector<72x128xbf16>
    %c0_21 = arith.constant 0 : index
    %c0_22 = arith.constant 0 : index
    %24 = vector.load %arg3[%c0_21, %c0_22] : memref<72x128xbf16, #tpu.memory_space<vmem>>, vector<72x128xbf16>
    tpu.vector_store %arg3[%c0_21, %c0_22], %23 {strides = array<i32>} : memref<72x128xbf16, #tpu.memory_space<vmem>>, vector<72x128xbf16>,
    %25 = tpu.iota {dimensions = array<i32: 0>} : vector<72x1xi32>
    %c72_i32 = arith.constant 72 : i32
    %c0_i32 = arith.constant 0 : i32
    %26 = arith.cmpi eq, %c72_i32, %c0_i32 : i32
    %c1_i32 = arith.constant 1 : i32
    %27 = arith.select %26, %c1_i32, %c72_i32 : i32
    %28 = vector.broadcast %27 : i32 to vector<72x1xi32>
    %29 = arith.remsi %25, %28 : vector<72x1xi32>
    %c0_i32_23 = arith.constant 0 : i32
    %30 = vector.broadcast %c0_i32_23 : i32 to vector<72x1xi32>
    %31 = arith.cmpi ne, %29, %30 : vector<72x1xi32>
    %c0_i32_24 = arith.constant 0 : i32
    %32 = vector.broadcast %c0_i32_24 : i32 to vector<72x1xi32>
    %33 = arith.cmpi slt, %29, %32 : vector<72x1xi32>
    %c0_i32_25 = arith.constant 0 : i32
    %34 = arith.cmpi slt, %27, %c0_i32_25 : i32
    %35 = vector.broadcast %34 : i1 to vector<72x1xi1>
    %36 = vector.broadcast %35 : vector<72x1xi1> to vector<72x1xi1>
    %37 = arith.xori %33, %36 : vector<72x1xi1>
    %38 = arith.andi %37, %31 : vector<72x1xi1>
    %39 = vector.broadcast %27 : i32 to vector<72x1xi32>
    %40 = arith.addi %29, %39 : vector<72x1xi32>
    %41 = arith.select %38, %40, %29 : vector<72x1xi1>, vector<72x1xi32>
    %c9_i32 = arith.constant 9 : i32
    %c0_i32_26 = arith.constant 0 : i32
    %42 = arith.cmpi eq, %c9_i32, %c0_i32_26 : i32
    %c1_i32_27 = arith.constant 1 : i32
    %43 = arith.select %42, %c1_i32_27, %c9_i32 : i32
    %44 = vector.broadcast %43 : i32 to vector<72x1xi32>
    %45 = arith.remsi %41, %44 : vector<72x1xi32>
    %c0_i32_28 = arith.constant 0 : i32
    %46 = vector.broadcast %c0_i32_28 : i32 to vector<72x1xi32>
    %47 = arith.cmpi ne, %45, %46 : vector<72x1xi32>
    %c0_i32_29 = arith.constant 0 : i32
    %48 = vector.broadcast %c0_i32_29 : i32 to vector<72x1xi32>
    %49 = arith.cmpi slt, %45, %48 : vector<72x1xi32>
    %c0_i32_30 = arith.constant 0 : i32
    %50 = arith.cmpi slt, %43, %c0_i32_30 : i32
    %51 = vector.broadcast %50 : i1 to vector<72x1xi1>
    %52 = vector.broadcast %51 : vector<72x1xi1> to vector<72x1xi1>
    %53 = arith.xori %49, %52 : vector<72x1xi1>
    %54 = arith.andi %53, %47 : vector<72x1xi1>
    %55 = vector.broadcast %43 : i32 to vector<72x1xi32>
    %56 = arith.addi %45, %55 : vector<72x1xi32>
    %57 = arith.select %54, %56, %45 : vector<72x1xi1>, vector<72x1xi32>
    %c8_i32 = arith.constant 8 : i32
    %58 = vector.broadcast %c8_i32 : i32 to vector<72x1xi32>
    %59 = arith.cmpi slt, %57, %58 : vector<72x1xi32>
    %60 = arith.extui %59 : vector<72x1xi1> to vector<72x1xi32>
    %61 = arith.sitofp %60 : vector<72x1xi32> to vector<72x1xf32>
    %62 = vector.broadcast %61 : vector<72x1xf32> to vector<72x128xf32>
    %63 = arith.mulf %22, %62 : vector<72x128xf32>
    %cst_31 = arith.constant dense<0.000000e+00> : vector<128xf32>
    %64 = vector.multi_reduction <add>, %63, %cst_31 [0] : vector<72x128xf32> to vector<128xf32>
    %65 = vector.shape_cast %64 : vector<128xf32> to vector<1x128xf32>
    %c0_32 = arith.constant 0 : index
    %c0_33 = arith.constant 0 : index
    %c0_34 = arith.constant 0 : index
    %66 = vector.load %arg4[%c0_32, %c0_33, %c0_34] : memref<1x1x128xf32, #tpu.memory_space<vmem>>, vector<1x1x128xf32>
    %67 = vector.shape_cast %66 : vector<1x1x128xf32> to vector<1x128xf32>
    %68 = vector.shape_cast %65 : vector<1x128xf32> to vector<1x1x128xf32>
    tpu.vector_store %arg4[%c0_32, %c0_33, %c0_34], %68 {strides = array<i32>} : memref<1x1x128xf32, #tpu.memory_space<vmem>>, vector<1x1x128xf32>,
    %69 = arith.mulf %63, %22 : vector<72x128xf32>
    %cst_35 = arith.constant dense<0.000000e+00> : vector<128xf32>
    %70 = vector.multi_reduction <add>, %69, %cst_35 [0] : vector<72x128xf32> to vector<128xf32>
    %71 = vector.shape_cast %70 : vector<128xf32> to vector<1x128xf32>
    %c0_36 = arith.constant 0 : index
    %c0_37 = arith.constant 0 : index
    %c0_38 = arith.constant 0 : index
    %72 = vector.load %arg5[%c0_36, %c0_37, %c0_38] : memref<1x1x128xf32, #tpu.memory_space<vmem>>, vector<1x1x128xf32>
    %73 = vector.shape_cast %72 : vector<1x1x128xf32> to vector<1x128xf32>
    %74 = vector.shape_cast %71 : vector<1x128xf32> to vector<1x1x128xf32>
    tpu.vector_store %arg5[%c0_36, %c0_37, %c0_38], %74 {strides = array<i32>} : memref<1x1x128xf32, #tpu.memory_space<vmem>>, vector<1x1x128xf32>,
    return
  }
  func.func @transform_0(%arg0: i32) -> (i32, i32, i32) {
    %c0_i32 = arith.constant 0 : i32
    %c0_i32_0 = arith.constant 0 : i32
    %c0_i32_1 = arith.constant 0 : i32
    return %arg0, %c0_i32, %c0_i32_0 : i32, i32, i32
  }
  func.func @transform_1(%arg0: i32) -> (i32, i32, i32) {
    %c0_i32 = arith.constant 0 : i32
    %c0_i32_0 = arith.constant 0 : i32
    %c0_i32_1 = arith.constant 0 : i32
    %c0_i32_2 = arith.constant 0 : i32
    return %c0_i32, %c0_i32_0, %c0_i32_1 : i32, i32, i32
  }
  func.func @transform_2(%arg0: i32) -> (i32, i32) {
    %c0_i32 = arith.constant 0 : i32
    %c0_i32_0 = arith.constant 0 : i32
    return %arg0, %c0_i32 : i32, i32
  }
  func.func @transform_3(%arg0: i32) -> (i32, i32, i32) {
    %c0_i32 = arith.constant 0 : i32
    %c0_i32_0 = arith.constant 0 : i32
    %c0_i32_1 = arith.constant 0 : i32
    return %arg0, %c0_i32, %c0_i32_0 : i32, i32, i32
  }
  func.func @transform_4(%arg0: i32) -> (i32, i32, i32) {
    %c0_i32 = arith.constant 0 : i32
    %c0_i32_0 = arith.constant 0 : i32
    %c0_i32_1 = arith.constant 0 : i32
    return %arg0, %c0_i32, %c0_i32_0 : i32, i32, i32
  }
}

module attributes {stable_mosaic.version = 11 : i64} {
  func.func @_fused_conv_kernel(%arg0: i32, %arg1: memref<1x30x256xbf16, #tpu.memory_space<vmem>>, %arg2: memref<4x256x128xbf16, #tpu.memory_space<vmem>>, %arg3: memref<24x128xbf16, #tpu.memory_space<vmem>>, %arg4: memref<1x1x128xf32, #tpu.memory_space<vmem>>, %arg5: memref<1x1x128xf32, #tpu.memory_space<vmem>>) attributes {dimension_semantics = [#tpu.dimension_semantics<parallel>], iteration_bounds = array<i64: 2>, scalar_prefetch = 0 : i64, scratch_operands = 0 : i64, tpu.core_type = #tpu.core_type<tc>, window_params = [{transform_indices = @transform_0, window_bounds = array<i64: 1, 30, 256>}, {pipeline_mode = #tpu.pipeline_mode<synchronous>, transform_indices = @transform_1, window_bounds = array<i64: 4, 256, 128>}, {transform_indices = @transform_2, window_bounds = array<i64: 24, 128>}, {transform_indices = @transform_3, window_bounds = array<i64: 1, 1, 128>}, {transform_indices = @transform_4, window_bounds = array<i64: 1, 1, 128>}]} {
    %c0 = arith.constant 0 : index
    %c0_0 = arith.constant 0 : index
    %c0_1 = arith.constant 0 : index
    %0 = vector.load %arg1[%c0, %c0_0, %c0_1] : memref<1x30x256xbf16, #tpu.memory_space<vmem>>, vector<1x24x256xbf16>
    %1 = vector.shape_cast %0 : vector<1x24x256xbf16> to vector<24x256xbf16>
    %c0_2 = arith.constant 0 : index
    %c0_3 = arith.constant 0 : index
    %c0_4 = arith.constant 0 : index
    %2 = vector.load %arg2[%c0_2, %c0_3, %c0_4] : memref<4x256x128xbf16, #tpu.memory_space<vmem>>, vector<1x256x128xbf16>
    %3 = vector.shape_cast %2 : vector<1x256x128xbf16> to vector<256x128xbf16>
    %cst = arith.constant dense<0.000000e+00> : vector<24x128xf32>
    %4 = tpu.matmul %1, %3, %cst {dimension_numbers = #tpu.dot_dimension_numbers<[1], [0], [0], [1], [0, 0, 1, 1], [], []>} : vector<24x256xbf16>, vector<256x128xbf16>, vector<24x128xf32> -> vector<24x128xf32>
    %c0_5 = arith.constant 0 : index
    %c1 = arith.constant 1 : index
    %c0_6 = arith.constant 0 : index
    %5 = vector.load %arg1[%c0_5, %c1, %c0_6] : memref<1x30x256xbf16, #tpu.memory_space<vmem>>, vector<1x24x256xbf16>
    %6 = vector.shape_cast %5 : vector<1x24x256xbf16> to vector<24x256xbf16>
    %c1_7 = arith.constant 1 : index
    %c0_8 = arith.constant 0 : index
    %c0_9 = arith.constant 0 : index
    %7 = vector.load %arg2[%c1_7, %c0_8, %c0_9] : memref<4x256x128xbf16, #tpu.memory_space<vmem>>, vector<1x256x128xbf16>
    %8 = vector.shape_cast %7 : vector<1x256x128xbf16> to vector<256x128xbf16>
    %cst_10 = arith.constant dense<0.000000e+00> : vector<24x128xf32>
    %9 = tpu.matmul %6, %8, %cst_10 {dimension_numbers = #tpu.dot_dimension_numbers<[1], [0], [0], [1], [0, 0, 1, 1], [], []>} : vector<24x256xbf16>, vector<256x128xbf16>, vector<24x128xf32> -> vector<24x128xf32>
    %10 = arith.addf %4, %9 : vector<24x128xf32>
    %c0_11 = arith.constant 0 : index
    %c5 = arith.constant 5 : index
    %c0_12 = arith.constant 0 : index
    %11 = vector.load %arg1[%c0_11, %c5, %c0_12] : memref<1x30x256xbf16, #tpu.memory_space<vmem>>, vector<1x24x256xbf16>
    %12 = vector.shape_cast %11 : vector<1x24x256xbf16> to vector<24x256xbf16>
    %c2 = arith.constant 2 : index
    %c0_13 = arith.constant 0 : index
    %c0_14 = arith.constant 0 : index
    %13 = vector.load %arg2[%c2, %c0_13, %c0_14] : memref<4x256x128xbf16, #tpu.memory_space<vmem>>, vector<1x256x128xbf16>
    %14 = vector.shape_cast %13 : vector<1x256x128xbf16> to vector<256x128xbf16>
    %cst_15 = arith.constant dense<0.000000e+00> : vector<24x128xf32>
    %15 = tpu.matmul %12, %14, %cst_15 {dimension_numbers = #tpu.dot_dimension_numbers<[1], [0], [0], [1], [0, 0, 1, 1], [], []>} : vector<24x256xbf16>, vector<256x128xbf16>, vector<24x128xf32> -> vector<24x128xf32>
    %16 = arith.addf %10, %15 : vector<24x128xf32>
    %c0_16 = arith.constant 0 : index
    %c6 = arith.constant 6 : index
    %c0_17 = arith.constant 0 : index
    %17 = vector.load %arg1[%c0_16, %c6, %c0_17] : memref<1x30x256xbf16, #tpu.memory_space<vmem>>, vector<1x24x256xbf16>
    %18 = vector.shape_cast %17 : vector<1x24x256xbf16> to vector<24x256xbf16>
    %c3 = arith.constant 3 : index
    %c0_18 = arith.constant 0 : index
    %c0_19 = arith.constant 0 : index
    %19 = vector.load %arg2[%c3, %c0_18, %c0_19] : memref<4x256x128xbf16, #tpu.memory_space<vmem>>, vector<1x256x128xbf16>
    %20 = vector.shape_cast %19 : vector<1x256x128xbf16> to vector<256x128xbf16>
    %cst_20 = arith.constant dense<0.000000e+00> : vector<24x128xf32>
    %21 = tpu.matmul %18, %20, %cst_20 {dimension_numbers = #tpu.dot_dimension_numbers<[1], [0], [0], [1], [0, 0, 1, 1], [], []>} : vector<24x256xbf16>, vector<256x128xbf16>, vector<24x128xf32> -> vector<24x128xf32>
    %22 = arith.addf %16, %21 : vector<24x128xf32>
    %23 = arith.truncf %22 : vector<24x128xf32> to vector<24x128xbf16>
    %c0_21 = arith.constant 0 : index
    %c0_22 = arith.constant 0 : index
    %24 = vector.load %arg3[%c0_21, %c0_22] : memref<24x128xbf16, #tpu.memory_space<vmem>>, vector<24x128xbf16>
    tpu.vector_store %arg3[%c0_21, %c0_22], %23 {strides = array<i32>} : memref<24x128xbf16, #tpu.memory_space<vmem>>, vector<24x128xbf16>,
    %25 = tpu.iota {dimensions = array<i32: 0>} : vector<24x1xi32>
    %c24_i32 = arith.constant 24 : i32
    %c0_i32 = arith.constant 0 : i32
    %26 = arith.cmpi eq, %c24_i32, %c0_i32 : i32
    %c1_i32 = arith.constant 1 : i32
    %27 = arith.select %26, %c1_i32, %c24_i32 : i32
    %28 = vector.broadcast %27 : i32 to vector<24x1xi32>
    %29 = arith.remsi %25, %28 : vector<24x1xi32>
    %c0_i32_23 = arith.constant 0 : i32
    %30 = vector.broadcast %c0_i32_23 : i32 to vector<24x1xi32>
    %31 = arith.cmpi ne, %29, %30 : vector<24x1xi32>
    %c0_i32_24 = arith.constant 0 : i32
    %32 = vector.broadcast %c0_i32_24 : i32 to vector<24x1xi32>
    %33 = arith.cmpi slt, %29, %32 : vector<24x1xi32>
    %c0_i32_25 = arith.constant 0 : i32
    %34 = arith.cmpi slt, %27, %c0_i32_25 : i32
    %35 = vector.broadcast %34 : i1 to vector<24x1xi1>
    %36 = vector.broadcast %35 : vector<24x1xi1> to vector<24x1xi1>
    %37 = arith.xori %33, %36 : vector<24x1xi1>
    %38 = arith.andi %37, %31 : vector<24x1xi1>
    %39 = vector.broadcast %27 : i32 to vector<24x1xi32>
    %40 = arith.addi %29, %39 : vector<24x1xi32>
    %41 = arith.select %38, %40, %29 : vector<24x1xi1>, vector<24x1xi32>
    %c5_i32 = arith.constant 5 : i32
    %c0_i32_26 = arith.constant 0 : i32
    %42 = arith.cmpi eq, %c5_i32, %c0_i32_26 : i32
    %c1_i32_27 = arith.constant 1 : i32
    %43 = arith.select %42, %c1_i32_27, %c5_i32 : i32
    %44 = vector.broadcast %43 : i32 to vector<24x1xi32>
    %45 = arith.remsi %41, %44 : vector<24x1xi32>
    %c0_i32_28 = arith.constant 0 : i32
    %46 = vector.broadcast %c0_i32_28 : i32 to vector<24x1xi32>
    %47 = arith.cmpi ne, %45, %46 : vector<24x1xi32>
    %c0_i32_29 = arith.constant 0 : i32
    %48 = vector.broadcast %c0_i32_29 : i32 to vector<24x1xi32>
    %49 = arith.cmpi slt, %45, %48 : vector<24x1xi32>
    %c0_i32_30 = arith.constant 0 : i32
    %50 = arith.cmpi slt, %43, %c0_i32_30 : i32
    %51 = vector.broadcast %50 : i1 to vector<24x1xi1>
    %52 = vector.broadcast %51 : vector<24x1xi1> to vector<24x1xi1>
    %53 = arith.xori %49, %52 : vector<24x1xi1>
    %54 = arith.andi %53, %47 : vector<24x1xi1>
    %55 = vector.broadcast %43 : i32 to vector<24x1xi32>
    %56 = arith.addi %45, %55 : vector<24x1xi32>
    %57 = arith.select %54, %56, %45 : vector<24x1xi1>, vector<24x1xi32>
    %c4_i32 = arith.constant 4 : i32
    %58 = vector.broadcast %c4_i32 : i32 to vector<24x1xi32>
    %59 = arith.cmpi slt, %57, %58 : vector<24x1xi32>
    %c20_i32 = arith.constant 20 : i32
    %60 = vector.broadcast %c20_i32 : i32 to vector<24x1xi32>
    %61 = arith.cmpi slt, %41, %60 : vector<24x1xi32>
    %62 = arith.andi %59, %61 : vector<24x1xi1>
    %63 = arith.extui %62 : vector<24x1xi1> to vector<24x1xi32>
    %64 = arith.sitofp %63 : vector<24x1xi32> to vector<24x1xf32>
    %65 = vector.broadcast %64 : vector<24x1xf32> to vector<24x128xf32>
    %66 = arith.mulf %22, %65 : vector<24x128xf32>
    %cst_31 = arith.constant dense<0.000000e+00> : vector<128xf32>
    %67 = vector.multi_reduction <add>, %66, %cst_31 [0] : vector<24x128xf32> to vector<128xf32>
    %68 = vector.shape_cast %67 : vector<128xf32> to vector<1x128xf32>
    %c0_32 = arith.constant 0 : index
    %c0_33 = arith.constant 0 : index
    %c0_34 = arith.constant 0 : index
    %69 = vector.load %arg4[%c0_32, %c0_33, %c0_34] : memref<1x1x128xf32, #tpu.memory_space<vmem>>, vector<1x1x128xf32>
    %70 = vector.shape_cast %69 : vector<1x1x128xf32> to vector<1x128xf32>
    %71 = vector.shape_cast %68 : vector<1x128xf32> to vector<1x1x128xf32>
    tpu.vector_store %arg4[%c0_32, %c0_33, %c0_34], %71 {strides = array<i32>} : memref<1x1x128xf32, #tpu.memory_space<vmem>>, vector<1x1x128xf32>,
    %72 = arith.mulf %66, %22 : vector<24x128xf32>
    %cst_35 = arith.constant dense<0.000000e+00> : vector<128xf32>
    %73 = vector.multi_reduction <add>, %72, %cst_35 [0] : vector<24x128xf32> to vector<128xf32>
    %74 = vector.shape_cast %73 : vector<128xf32> to vector<1x128xf32>
    %c0_36 = arith.constant 0 : index
    %c0_37 = arith.constant 0 : index
    %c0_38 = arith.constant 0 : index
    %75 = vector.load %arg5[%c0_36, %c0_37, %c0_38] : memref<1x1x128xf32, #tpu.memory_space<vmem>>, vector<1x1x128xf32>
    %76 = vector.shape_cast %75 : vector<1x1x128xf32> to vector<1x128xf32>
    %77 = vector.shape_cast %74 : vector<1x128xf32> to vector<1x1x128xf32>
    tpu.vector_store %arg5[%c0_36, %c0_37, %c0_38], %77 {strides = array<i32>} : memref<1x1x128xf32, #tpu.memory_space<vmem>>, vector<1x1x128xf32>,
    return
  }
  func.func @transform_0(%arg0: i32) -> (i32, i32, i32) {
    %c0_i32 = arith.constant 0 : i32
    %c0_i32_0 = arith.constant 0 : i32
    %c0_i32_1 = arith.constant 0 : i32
    return %arg0, %c0_i32, %c0_i32_0 : i32, i32, i32
  }
  func.func @transform_1(%arg0: i32) -> (i32, i32, i32) {
    %c0_i32 = arith.constant 0 : i32
    %c0_i32_0 = arith.constant 0 : i32
    %c0_i32_1 = arith.constant 0 : i32
    %c0_i32_2 = arith.constant 0 : i32
    return %c0_i32, %c0_i32_0, %c0_i32_1 : i32, i32, i32
  }
  func.func @transform_2(%arg0: i32) -> (i32, i32) {
    %c0_i32 = arith.constant 0 : i32
    %c0_i32_0 = arith.constant 0 : i32
    return %arg0, %c0_i32 : i32, i32
  }
  func.func @transform_3(%arg0: i32) -> (i32, i32, i32) {
    %c0_i32 = arith.constant 0 : i32
    %c0_i32_0 = arith.constant 0 : i32
    %c0_i32_1 = arith.constant 0 : i32
    return %arg0, %c0_i32, %c0_i32_0 : i32, i32, i32
  }
  func.func @transform_4(%arg0: i32) -> (i32, i32, i32) {
    %c0_i32 = arith.constant 0 : i32
    %c0_i32_0 = arith.constant 0 : i32
    %c0_i32_1 = arith.constant 0 : i32
    return %arg0, %c0_i32, %c0_i32_0 : i32, i32, i32
  }
}

</mosaic_0001>

<bundles_post_ra>
// kernel: dcgan_discriminator_forward.4
= control target key start
LH: loop header
LB: loop body
LE: loop exit
PB: predicated region body
PF: predicated region fallthrough
CT: control target
= control target key end

     0   :  { %s3617_s9 = smov 0   ;;  %s3862_s0 = inlined_call_operand.vmem [shape: bf16[2,1088,72], index: 0, kind: input, shape index: {}]   ;;  %s3863_s1 = inlined_call_operand.vmem [shape: bf16[1,72,128], index: 1, kind: input, shape index: {}]   ;;  %s3864_s2 = inlined_call_operand.vmem [shape: bf16[2176,128], index: 2, kind: output, shape index: {}]  }
   0x1 LB: > { %s3623_s10 = sadd.s32 4294967295, %s3600_s9   ;;  %p2456_p0 = scmp.ge.s32.totalorder %s3600_s9, 1  ;;  %s3600_s9 = sphi %s3617_s9, %s12_s9  }
   0x2   : > { %p112_p1 = scmp.lt.s32.totalorder %s3600_s9, 3 }
   0x4   : > { %p113_p2 = pnand %p2456_p0, %p112_p1 }
   0x5   : > { %v3521_v0 = vld [vmem:[%s3863_s1] sm:$0xff] (!%p113_p2)   ;;  %v3522_v1 = vld [vmem:[%s3863_s1 + $0x8] sm:$0xff] (!%p113_p2)   ;;  %p134_p3 = scmp.lt.s32.totalorder (!%p113_p2), %s3623_s10, 1  ;;  %v3523_v2 = vld [vmem:[%s3863_s1 + $0x10] sm:$0xff] (!%p113_p2)   ;;  %vm658_vm0 = vcmask (!%p113_p2), 588800   ;;  %vm863_vm1 = vcmask (!%p113_p2), 1043456  }
   0x6   : > { %116 = sbr.rel (%p113_p2) target bundleno = 378 (0x17a), region = 28  ;;  %3354 = vmatprep.subr.bf16.mxu0 (!%p113_p2), %v3521_v0  ;;  %3500 = vmatprep.subr.bf16.mxu1 (!%p113_p2), %v3521_v0  ;;  %v3524_v3 = vld [vmem:[%s3863_s1 + $0x18] sm:$0xff] (!%p113_p2)   ;;  %v3525_v6 = vld [vmem:[%s3863_s1 + $0x20] ss:$0 sps:$4 sm:$0xff] (!%p113_p2)  }
   0x7   : > { %3355 = vmatpush3.bf16.msra.mxu0 (!%p113_p2), %v3521_v0  ;;  %3505 = vmatpush3.bf16.msra.mxu1 (!%p113_p2), %v3521_v0  ;;  %v865_v7 = vsel (!%p113_p2), %vm863_vm1, %v3525_v6, 0  ;;  %s139_s26 = smul.u32 (!%p113_p2), 136, %s3623_s10 }
   0x8   : > { %3356 = vmatprep.subr.bf16.mxu0 (!%p113_p2), %v3522_v1  ;;  %3501 = vmatprep.subr.bf16.mxu1 (!%p113_p2), %v3522_v1 }
   0x9   : > { %p140_p4 = scmp.lt.s32.totalorder (!%p113_p2), %s139_s26, 271 }
   0xb   : > { %3357 = vmatpush3.bf16.msra.mxu0 (!%p113_p2), %v3522_v1  ;;  %3506 = vmatpush3.bf16.msra.mxu1 (!%p113_p2), %v3522_v1 }
   0xc   : > { %3358 = vmatprep.subr.bf16.mxu0 (!%p113_p2), %v3523_v2  ;;  %3502 = vmatprep.subr.bf16.mxu1 (!%p113_p2), %v3523_v2 }
   0xd   : > { %s135_s15 = scalar_select %p134_p3, %s3623_s10, 1 }
   0xe   : > { %s3866_s26 = smov (!%p140_p4, %s139_s26), 271 }
   0xf   : > { %s3512_s18 = smul.u32 544, %s135_s15  ;;  %3359 = vmatpush3.bf16.msra.mxu0 %v3523_v2  ;;  %3507 = vmatpush3.bf16.msra.mxu1 %v3523_v2  ;;  %s2458_s27 = sshll.u32 %s3866_s26, 2 }
  0x10   : > { %3360 = vmatprep.subr.bf16.mxu0 %v3524_v3  ;;  %3503 = vmatprep.subr.bf16.mxu1 %v3524_v3  ;;  %s3789_s30 = scalar_lea.vmem %s3864_s2, %s2458_s27 }
  0x11   : > { %s3644_s23 = scalar_lea.vmem %s3862_s0, %s3512_s18 }
  0x12   : > { %v3526_v4 = vld [vmem:[%s3644_s23] sm:$0xff]   ;;  %v3527_v5 = vld [vmem:[%s3644_s23 + $0x110] sm:$0xff]   ;;  %v3528_v8 = vld [vmem:[%s3644_s23 + $0x8] sm:$0xff]  }
  0x13   : > { %3364 = vmatprep.mubr.msk.bf16.mxu0 %vm658_vm0, %v3526_v4  ;;  %3432 = vmatprep.mubr.msk.bf16.mxu1 %vm658_vm0, %v3527_v5  ;;  %v3529_v9 = vld [vmem:[%s3644_s23 + $0x118] sm:$0xff]   ;;  %v3530_v10 = vld [vmem:[%s3644_s23 + $0x10] sm:$0xff]   ;;  %v3531_v11 = vld [vmem:[%s3644_s23 + $0x120] sm:$0xff]  }
  0x14   : > { %3361 = vmatpush3.bf16.msra.mxu0 %v3524_v3  ;;  %3508 = vmatpush3.bf16.msra.mxu1 %v3524_v3  ;;  %v3532_v12 = vld [vmem:[%s3644_s23 + $0x18] sm:$0xff]   ;;  %v3533_v13 = vld [vmem:[%s3644_s23 + $0x128] sm:$0xff]   ;;  %v3534_v14 = vld [vmem:[%s3644_s23 + $0x20] sm:$0xff]  }
  0x15   : > { %3510 = vmatprep.subr.msk.bf16.mxu0 %vm863_vm1, %v3525_v6  ;;  %3511 = vmatprep.subr.msk.bf16.mxu1 %vm863_vm1, %v3525_v6  ;;  %v3535_v15 = vld [vmem:[%s3644_s23 + $0x130] sm:$0xff]   ;;  %v3536_v16 = vld [vmem:[%s3644_s23 + $0x28] sm:$0xff]   ;;  %v3537_v17 = vld [vmem:[%s3644_s23 + $0x138] sm:$0xff]  }
  0x16   : > { %v3538_v18 = vld [vmem:[%s3644_s23 + $0x30] sm:$0xff]   ;;  %v3539_v19 = vld [vmem:[%s3644_s23 + $0x140] sm:$0xff]   ;;  %v3540_v20 = vld [vmem:[%s3644_s23 + $0x38] sm:$0xff]  }
  0x17   : > { %v3541_v21 = vld [vmem:[%s3644_s23 + $0x148] sm:$0xff]   ;;  %v3542_v22 = vld [vmem:[%s3644_s23 + $0x40] sm:$0xff]   ;;  %v3543_v23 = vld [vmem:[%s3644_s23 + $0x150] sm:$0xff]  }
  0x18   : > { %3363 = vmatpush3.bf16.msra.mxu0 %v865_v7  ;;  %3509 = vmatpush3.bf16.msra.mxu1 %v865_v7  ;;  %v3544_v24 = vld [vmem:[%s3644_s23 + $0x48] sm:$0xff]   ;;  %v3545_v25 = vld [vmem:[%s3644_s23 + $0x158] sm:$0xff]   ;;  %v3546_v26 = vld [vmem:[%s3644_s23 + $0x50] sm:$0xff]  }
  0x19   : > { %v3547_v27 = vld [vmem:[%s3644_s23 + $0x160] sm:$0xff]   ;;  %v3548_v28 = vld [vmem:[%s3644_s23 + $0x58] sm:$0xff]   ;;  %v3549_v29 = vld [vmem:[%s3644_s23 + $0x168] sm:$0xff]  }
  0x1a   : > { %v3550_v30 = vld [vmem:[%s3644_s23 + $0x60] sm:$0xff]   ;;  %v3551_v31 = vld [vmem:[%s3644_s23 + $0x170] sm:$0xff]   ;;  %v3552_v32 = vld [vmem:[%s3644_s23 + $0x68] sm:$0xff]  }
  0x1b   : > { %3365 = vmatmul.mubr.msk.bf16.vlgmr.msra.gmra.mrb[0].mxu0 %vm658_vm0, %v3528_v8  ;;  %3433 = vmatmul.mubr.msk.bf16.vlgmr.msra.gmra.mrb[0].mxu1 %vm658_vm0, %v3529_v9  ;;  %v3553_v33 = vld [vmem:[%s3644_s23 + $0x178] sm:$0xff]   ;;  %v3554_v34 = vld [vmem:[%s3644_s23 + $0x70] sm:$0xff]   ;;  %v3555_v35 = vld [vmem:[%s3644_s23 + $0x180] sm:$0xff]  }
  0x1c   : > { %3368 = vmatprep.mubr.msk.bf16.mxu0 %vm658_vm0, %v3530_v10  ;;  %3436 = vmatprep.mubr.msk.bf16.mxu1 %vm658_vm0, %v3531_v11  ;;  %v3556_v36 = vld [vmem:[%s3644_s23 + $0x78] sm:$0xff]   ;;  %v3557_v37 = vld [vmem:[%s3644_s23 + $0x188] sm:$0xff]   ;;  %v3558_v38 = vld [vmem:[%s3644_s23 + $0x80] sm:$0xff]  }
  0x1d   : > { %v3559_v39 = vld [vmem:[%s3644_s23 + $0x190] sm:$0xff]   ;;  %v3560_v40 = vld [vmem:[%s3644_s23 + $0x88] sm:$0xff]   ;;  %v3561_v41 = vld [vmem:[%s3644_s23 + $0x198] sm:$0xff]  }
  0x1e   : > { %v3562_v42 = vld [vmem:[%s3644_s23 + $0x90] sm:$0xff]   ;;  %v3563_v43 = vld [vmem:[%s3644_s23 + $0x1a0] sm:$0xff]   ;;  %v3564_v44 = vld [vmem:[%s3644_s23 + $0x98] sm:$0xff]  }
  0x1f   : > { %v3565_v45 = vld [vmem:[%s3644_s23 + $0x1a8] sm:$0xff]   ;;  %v3566_v46 = vld [vmem:[%s3644_s23 + $0xa0] sm:$0xff]   ;;  %v3567_v47 = vld [vmem:[%s3644_s23 + $0x1b0] sm:$0xff]  }
  0x20   : > { %v3568_v48 = vld [vmem:[%s3644_s23 + $0xa8] sm:$0xff]   ;;  %v3569_v49 = vld [vmem:[%s3644_s23 + $0x1b8] sm:$0xff]   ;;  %v3570_v50 = vld [vmem:[%s3644_s23 + $0xb0] sm:$0xff]  }
  0x21   : > { %v3571_v51 = vld [vmem:[%s3644_s23 + $0x1c0] sm:$0xff]   ;;  %v3572_v52 = vld [vmem:[%s3644_s23 + $0xb8] sm:$0xff]   ;;  %v3573_v53 = vld [vmem:[%s3644_s23 + $0x1c8] sm:$0xff]  }
  0x22   : > { %v3574_v54 = vld [vmem:[%s3644_s23 + $0xc0] sm:$0xff]   ;;  %v3575_v55 = vld [vmem:[%s3644_s23 + $0x1d0] sm:$0xff]   ;;  %v3576_v56 = vld [vmem:[%s3644_s23 + $0xc8] sm:$0xff]  }
  0x23   : > { %3369 = vmatmul.mubr.msk.bf16.gmra.mrb[4].mxu0 %vm658_vm0, %v3532_v12  ;;  %3437 = vmatmul.mubr.msk.bf16.gmra.mrb[4].mxu1 %vm658_vm0, %v3533_v13  ;;  %v3577_v57 = vld [vmem:[%s3644_s23 + $0x1d8] sm:$0xff]   ;;  %v3578_v58 = vld [vmem:[%s3644_s23 + $0xd0] sm:$0xff]   ;;  %v3579_v59 = vld [vmem:[%s3644_s23 + $0x1e0] sm:$0xff]  }
  0x24   : > { %3372 = vmatprep.mubr.msk.bf16.mxu0 %vm658_vm0, %v3534_v14  ;;  %3440 = vmatprep.mubr.msk.bf16.mxu1 %vm658_vm0, %v3535_v15  ;;  %v3580_v60 = vld [vmem:[%s3644_s23 + $0xd8] sm:$0xff]   ;;  %v3581_v61 = vld [vmem:[%s3644_s23 + $0x1e8] sm:$0xff]   ;;  %v3582_v62 = vld [vmem:[%s3644_s23 + $0xe0] sm:$0xff]  }
  0x25   : > { %v3583_v63 = vld [vmem:[%s3644_s23 + $0x1f0] sm:$0xff]   ;;  %v3584_v0 = vld [vmem:[%s3644_s23 + $0xe8] sm:$0xff]   ;;  %v3585_v1 = vld [vmem:[%s3644_s23 + $0x1f8] sm:$0xff]  }
  0x26   : > { %v3586_v2 = vld [vmem:[%s3644_s23 + $0xf0] sm:$0xff]   ;;  %v3587_v3 = vld [vmem:[%s3644_s23 + $0x200] sm:$0xff]   ;;  %v3588_v4 = vld [vmem:[%s3644_s23 + $0xf8] sm:$0xff]  }
  0x27   : > { %v3589_v5 = vld [vmem:[%s3644_s23 + $0x208] sm:$0xff]   ;;  %v3590_v6 = vld [vmem:[%s3644_s23 + $0x100] sm:$0xff]   ;;  %v3591_v7 = vld [vmem:[%s3644_s23 + $0x210] sm:$0xff]  }
  0x28   : > { %v3592_v8 = vld [vmem:[%s3644_s23 + $0x108] sm:$0xff]   ;;  %v3593_v9 = vld [vmem:[%s3644_s23 + $0x218] sm:$0xff]  }
  0x2b   : > { %3373 = vmatmul.mubr.msk.bf16.gmra.mrb[8].mxu0 %vm658_vm0, %v3536_v16  ;;  %3441 = vmatmul.mubr.msk.bf16.gmra.mrb[8].mxu1 %vm658_vm0, %v3537_v17 }
  0x2c   : > { %3376 = vmatprep.mubr.msk.bf16.mxu0 %vm658_vm0, %v3538_v18  ;;  %3444 = vmatprep.mubr.msk.bf16.mxu1 %vm658_vm0, %v3539_v19 }
  0x33   : > { %3377 = vmatmul.mubr.msk.bf16.gmra.mrb[12].mxu0 %vm658_vm0, %v3540_v20  ;;  %3445 = vmatmul.mubr.msk.bf16.gmra.mrb[12].mxu1 %vm658_vm0, %v3541_v21 }
  0x34   : > { %3380 = vmatprep.mubr.msk.bf16.mxu0 %vm658_vm0, %v3542_v22  ;;  %3448 = vmatprep.mubr.msk.bf16.mxu1 %vm658_vm0, %v3543_v23 }
  0x3b   : > { %3381 = vmatmul.mubr.msk.bf16.gmra.mrb[16].mxu0 %vm658_vm0, %v3544_v24  ;;  %3449 = vmatmul.mubr.msk.bf16.gmra.mrb[16].mxu1 %vm658_vm0, %v3545_v25 }
  0x3c   : > { %3384 = vmatprep.mubr.msk.bf16.mxu0 %vm658_vm0, %v3546_v26  ;;  %3452 = vmatprep.mubr.msk.bf16.mxu1 %vm658_vm0, %v3547_v27 }
  0x43   : > { %3385 = vmatmul.mubr.msk.bf16.gmra.mrb[20].mxu0 %vm658_vm0, %v3548_v28  ;;  %3453 = vmatmul.mubr.msk.bf16.gmra.mrb[20].mxu1 %vm658_vm0, %v3549_v29 }
  0x44   : > { %3388 = vmatprep.mubr.msk.bf16.mxu0 %vm658_vm0, %v3550_v30  ;;  %3456 = vmatprep.mubr.msk.bf16.mxu1 %vm658_vm0, %v3551_v31 }
  0x4b   : > { %3389 = vmatmul.mubr.msk.bf16.gmra.mrb[24].mxu0 %vm658_vm0, %v3552_v32  ;;  %3457 = vmatmul.mubr.msk.bf16.gmra.mrb[24].mxu1 %vm658_vm0, %v3553_v33 }
  0x4c   : > { %3392 = vmatprep.mubr.msk.bf16.mxu0 %vm658_vm0, %v3554_v34  ;;  %3460 = vmatprep.mubr.msk.bf16.mxu1 %vm658_vm0, %v3555_v35 }
  0x53   : > { %3393 = vmatmul.mubr.msk.bf16.gmra.mrb[28].mxu0 %vm658_vm0, %v3556_v36  ;;  %3461 = vmatmul.mubr.msk.bf16.gmra.mrb[28].mxu1 %vm658_vm0, %v3557_v37 }
  0x54   : > { %3396 = vmatprep.mubr.msk.bf16.mxu0 %vm658_vm0, %v3558_v38  ;;  %3464 = vmatprep.mubr.msk.bf16.mxu1 %vm658_vm0, %v3559_v39 }
  0x5b   : > { %3397 = vmatmul.mubr.msk.bf16.gmra.mrb[32].mxu0 %vm658_vm0, %v3560_v40  ;;  %3465 = vmatmul.mubr.msk.bf16.gmra.mrb[32].mxu1 %vm658_vm0, %v3561_v41 }
  0x5c   : > { %3400 = vmatprep.mubr.msk.bf16.mxu0 %vm658_vm0, %v3562_v42  ;;  %3468 = vmatprep.mubr.msk.bf16.mxu1 %vm658_vm0, %v3563_v43 }
  0x63   : > { %3401 = vmatmul.mubr.msk.bf16.gmra.mrb[36].mxu0 %vm658_vm0, %v3564_v44  ;;  %3469 = vmatmul.mubr.msk.bf16.gmra.mrb[36].mxu1 %vm658_vm0, %v3565_v45 }
  0x64   : > { %3404 = vmatprep.mubr.msk.bf16.mxu0 %vm658_vm0, %v3566_v46  ;;  %3472 = vmatprep.mubr.msk.bf16.mxu1 %vm658_vm0, %v3567_v47 }
  0x6b   : > { %3405 = vmatmul.mubr.msk.bf16.gmra.mrb[40].mxu0 %vm658_vm0, %v3568_v48  ;;  %3473 = vmatmul.mubr.msk.bf16.gmra.mrb[40].mxu1 %vm658_vm0, %v3569_v49 }
  0x6c   : > { %3408 = vmatprep.mubr.msk.bf16.mxu0 %vm658_vm0, %v3570_v50  ;;  %3476 = vmatprep.mubr.msk.bf16.mxu1 %vm658_vm0, %v3571_v51 }
  0x73   : > { %3409 = vmatmul.mubr.msk.bf16.gmra.mrb[44].mxu0 %vm658_vm0, %v3572_v52  ;;  %3477 = vmatmul.mubr.msk.bf16.gmra.mrb[44].mxu1 %vm658_vm0, %v3573_v53 }
  0x74   : > { %3412 = vmatprep.mubr.msk.bf16.mxu0 %vm658_vm0, %v3574_v54  ;;  %3480 = vmatprep.mubr.msk.bf16.mxu1 %vm658_vm0, %v3575_v55 }
  0x7b   : > { %3413 = vmatmul.mubr.msk.bf16.gmra.mrb[48].mxu0 %vm658_vm0, %v3576_v56  ;;  %3481 = vmatmul.mubr.msk.bf16.gmra.mrb[48].mxu1 %vm658_vm0, %v3577_v57 }
  0x7c   : > { %3416 = vmatprep.mubr.msk.bf16.mxu0 %vm658_vm0, %v3578_v58  ;;  %3484 = vmatprep.mubr.msk.bf16.mxu1 %vm658_vm0, %v3579_v59 }
  0x83   : > { %3417 = vmatmul.mubr.msk.bf16.gmra.mrb[52].mxu0 %vm658_vm0, %v3580_v60  ;;  %3485 = vmatmul.mubr.msk.bf16.gmra.mrb[52].mxu1 %vm658_vm0, %v3581_v61 }
  0x84   : > { %3420 = vmatprep.mubr.msk.bf16.mxu0 %vm658_vm0, %v3582_v62  ;;  %3488 = vmatprep.mubr.msk.bf16.mxu1 %vm658_vm0, %v3583_v63 }
  0x8b   : > { %3421 = vmatmul.mubr.msk.bf16.gmra.mrb[56].mxu0 %vm658_vm0, %v3584_v0  ;;  %3489 = vmatmul.mubr.msk.bf16.gmra.mrb[56].mxu1 %vm658_vm0, %v3585_v1 }
  0x8c   : > { %3424 = vmatprep.mubr.msk.bf16.mxu0 %vm658_vm0, %v3586_v2  ;;  %3492 = vmatprep.mubr.msk.bf16.mxu1 %vm658_vm0, %v3587_v3 }
  0x93   : > { %3425 = vmatmul.mubr.msk.bf16.gmra.mrb[60].mxu0 %vm658_vm0, %v3588_v4  ;;  %3493 = vmatmul.mubr.msk.bf16.gmra.mrb[60].mxu1 %vm658_vm0, %v3589_v5 }
  0x94   : > { %3428 = vmatprep.mubr.msk.bf16.mxu0 %vm658_vm0, %v3590_v6  ;;  %3496 = vmatprep.mubr.msk.bf16.mxu1 %vm658_vm0, %v3591_v7 }
  0x9b   : > { %3429 = vmatmul.mubr.msk.bf16.gmra.mrb[64].mxu0 %vm658_vm0, %v3592_v8  ;;  %3497 = vmatmul.mubr.msk.bf16.gmra.mrb[64].mxu1 %vm658_vm0, %v3593_v9 }
  0xee   : > { %v3366_v10 = vpop.f32.mrb[0].mxu0  ;;  %v3434_v11 = vpop.f32.mrb[0].mxu1 }
  0xef   : > { %v1446_v12 = vmul.f32 0.2, %v3366_v10  ;;  %v1514_v13 = vmul.f32 0.2, %v3434_v11  ;;  %v901_v14 = vpop.f32.mrb[1].mxu0  ;;  %v1173_v15 = vpop.f32.mrb[1].mxu1 }
  0xf0   : > { %v1444_v16 = vmul.f32 0.2, %v901_v14  ;;  %v1512_v17 = vmul.f32 0.2, %v1173_v15  ;;  %v3367_v18 = vpop.f32.mrb[2].mxu0  ;;  %v3435_v19 = vpop.f32.mrb[2].mxu1 }
  0xf1   : > { %v1447_v20 = vmul.f32 0.2, %v3367_v18  ;;  %v1515_v21 = vmul.f32 0.2, %v3435_v19  ;;  %v904_v22 = vpop.f32.mrb[3].mxu0  ;;  %v1176_v23 = vpop.f32.mrb[3].mxu1  ;;  %v1582_v26 = vmax.f32 %v3366_v10, %v1446_v12  ;;  %v1650_v27 = vmax.f32 %v3434_v11, %v1514_v13 }
  0xf2   : > { %v1445_v24 = vmul.f32 0.2, %v904_v22  ;;  %v1513_v25 = vmul.f32 0.2, %v1176_v23  ;;  %v1580_v30 = vmax.f32 %v901_v14, %v1444_v16  ;;  %v1648_v31 = vmax.f32 %v1173_v15, %v1512_v17 }
  0xf3   : > { %v1583_v28 = vmax.f32 %v3367_v18, %v1447_v20  ;;  %v1651_v29 = vmax.f32 %v3435_v19, %v1515_v21 }
  0xf4   : > { %v1581_v32 = vmax.f32 %v904_v22, %v1445_v24  ;;  %v1649_v33 = vmax.f32 %v1176_v23, %v1513_v25 }
  0xf5   : > { %v2882_v34 = vpack.c.bf16 %v1583_v28, %v1582_v26  ;;  %v3052_v35 = vpack.c.bf16 %v1651_v29, %v1650_v27 }
  0xf6   : > { %v2877_v36 = vpack.c.bf16 %v1581_v32, %v1580_v30  ;;  %v3047_v37 = vpack.c.bf16 %v1649_v33, %v1648_v31  ;;  %v3370_v38 = vpop.f32.mrb[4].mxu0  ;;  %v3438_v39 = vpop.f32.mrb[4].mxu1 }
  0xf7   : > { %3214 = vst [vmem:[%s3789_s30 + $0x8] sm:$0xff] %v2882_v34   ;;  %3248 = vst [vmem:[%s3789_s30 + $0x118] sm:$0xff] %v3052_v35   ;;  %v1450_v40 = vmul.f32 0.2, %v3370_v38  ;;  %v1518_v41 = vmul.f32 0.2, %v3438_v39 }
  0xf8   : > { %v917_v42 = vpop.f32.mrb[5].mxu0  ;;  %v1189_v43 = vpop.f32.mrb[5].mxu1  ;;  %2878 = vst [vmem:[%s3789_s30] sm:$0xff] %v2877_v36   ;;  %3247 = vst [vmem:[%s3789_s30 + $0x110] sm:$0xff] %v3047_v37  }
  0xf9   : > { %v1448_v44 = vmul.f32 0.2, %v917_v42  ;;  %v1516_v45 = vmul.f32 0.2, %v1189_v43  ;;  %v3371_v46 = vpop.f32.mrb[6].mxu0  ;;  %v3439_v47 = vpop.f32.mrb[6].mxu1  ;;  %v1586_v54 = vmax.f32 %v3370_v38, %v1450_v40  ;;  %v1654_v55 = vmax.f32 %v3438_v39, %v1518_v41 }
  0xfa   : > { %v1451_v48 = vmul.f32 0.2, %v3371_v46  ;;  %v1519_v49 = vmul.f32 0.2, %v3439_v47  ;;  %v920_v50 = vpop.f32.mrb[7].mxu0  ;;  %v1192_v51 = vpop.f32.mrb[7].mxu1 }
  0xfb   : > { %v1449_v52 = vmul.f32 0.2, %v920_v50  ;;  %v1517_v53 = vmul.f32 0.2, %v1192_v51  ;;  %v1584_v58 = vmax.f32 %v917_v42, %v1448_v44  ;;  %v1652_v59 = vmax.f32 %v1189_v43, %v1516_v45 }
  0xfc   : > { %v1587_v56 = vmax.f32 %v3371_v46, %v1451_v48  ;;  %v1655_v57 = vmax.f32 %v3439_v47, %v1519_v49 }
  0xfd   : > { %v1585_v60 = vmax.f32 %v920_v50, %v1449_v52  ;;  %v1653_v61 = vmax.f32 %v1192_v51, %v1517_v53 }
  0xfe   : > { %v2892_v62 = vpack.c.bf16 %v1587_v56, %v1586_v54  ;;  %v3062_v63 = vpack.c.bf16 %v1655_v57, %v1654_v55  ;;  %v3374_v2 = vpop.f32.mrb[8].mxu0  ;;  %v3442_v3 = vpop.f32.mrb[8].mxu1 }
  0xff   : > { %v2887_v0 = vpack.c.bf16 %v1585_v60, %v1584_v58  ;;  %v3057_v1 = vpack.c.bf16 %v1653_v61, %v1652_v59  ;;  %v1454_v4 = vmul.f32 0.2, %v3374_v2  ;;  %v1522_v5 = vmul.f32 0.2, %v3442_v3  ;;  %v933_v6 = vpop.f32.mrb[9].mxu0  ;;  %v1205_v7 = vpop.f32.mrb[9].mxu1 }
 0x100   : > { %3216 = vst [vmem:[%s3789_s30 + $0x18] sm:$0xff] %v2892_v62   ;;  %3250 = vst [vmem:[%s3789_s30 + $0x128] sm:$0xff] %v3062_v63   ;;  %v1452_v8 = vmul.f32 0.2, %v933_v6  ;;  %v1520_v9 = vmul.f32 0.2, %v1205_v7 }
 0x101   : > { %3215 = vst [vmem:[%s3789_s30 + $0x10] sm:$0xff] %v2887_v0   ;;  %3249 = vst [vmem:[%s3789_s30 + $0x120] sm:$0xff] %v3057_v1   ;;  %v3375_v10 = vpop.f32.mrb[10].mxu0  ;;  %v3443_v11 = vpop.f32.mrb[10].mxu1  ;;  %v1590_v18 = vmax.f32 %v3374_v2, %v1454_v4  ;;  %v1658_v19 = vmax.f32 %v3442_v3, %v1522_v5 }
 0x102   : > { %v1455_v12 = vmul.f32 0.2, %v3375_v10  ;;  %v1523_v13 = vmul.f32 0.2, %v3443_v11  ;;  %v936_v14 = vpop.f32.mrb[11].mxu0  ;;  %v1208_v15 = vpop.f32.mrb[11].mxu1  ;;  %v1588_v22 = vmax.f32 %v933_v6, %v1452_v8  ;;  %v1656_v23 = vmax.f32 %v1205_v7, %v1520_v9 }
 0x103   : > { %v1453_v16 = vmul.f32 0.2, %v936_v14  ;;  %v1521_v17 = vmul.f32 0.2, %v1208_v15 }
 0x104   : > { %v1591_v20 = vmax.f32 %v3375_v10, %v1455_v12  ;;  %v1659_v21 = vmax.f32 %v3443_v11, %v1523_v13 }
 0x105   : > { %v1589_v24 = vmax.f32 %v936_v14, %v1453_v16  ;;  %v1657_v25 = vmax.f32 %v1208_v15, %v1521_v17 }
 0x106   : > { %v2902_v26 = vpack.c.bf16 %v1591_v20, %v1590_v18  ;;  %v3072_v27 = vpack.c.bf16 %v1659_v21, %v1658_v19  ;;  %v3378_v30 = vpop.f32.mrb[12].mxu0  ;;  %v3446_v31 = vpop.f32.mrb[12].mxu1 }
 0x107   : > { %v2897_v28 = vpack.c.bf16 %v1589_v24, %v1588_v22  ;;  %v3067_v29 = vpack.c.bf16 %v1657_v25, %v1656_v23  ;;  %v1458_v32 = vmul.f32 0.2, %v3378_v30  ;;  %v1526_v33 = vmul.f32 0.2, %v3446_v31  ;;  %v949_v34 = vpop.f32.mrb[13].mxu0  ;;  %v1221_v35 = vpop.f32.mrb[13].mxu1 }
 0x108   : > { %3218 = vst [vmem:[%s3789_s30 + $0x28] sm:$0xff] %v2902_v26   ;;  %3252 = vst [vmem:[%s3789_s30 + $0x138] sm:$0xff] %v3072_v27   ;;  %v1456_v36 = vmul.f32 0.2, %v949_v34  ;;  %v1524_v37 = vmul.f32 0.2, %v1221_v35 }
 0x109   : > { %3217 = vst [vmem:[%s3789_s30 + $0x20] sm:$0xff] %v2897_v28   ;;  %3251 = vst [vmem:[%s3789_s30 + $0x130] sm:$0xff] %v3067_v29   ;;  %v3379_v38 = vpop.f32.mrb[14].mxu0  ;;  %v3447_v39 = vpop.f32.mrb[14].mxu1  ;;  %v1594_v46 = vmax.f32 %v3378_v30, %v1458_v32  ;;  %v1662_v47 = vmax.f32 %v3446_v31, %v1526_v33 }
 0x10a   : > { %v1459_v40 = vmul.f32 0.2, %v3379_v38  ;;  %v1527_v41 = vmul.f32 0.2, %v3447_v39  ;;  %v952_v42 = vpop.f32.mrb[15].mxu0  ;;  %v1224_v43 = vpop.f32.mrb[15].mxu1  ;;  %v1592_v50 = vmax.f32 %v949_v34, %v1456_v36  ;;  %v1660_v51 = vmax.f32 %v1221_v35, %v1524_v37 }
 0x10b   : > { %v1457_v44 = vmul.f32 0.2, %v952_v42  ;;  %v1525_v45 = vmul.f32 0.2, %v1224_v43 }
 0x10c   : > { %v1595_v48 = vmax.f32 %v3379_v38, %v1459_v40  ;;  %v1663_v49 = vmax.f32 %v3447_v39, %v1527_v41 }
 0x10d   : > { %v1593_v52 = vmax.f32 %v952_v42, %v1457_v44  ;;  %v1661_v53 = vmax.f32 %v1224_v43, %v1525_v45 }
 0x10e   : > { %v2912_v54 = vpack.c.bf16 %v1595_v48, %v1594_v46  ;;  %v3082_v55 = vpack.c.bf16 %v1663_v49, %v1662_v47  ;;  %v3382_v58 = vpop.f32.mrb[16].mxu0  ;;  %v3450_v59 = vpop.f32.mrb[16].mxu1 }
 0x10f   : > { %v2907_v56 = vpack.c.bf16 %v1593_v52, %v1592_v50  ;;  %v3077_v57 = vpack.c.bf16 %v1661_v53, %v1660_v51  ;;  %v1462_v60 = vmul.f32 0.2, %v3382_v58  ;;  %v1530_v61 = vmul.f32 0.2, %v3450_v59  ;;  %v965_v62 = vpop.f32.mrb[17].mxu0  ;;  %v1237_v63 = vpop.f32.mrb[17].mxu1 }
 0x110   : > { %3220 = vst [vmem:[%s3789_s30 + $0x38] sm:$0xff] %v2912_v54   ;;  %3254 = vst [vmem:[%s3789_s30 + $0x148] sm:$0xff] %v3082_v55   ;;  %v1460_v0 = vmul.f32 0.2, %v965_v62  ;;  %v1528_v1 = vmul.f32 0.2, %v1237_v63 }
 0x111   : > { %3219 = vst [vmem:[%s3789_s30 + $0x30] sm:$0xff] %v2907_v56   ;;  %3253 = vst [vmem:[%s3789_s30 + $0x140] sm:$0xff] %v3077_v57   ;;  %v3383_v2 = vpop.f32.mrb[18].mxu0  ;;  %v3451_v3 = vpop.f32.mrb[18].mxu1  ;;  %v1598_v10 = vmax.f32 %v3382_v58, %v1462_v60  ;;  %v1666_v11 = vmax.f32 %v3450_v59, %v1530_v61 }
 0x112   : > { %v1463_v4 = vmul.f32 0.2, %v3383_v2  ;;  %v1531_v5 = vmul.f32 0.2, %v3451_v3  ;;  %v968_v6 = vpop.f32.mrb[19].mxu0  ;;  %v1240_v7 = vpop.f32.mrb[19].mxu1  ;;  %v1596_v14 = vmax.f32 %v965_v62, %v1460_v0  ;;  %v1664_v15 = vmax.f32 %v1237_v63, %v1528_v1 }
 0x113   : > { %v1461_v8 = vmul.f32 0.2, %v968_v6  ;;  %v1529_v9 = vmul.f32 0.2, %v1240_v7 }
 0x114   : > { %v1599_v12 = vmax.f32 %v3383_v2, %v1463_v4  ;;  %v1667_v13 = vmax.f32 %v3451_v3, %v1531_v5 }
 0x115   : > { %v1597_v16 = vmax.f32 %v968_v6, %v1461_v8  ;;  %v1665_v17 = vmax.f32 %v1240_v7, %v1529_v9 }
 0x116   : > { %v2922_v18 = vpack.c.bf16 %v1599_v12, %v1598_v10  ;;  %v3092_v19 = vpack.c.bf16 %v1667_v13, %v1666_v11  ;;  %v3386_v22 = vpop.f32.mrb[20].mxu0  ;;  %v3454_v23 = vpop.f32.mrb[20].mxu1 }
 0x117   : > { %v2917_v20 = vpack.c.bf16 %v1597_v16, %v1596_v14  ;;  %v3087_v21 = vpack.c.bf16 %v1665_v17, %v1664_v15  ;;  %v1466_v24 = vmul.f32 0.2, %v3386_v22  ;;  %v1534_v25 = vmul.f32 0.2, %v3454_v23  ;;  %v981_v26 = vpop.f32.mrb[21].mxu0  ;;  %v1253_v27 = vpop.f32.mrb[21].mxu1 }
 0x118   : > { %3222 = vst [vmem:[%s3789_s30 + $0x48] sm:$0xff] %v2922_v18   ;;  %3256 = vst [vmem:[%s3789_s30 + $0x158] sm:$0xff] %v3092_v19   ;;  %v1464_v28 = vmul.f32 0.2, %v981_v26  ;;  %v1532_v29 = vmul.f32 0.2, %v1253_v27 }
 0x119   : > { %3221 = vst [vmem:[%s3789_s30 + $0x40] sm:$0xff] %v2917_v20   ;;  %3255 = vst [vmem:[%s3789_s30 + $0x150] sm:$0xff] %v3087_v21   ;;  %v3387_v30 = vpop.f32.mrb[22].mxu0  ;;  %v3455_v31 = vpop.f32.mrb[22].mxu1  ;;  %v1602_v38 = vmax.f32 %v3386_v22, %v1466_v24  ;;  %v1670_v39 = vmax.f32 %v3454_v23, %v1534_v25 }
 0x11a   : > { %v1467_v32 = vmul.f32 0.2, %v3387_v30  ;;  %v1535_v33 = vmul.f32 0.2, %v3455_v31  ;;  %v984_v34 = vpop.f32.mrb[23].mxu0  ;;  %v1256_v35 = vpop.f32.mrb[23].mxu1  ;;  %v1600_v42 = vmax.f32 %v981_v26, %v1464_v28  ;;  %v1668_v43 = vmax.f32 %v1253_v27, %v1532_v29 }
 0x11b   : > { %v1465_v36 = vmul.f32 0.2, %v984_v34  ;;  %v1533_v37 = vmul.f32 0.2, %v1256_v35 }
 0x11c   : > { %v1603_v40 = vmax.f32 %v3387_v30, %v1467_v32  ;;  %v1671_v41 = vmax.f32 %v3455_v31, %v1535_v33 }
 0x11d   : > { %v1601_v44 = vmax.f32 %v984_v34, %v1465_v36  ;;  %v1669_v45 = vmax.f32 %v1256_v35, %v1533_v37 }
 0x11e   : > { %v2932_v46 = vpack.c.bf16 %v1603_v40, %v1602_v38  ;;  %v3102_v47 = vpack.c.bf16 %v1671_v41, %v1670_v39  ;;  %v3390_v50 = vpop.f32.mrb[24].mxu0  ;;  %v3458_v51 = vpop.f32.mrb[24].mxu1 }
 0x11f   : > { %v2927_v48 = vpack.c.bf16 %v1601_v44, %v1600_v42  ;;  %v3097_v49 = vpack.c.bf16 %v1669_v45, %v1668_v43  ;;  %v1470_v52 = vmul.f32 0.2, %v3390_v50  ;;  %v1538_v53 = vmul.f32 0.2, %v3458_v51  ;;  %v997_v54 = vpop.f32.mrb[25].mxu0  ;;  %v1269_v55 = vpop.f32.mrb[25].mxu1 }
 0x120   : > { %3224 = vst [vmem:[%s3789_s30 + $0x58] sm:$0xff] %v2932_v46   ;;  %3258 = vst [vmem:[%s3789_s30 + $0x168] sm:$0xff] %v3102_v47   ;;  %v1468_v56 = vmul.f32 0.2, %v997_v54  ;;  %v1536_v57 = vmul.f32 0.2, %v1269_v55 }
 0x121   : > { %3223 = vst [vmem:[%s3789_s30 + $0x50] sm:$0xff] %v2927_v48   ;;  %3257 = vst [vmem:[%s3789_s30 + $0x160] sm:$0xff] %v3097_v49   ;;  %v3391_v58 = vpop.f32.mrb[26].mxu0  ;;  %v3459_v59 = vpop.f32.mrb[26].mxu1  ;;  %v1606_v2 = vmax.f32 %v3390_v50, %v1470_v52  ;;  %v1674_v3 = vmax.f32 %v3458_v51, %v1538_v53 }
 0x122   : > { %v1471_v60 = vmul.f32 0.2, %v3391_v58  ;;  %v1539_v61 = vmul.f32 0.2, %v3459_v59  ;;  %v1000_v62 = vpop.f32.mrb[27].mxu0  ;;  %v1272_v63 = vpop.f32.mrb[27].mxu1  ;;  %v1604_v6 = vmax.f32 %v997_v54, %v1468_v56  ;;  %v1672_v7 = vmax.f32 %v1269_v55, %v1536_v57 }
 0x123   : > { %v1469_v0 = vmul.f32 0.2, %v1000_v62  ;;  %v1537_v1 = vmul.f32 0.2, %v1272_v63 }
 0x124   : > { %v1607_v4 = vmax.f32 %v3391_v58, %v1471_v60  ;;  %v1675_v5 = vmax.f32 %v3459_v59, %v1539_v61 }
 0x125   : > { %v1605_v8 = vmax.f32 %v1000_v62, %v1469_v0  ;;  %v1673_v9 = vmax.f32 %v1272_v63, %v1537_v1 }
 0x126   : > { %v2942_v10 = vpack.c.bf16 %v1607_v4, %v1606_v2  ;;  %v3112_v11 = vpack.c.bf16 %v1675_v5, %v1674_v3  ;;  %v3394_v14 = vpop.f32.mrb[28].mxu0  ;;  %v3462_v15 = vpop.f32.mrb[28].mxu1 }
 0x127   : > { %v2937_v12 = vpack.c.bf16 %v1605_v8, %v1604_v6  ;;  %v3107_v13 = vpack.c.bf16 %v1673_v9, %v1672_v7  ;;  %v1474_v16 = vmul.f32 0.2, %v3394_v14  ;;  %v1542_v17 = vmul.f32 0.2, %v3462_v15  ;;  %v1013_v18 = vpop.f32.mrb[29].mxu0  ;;  %v1285_v19 = vpop.f32.mrb[29].mxu1 }
 0x128   : > { %3226 = vst [vmem:[%s3789_s30 + $0x68] sm:$0xff] %v2942_v10   ;;  %3260 = vst [vmem:[%s3789_s30 + $0x178] sm:$0xff] %v3112_v11   ;;  %v1472_v20 = vmul.f32 0.2, %v1013_v18  ;;  %v1540_v21 = vmul.f32 0.2, %v1285_v19 }
 0x129   : > { %3225 = vst [vmem:[%s3789_s30 + $0x60] sm:$0xff] %v2937_v12   ;;  %3259 = vst [vmem:[%s3789_s30 + $0x170] sm:$0xff] %v3107_v13   ;;  %v3395_v22 = vpop.f32.mrb[30].mxu0  ;;  %v3463_v23 = vpop.f32.mrb[30].mxu1  ;;  %v1610_v30 = vmax.f32 %v3394_v14, %v1474_v16  ;;  %v1678_v31 = vmax.f32 %v3462_v15, %v1542_v17 }
 0x12a   : > { %v1475_v24 = vmul.f32 0.2, %v3395_v22  ;;  %v1543_v25 = vmul.f32 0.2, %v3463_v23  ;;  %v1016_v26 = vpop.f32.mrb[31].mxu0  ;;  %v1288_v27 = vpop.f32.mrb[31].mxu1  ;;  %v1608_v34 = vmax.f32 %v1013_v18, %v1472_v20  ;;  %v1676_v35 = vmax.f32 %v1285_v19, %v1540_v21 }
 0x12b   : > { %v1473_v28 = vmul.f32 0.2, %v1016_v26  ;;  %v1541_v29 = vmul.f32 0.2, %v1288_v27 }
 0x12c   : > { %v1611_v32 = vmax.f32 %v3395_v22, %v1475_v24  ;;  %v1679_v33 = vmax.f32 %v3463_v23, %v1543_v25 }
 0x12d   : > { %v1609_v36 = vmax.f32 %v1016_v26, %v1473_v28  ;;  %v1677_v37 = vmax.f32 %v1288_v27, %v1541_v29 }
 0x12e   : > { %v2952_v38 = vpack.c.bf16 %v1611_v32, %v1610_v30  ;;  %v3122_v39 = vpack.c.bf16 %v1679_v33, %v1678_v31  ;;  %v3398_v42 = vpop.f32.mrb[32].mxu0  ;;  %v3466_v43 = vpop.f32.mrb[32].mxu1 }
 0x12f   : > { %v2947_v40 = vpack.c.bf16 %v1609_v36, %v1608_v34  ;;  %v3117_v41 = vpack.c.bf16 %v1677_v37, %v1676_v35  ;;  %v1478_v44 = vmul.f32 0.2, %v3398_v42  ;;  %v1546_v45 = vmul.f32 0.2, %v3466_v43  ;;  %v1029_v46 = vpop.f32.mrb[33].mxu0  ;;  %v1301_v47 = vpop.f32.mrb[33].mxu1 }
 0x130   : > { %3228 = vst [vmem:[%s3789_s30 + $0x78] sm:$0xff] %v2952_v38   ;;  %3262 = vst [vmem:[%s3789_s30 + $0x188] sm:$0xff] %v3122_v39   ;;  %v1476_v48 = vmul.f32 0.2, %v1029_v46  ;;  %v1544_v49 = vmul.f32 0.2, %v1301_v47 }
 0x131   : > { %3227 = vst [vmem:[%s3789_s30 + $0x70] sm:$0xff] %v2947_v40   ;;  %3261 = vst [vmem:[%s3789_s30 + $0x180] sm:$0xff] %v3117_v41   ;;  %v3399_v50 = vpop.f32.mrb[34].mxu0  ;;  %v3467_v51 = vpop.f32.mrb[34].mxu1  ;;  %v1614_v58 = vmax.f32 %v3398_v42, %v1478_v44  ;;  %v1682_v59 = vmax.f32 %v3466_v43, %v1546_v45 }
 0x132   : > { %v1479_v52 = vmul.f32 0.2, %v3399_v50  ;;  %v1547_v53 = vmul.f32 0.2, %v3467_v51  ;;  %v1032_v54 = vpop.f32.mrb[35].mxu0  ;;  %v1304_v55 = vpop.f32.mrb[35].mxu1  ;;  %v1612_v62 = vmax.f32 %v1029_v46, %v1476_v48  ;;  %v1680_v63 = vmax.f32 %v1301_v47, %v1544_v49 }
 0x133   : > { %v1477_v56 = vmul.f32 0.2, %v1032_v54  ;;  %v1545_v57 = vmul.f32 0.2, %v1304_v55 }
 0x134   : > { %v1615_v60 = vmax.f32 %v3399_v50, %v1479_v52  ;;  %v1683_v61 = vmax.f32 %v3467_v51, %v1547_v53 }
 0x135   : > { %v1613_v0 = vmax.f32 %v1032_v54, %v1477_v56  ;;  %v1681_v1 = vmax.f32 %v1304_v55, %v1545_v57 }
 0x136   : > { %v2962_v2 = vpack.c.bf16 %v1615_v60, %v1614_v58  ;;  %v3132_v3 = vpack.c.bf16 %v1683_v61, %v1682_v59  ;;  %v3402_v6 = vpop.f32.mrb[36].mxu0  ;;  %v3470_v7 = vpop.f32.mrb[36].mxu1 }
 0x137   : > { %v2957_v4 = vpack.c.bf16 %v1613_v0, %v1612_v62  ;;  %v3127_v5 = vpack.c.bf16 %v1681_v1, %v1680_v63  ;;  %v1482_v8 = vmul.f32 0.2, %v3402_v6  ;;  %v1550_v9 = vmul.f32 0.2, %v3470_v7  ;;  %v1045_v10 = vpop.f32.mrb[37].mxu0  ;;  %v1317_v11 = vpop.f32.mrb[37].mxu1 }
 0x138   : > { %3230 = vst [vmem:[%s3789_s30 + $0x88] sm:$0xff] %v2962_v2   ;;  %3264 = vst [vmem:[%s3789_s30 + $0x198] sm:$0xff] %v3132_v3   ;;  %v1480_v12 = vmul.f32 0.2, %v1045_v10  ;;  %v1548_v13 = vmul.f32 0.2, %v1317_v11 }
 0x139   : > { %3229 = vst [vmem:[%s3789_s30 + $0x80] sm:$0xff] %v2957_v4   ;;  %3263 = vst [vmem:[%s3789_s30 + $0x190] sm:$0xff] %v3127_v5   ;;  %v3403_v14 = vpop.f32.mrb[38].mxu0  ;;  %v3471_v15 = vpop.f32.mrb[38].mxu1  ;;  %v1618_v22 = vmax.f32 %v3402_v6, %v1482_v8  ;;  %v1686_v23 = vmax.f32 %v3470_v7, %v1550_v9 }
 0x13a   : > { %v1483_v16 = vmul.f32 0.2, %v3403_v14  ;;  %v1551_v17 = vmul.f32 0.2, %v3471_v15  ;;  %v1048_v18 = vpop.f32.mrb[39].mxu0  ;;  %v1320_v19 = vpop.f32.mrb[39].mxu1  ;;  %v1616_v26 = vmax.f32 %v1045_v10, %v1480_v12  ;;  %v1684_v27 = vmax.f32 %v1317_v11, %v1548_v13 }
 0x13b   : > { %v1481_v20 = vmul.f32 0.2, %v1048_v18  ;;  %v1549_v21 = vmul.f32 0.2, %v1320_v19 }
 0x13c   : > { %v1619_v24 = vmax.f32 %v3403_v14, %v1483_v16  ;;  %v1687_v25 = vmax.f32 %v3471_v15, %v1551_v17 }
 0x13d   : > { %v1617_v28 = vmax.f32 %v1048_v18, %v1481_v20  ;;  %v1685_v29 = vmax.f32 %v1320_v19, %v1549_v21 }
 0x13e   : > { %v2972_v30 = vpack.c.bf16 %v1619_v24, %v1618_v22  ;;  %v3142_v31 = vpack.c.bf16 %v1687_v25, %v1686_v23  ;;  %v3406_v34 = vpop.f32.mrb[40].mxu0  ;;  %v3474_v35 = vpop.f32.mrb[40].mxu1 }
 0x13f   : > { %v2967_v32 = vpack.c.bf16 %v1617_v28, %v1616_v26  ;;  %v3137_v33 = vpack.c.bf16 %v1685_v29, %v1684_v27  ;;  %v1486_v36 = vmul.f32 0.2, %v3406_v34  ;;  %v1554_v37 = vmul.f32 0.2, %v3474_v35  ;;  %v1061_v38 = vpop.f32.mrb[41].mxu0  ;;  %v1333_v39 = vpop.f32.mrb[41].mxu1 }
 0x140   : > { %3232 = vst [vmem:[%s3789_s30 + $0x98] sm:$0xff] %v2972_v30   ;;  %3266 = vst [vmem:[%s3789_s30 + $0x1a8] sm:$0xff] %v3142_v31   ;;  %v1484_v40 = vmul.f32 0.2, %v1061_v38  ;;  %v1552_v41 = vmul.f32 0.2, %v1333_v39 }
 0x141   : > { %3231 = vst [vmem:[%s3789_s30 + $0x90] sm:$0xff] %v2967_v32   ;;  %3265 = vst [vmem:[%s3789_s30 + $0x1a0] sm:$0xff] %v3137_v33   ;;  %v3407_v42 = vpop.f32.mrb[42].mxu0  ;;  %v3475_v43 = vpop.f32.mrb[42].mxu1  ;;  %v1622_v50 = vmax.f32 %v3406_v34, %v1486_v36  ;;  %v1690_v51 = vmax.f32 %v3474_v35, %v1554_v37 }
 0x142   : > { %v1487_v44 = vmul.f32 0.2, %v3407_v42  ;;  %v1555_v45 = vmul.f32 0.2, %v3475_v43  ;;  %v1064_v46 = vpop.f32.mrb[43].mxu0  ;;  %v1336_v47 = vpop.f32.mrb[43].mxu1  ;;  %v1620_v54 = vmax.f32 %v1061_v38, %v1484_v40  ;;  %v1688_v55 = vmax.f32 %v1333_v39, %v1552_v41 }
 0x143   : > { %v1485_v48 = vmul.f32 0.2, %v1064_v46  ;;  %v1553_v49 = vmul.f32 0.2, %v1336_v47 }
 0x144   : > { %v1623_v52 = vmax.f32 %v3407_v42, %v1487_v44  ;;  %v1691_v53 = vmax.f32 %v3475_v43, %v1555_v45 }
 0x145   : > { %v1621_v56 = vmax.f32 %v1064_v46, %v1485_v48  ;;  %v1689_v57 = vmax.f32 %v1336_v47, %v1553_v49 }
 0x146   : > { %v2982_v58 = vpack.c.bf16 %v1623_v52, %v1622_v50  ;;  %v3152_v59 = vpack.c.bf16 %v1691_v53, %v1690_v51  ;;  %v3410_v62 = vpop.f32.mrb[44].mxu0  ;;  %v3478_v63 = vpop.f32.mrb[44].mxu1 }
 0x147   : > { %v2977_v60 = vpack.c.bf16 %v1621_v56, %v1620_v54  ;;  %v3147_v61 = vpack.c.bf16 %v1689_v57, %v1688_v55  ;;  %v1490_v0 = vmul.f32 0.2, %v3410_v62  ;;  %v1558_v1 = vmul.f32 0.2, %v3478_v63  ;;  %v1077_v2 = vpop.f32.mrb[45].mxu0  ;;  %v1349_v3 = vpop.f32.mrb[45].mxu1 }
 0x148   : > { %3234 = vst [vmem:[%s3789_s30 + $0xa8] sm:$0xff] %v2982_v58   ;;  %3268 = vst [vmem:[%s3789_s30 + $0x1b8] sm:$0xff] %v3152_v59   ;;  %v1488_v4 = vmul.f32 0.2, %v1077_v2  ;;  %v1556_v5 = vmul.f32 0.2, %v1349_v3 }
 0x149   : > { %3233 = vst [vmem:[%s3789_s30 + $0xa0] sm:$0xff] %v2977_v60   ;;  %3267 = vst [vmem:[%s3789_s30 + $0x1b0] sm:$0xff] %v3147_v61   ;;  %v3411_v6 = vpop.f32.mrb[46].mxu0  ;;  %v3479_v7 = vpop.f32.mrb[46].mxu1  ;;  %v1626_v14 = vmax.f32 %v3410_v62, %v1490_v0  ;;  %v1694_v15 = vmax.f32 %v3478_v63, %v1558_v1 }
 0x14a   : > { %v1491_v8 = vmul.f32 0.2, %v3411_v6  ;;  %v1559_v9 = vmul.f32 0.2, %v3479_v7  ;;  %v1080_v10 = vpop.f32.mrb[47].mxu0  ;;  %v1352_v11 = vpop.f32.mrb[47].mxu1  ;;  %v1624_v18 = vmax.f32 %v1077_v2, %v1488_v4  ;;  %v1692_v19 = vmax.f32 %v1349_v3, %v1556_v5 }
 0x14b   : > { %v1489_v12 = vmul.f32 0.2, %v1080_v10  ;;  %v1557_v13 = vmul.f32 0.2, %v1352_v11 }
 0x14c   : > { %v1627_v16 = vmax.f32 %v3411_v6, %v1491_v8  ;;  %v1695_v17 = vmax.f32 %v3479_v7, %v1559_v9 }
 0x14d   : > { %v1625_v20 = vmax.f32 %v1080_v10, %v1489_v12  ;;  %v1693_v21 = vmax.f32 %v1352_v11, %v1557_v13 }
 0x14e   : > { %v2992_v22 = vpack.c.bf16 %v1627_v16, %v1626_v14  ;;  %v3162_v23 = vpack.c.bf16 %v1695_v17, %v1694_v15  ;;  %v3414_v26 = vpop.f32.mrb[48].mxu0  ;;  %v3482_v27 = vpop.f32.mrb[48].mxu1 }
 0x14f   : > { %v2987_v24 = vpack.c.bf16 %v1625_v20, %v1624_v18  ;;  %v3157_v25 = vpack.c.bf16 %v1693_v21, %v1692_v19  ;;  %v1494_v28 = vmul.f32 0.2, %v3414_v26  ;;  %v1562_v29 = vmul.f32 0.2, %v3482_v27  ;;  %v1093_v30 = vpop.f32.mrb[49].mxu0  ;;  %v1365_v31 = vpop.f32.mrb[49].mxu1 }
 0x150   : > { %3236 = vst [vmem:[%s3789_s30 + $0xb8] sm:$0xff] %v2992_v22   ;;  %3270 = vst [vmem:[%s3789_s30 + $0x1c8] sm:$0xff] %v3162_v23   ;;  %v1492_v32 = vmul.f32 0.2, %v1093_v30  ;;  %v1560_v33 = vmul.f32 0.2, %v1365_v31 }
 0x151   : > { %3235 = vst [vmem:[%s3789_s30 + $0xb0] sm:$0xff] %v2987_v24   ;;  %3269 = vst [vmem:[%s3789_s30 + $0x1c0] sm:$0xff] %v3157_v25   ;;  %v3415_v34 = vpop.f32.mrb[50].mxu0  ;;  %v3483_v35 = vpop.f32.mrb[50].mxu1  ;;  %v1630_v42 = vmax.f32 %v3414_v26, %v1494_v28  ;;  %v1698_v43 = vmax.f32 %v3482_v27, %v1562_v29 }
 0x152   : > { %v1495_v36 = vmul.f32 0.2, %v3415_v34  ;;  %v1563_v37 = vmul.f32 0.2, %v3483_v35  ;;  %v1096_v38 = vpop.f32.mrb[51].mxu0  ;;  %v1368_v39 = vpop.f32.mrb[51].mxu1  ;;  %v1628_v46 = vmax.f32 %v1093_v30, %v1492_v32  ;;  %v1696_v47 = vmax.f32 %v1365_v31, %v1560_v33 }
 0x153   : > { %v1493_v40 = vmul.f32 0.2, %v1096_v38  ;;  %v1561_v41 = vmul.f32 0.2, %v1368_v39 }
 0x154   : > { %v1631_v44 = vmax.f32 %v3415_v34, %v1495_v36  ;;  %v1699_v45 = vmax.f32 %v3483_v35, %v1563_v37 }
 0x155   : > { %v1629_v48 = vmax.f32 %v1096_v38, %v1493_v40  ;;  %v1697_v49 = vmax.f32 %v1368_v39, %v1561_v41 }
 0x156   : > { %v3002_v50 = vpack.c.bf16 %v1631_v44, %v1630_v42  ;;  %v3172_v51 = vpack.c.bf16 %v1699_v45, %v1698_v43  ;;  %v3418_v54 = vpop.f32.mrb[52].mxu0  ;;  %v3486_v55 = vpop.f32.mrb[52].mxu1 }
 0x157   : > { %v2997_v52 = vpack.c.bf16 %v1629_v48, %v1628_v46  ;;  %v3167_v53 = vpack.c.bf16 %v1697_v49, %v1696_v47  ;;  %v1498_v56 = vmul.f32 0.2, %v3418_v54  ;;  %v1566_v57 = vmul.f32 0.2, %v3486_v55  ;;  %v1109_v58 = vpop.f32.mrb[53].mxu0  ;;  %v1381_v59 = vpop.f32.mrb[53].mxu1 }
 0x158   : > { %3238 = vst [vmem:[%s3789_s30 + $0xc8] sm:$0xff] %v3002_v50   ;;  %3272 = vst [vmem:[%s3789_s30 + $0x1d8] sm:$0xff] %v3172_v51   ;;  %v1496_v60 = vmul.f32 0.2, %v1109_v58  ;;  %v1564_v61 = vmul.f32 0.2, %v1381_v59 }
 0x159   : > { %3237 = vst [vmem:[%s3789_s30 + $0xc0] sm:$0xff] %v2997_v52   ;;  %3271 = vst [vmem:[%s3789_s30 + $0x1d0] sm:$0xff] %v3167_v53   ;;  %v3419_v62 = vpop.f32.mrb[54].mxu0  ;;  %v3487_v63 = vpop.f32.mrb[54].mxu1  ;;  %v1634_v6 = vmax.f32 %v3418_v54, %v1498_v56  ;;  %v1702_v7 = vmax.f32 %v3486_v55, %v1566_v57 }
 0x15a   : > { %v1499_v0 = vmul.f32 0.2, %v3419_v62  ;;  %v1567_v1 = vmul.f32 0.2, %v3487_v63  ;;  %v1112_v2 = vpop.f32.mrb[55].mxu0  ;;  %v1384_v3 = vpop.f32.mrb[55].mxu1  ;;  %v1632_v10 = vmax.f32 %v1109_v58, %v1496_v60  ;;  %v1700_v11 = vmax.f32 %v1381_v59, %v1564_v61 }
 0x15b   : > { %v1497_v4 = vmul.f32 0.2, %v1112_v2  ;;  %v1565_v5 = vmul.f32 0.2, %v1384_v3 }
 0x15c   : > { %v1635_v8 = vmax.f32 %v3419_v62, %v1499_v0  ;;  %v1703_v9 = vmax.f32 %v3487_v63, %v1567_v1 }
 0x15d   : > { %v1633_v12 = vmax.f32 %v1112_v2, %v1497_v4  ;;  %v1701_v13 = vmax.f32 %v1384_v3, %v1565_v5 }
 0x15e   : > { %v3012_v14 = vpack.c.bf16 %v1635_v8, %v1634_v6  ;;  %v3182_v15 = vpack.c.bf16 %v1703_v9, %v1702_v7  ;;  %v3422_v18 = vpop.f32.mrb[56].mxu0  ;;  %v3490_v19 = vpop.f32.mrb[56].mxu1 }
 0x15f   : > { %v3007_v16 = vpack.c.bf16 %v1633_v12, %v1632_v10  ;;  %v3177_v17 = vpack.c.bf16 %v1701_v13, %v1700_v11  ;;  %v1502_v20 = vmul.f32 0.2, %v3422_v18  ;;  %v1570_v21 = vmul.f32 0.2, %v3490_v19  ;;  %v1125_v22 = vpop.f32.mrb[57].mxu0  ;;  %v1397_v23 = vpop.f32.mrb[57].mxu1 }
 0x160   : > { %3240 = vst [vmem:[%s3789_s30 + $0xd8] sm:$0xff] %v3012_v14   ;;  %3274 = vst [vmem:[%s3789_s30 + $0x1e8] sm:$0xff] %v3182_v15   ;;  %v1500_v24 = vmul.f32 0.2, %v1125_v22  ;;  %v1568_v25 = vmul.f32 0.2, %v1397_v23 }
 0x161   : > { %3239 = vst [vmem:[%s3789_s30 + $0xd0] sm:$0xff] %v3007_v16   ;;  %3273 = vst [vmem:[%s3789_s30 + $0x1e0] sm:$0xff] %v3177_v17   ;;  %v3423_v26 = vpop.f32.mrb[58].mxu0  ;;  %v3491_v27 = vpop.f32.mrb[58].mxu1  ;;  %v1638_v34 = vmax.f32 %v3422_v18, %v1502_v20  ;;  %v1706_v35 = vmax.f32 %v3490_v19, %v1570_v21 }
 0x162   : > { %v1503_v28 = vmul.f32 0.2, %v3423_v26  ;;  %v1571_v29 = vmul.f32 0.2, %v3491_v27  ;;  %v1128_v30 = vpop.f32.mrb[59].mxu0  ;;  %v1400_v31 = vpop.f32.mrb[59].mxu1  ;;  %v1636_v38 = vmax.f32 %v1125_v22, %v1500_v24  ;;  %v1704_v39 = vmax.f32 %v1397_v23, %v1568_v25 }
 0x163   : > { %v1501_v32 = vmul.f32 0.2, %v1128_v30  ;;  %v1569_v33 = vmul.f32 0.2, %v1400_v31 }
 0x164   : > { %v1639_v36 = vmax.f32 %v3423_v26, %v1503_v28  ;;  %v1707_v37 = vmax.f32 %v3491_v27, %v1571_v29 }
 0x165   : > { %v1637_v40 = vmax.f32 %v1128_v30, %v1501_v32  ;;  %v1705_v41 = vmax.f32 %v1400_v31, %v1569_v33 }
 0x166   : > { %v3022_v42 = vpack.c.bf16 %v1639_v36, %v1638_v34  ;;  %v3192_v43 = vpack.c.bf16 %v1707_v37, %v1706_v35  ;;  %v3426_v46 = vpop.f32.mrb[60].mxu0  ;;  %v3494_v47 = vpop.f32.mrb[60].mxu1 }
 0x167   : > { %v3017_v44 = vpack.c.bf16 %v1637_v40, %v1636_v38  ;;  %v3187_v45 = vpack.c.bf16 %v1705_v41, %v1704_v39  ;;  %v1506_v48 = vmul.f32 0.2, %v3426_v46  ;;  %v1574_v49 = vmul.f32 0.2, %v3494_v47  ;;  %v1141_v50 = vpop.f32.mrb[61].mxu0  ;;  %v1413_v51 = vpop.f32.mrb[61].mxu1 }
 0x168   : > { %3242 = vst [vmem:[%s3789_s30 + $0xe8] sm:$0xff] %v3022_v42   ;;  %3276 = vst [vmem:[%s3789_s30 + $0x1f8] sm:$0xff] %v3192_v43   ;;  %v1504_v52 = vmul.f32 0.2, %v1141_v50  ;;  %v1572_v53 = vmul.f32 0.2, %v1413_v51 }
 0x169   : > { %3241 = vst [vmem:[%s3789_s30 + $0xe0] sm:$0xff] %v3017_v44   ;;  %3275 = vst [vmem:[%s3789_s30 + $0x1f0] sm:$0xff] %v3187_v45   ;;  %v3427_v54 = vpop.f32.mrb[62].mxu0  ;;  %v3495_v55 = vpop.f32.mrb[62].mxu1  ;;  %v1642_v62 = vmax.f32 %v3426_v46, %v1506_v48  ;;  %v1710_v63 = vmax.f32 %v3494_v47, %v1574_v49 }
 0x16a   : > { %v1507_v56 = vmul.f32 0.2, %v3427_v54  ;;  %v1575_v57 = vmul.f32 0.2, %v3495_v55  ;;  %v1144_v58 = vpop.f32.mrb[63].mxu0  ;;  %v1416_v59 = vpop.f32.mrb[63].mxu1  ;;  %v1640_v2 = vmax.f32 %v1141_v50, %v1504_v52  ;;  %v1708_v3 = vmax.f32 %v1413_v51, %v1572_v53 }
 0x16b   : > { %v1505_v60 = vmul.f32 0.2, %v1144_v58  ;;  %v1573_v61 = vmul.f32 0.2, %v1416_v59 }
 0x16c   : > { %v1643_v0 = vmax.f32 %v3427_v54, %v1507_v56  ;;  %v1711_v1 = vmax.f32 %v3495_v55, %v1575_v57 }
 0x16d   : > { %v1641_v4 = vmax.f32 %v1144_v58, %v1505_v60  ;;  %v1709_v5 = vmax.f32 %v1416_v59, %v1573_v61 }
 0x16e   : > { %v3032_v6 = vpack.c.bf16 %v1643_v0, %v1642_v62  ;;  %v3202_v7 = vpack.c.bf16 %v1711_v1, %v1710_v63  ;;  %v3430_v10 = vpop.f32.mrb[64].mxu0  ;;  %v3498_v11 = vpop.f32.mrb[64].mxu1 }
 0x16f   : > { %v3027_v8 = vpack.c.bf16 %v1641_v4, %v1640_v2  ;;  %v3197_v9 = vpack.c.bf16 %v1709_v5, %v1708_v3  ;;  %v1510_v12 = vmul.f32 0.2, %v3430_v10  ;;  %v1578_v13 = vmul.f32 0.2, %v3498_v11  ;;  %v1157_v14 = vpop.f32.mrb[65].mxu0  ;;  %v1429_v15 = vpop.f32.mrb[65].mxu1 }
 0x170   : > { %3244 = vst [vmem:[%s3789_s30 + $0xf8] sm:$0xff] %v3032_v6   ;;  %3278 = vst [vmem:[%s3789_s30 + $0x208] sm:$0xff] %v3202_v7   ;;  %v1508_v16 = vmul.f32 0.2, %v1157_v14  ;;  %v1576_v17 = vmul.f32 0.2, %v1429_v15 }
 0x171   : > { %3243 = vst [vmem:[%s3789_s30 + $0xf0] sm:$0xff] %v3027_v8   ;;  %3277 = vst [vmem:[%s3789_s30 + $0x200] sm:$0xff] %v3197_v9   ;;  %v3431_v18 = vpop.f32.mrb[66].mxu0  ;;  %v3499_v19 = vpop.f32.mrb[66].mxu1  ;;  %v1646_v26 = vmax.f32 %v3430_v10, %v1510_v12  ;;  %v1714_v27 = vmax.f32 %v3498_v11, %v1578_v13 }
 0x172   : > { %v1511_v20 = vmul.f32 0.2, %v3431_v18  ;;  %v1579_v21 = vmul.f32 0.2, %v3499_v19  ;;  %v1160_v22 = vpop.f32.mrb[67].mxu0  ;;  %v1432_v23 = vpop.f32.mrb[67].mxu1  ;;  %v1644_v30 = vmax.f32 %v1157_v14, %v1508_v16  ;;  %v1712_v31 = vmax.f32 %v1429_v15, %v1576_v17 }
 0x173   : > { %v1509_v24 = vmul.f32 0.2, %v1160_v22  ;;  %v1577_v25 = vmul.f32 0.2, %v1432_v23 }
 0x174   : > { %v1647_v28 = vmax.f32 %v3431_v18, %v1511_v20  ;;  %v1715_v29 = vmax.f32 %v3499_v19, %v1579_v21 }
 0x175   : > { %v1645_v32 = vmax.f32 %v1160_v22, %v1509_v24  ;;  %v1713_v33 = vmax.f32 %v1432_v23, %v1577_v25 }
 0x176   : > { %v3042_v34 = vpack.c.bf16 %v1647_v28, %v1646_v26  ;;  %v3212_v35 = vpack.c.bf16 %v1715_v29, %v1714_v27 }
 0x177   : > { %v3037_v36 = vpack.c.bf16 %v1645_v32, %v1644_v30  ;;  %v3207_v37 = vpack.c.bf16 %v1713_v33, %v1712_v31 }
 0x178   : > { %3246 = vst [vmem:[%s3789_s30 + $0x108] sm:$0xff] %v3042_v34   ;;  %3280 = vst [vmem:[%s3789_s30 + $0x218] sm:$0xff] %v3212_v35  }
 0x179   : > { %3245 = vst [vmem:[%s3789_s30 + $0x100] sm:$0xff] %v3037_v36   ;;  %3279 = vst [vmem:[%s3789_s30 + $0x210] sm:$0xff] %v3207_v37  }
 0x17a PF: > { %s12_s9 = sadd.s32 1, %s3600_s9  }
 0x17b   : > { %p9_p5 = scmp.ge.s32.totalorder %s12_s9, 4  }
 0x17d   :  { %11 = sbr.rel (!%p9_p5) target bundleno = 1 (0x1), region = 58 }

// kernel: dcgan_discriminator_forward.5
= control target key start
LH: loop header
LB: loop body
LE: loop exit
PB: predicated region body
PF: predicated region fallthrough
CT: control target
= control target key end

     0   :  { %s4680_s15 = smov 0   ;;  %s6907_s0 = inlined_call_operand.vmem [shape: bf16[2,290,64], index: 0, kind: input, shape index: {}]   ;;  %s6908_s1 = inlined_call_operand.vmem [shape: bf16[4,64,128], index: 1, kind: input, shape index: {}]   ;;  %s6909_s2 = inlined_call_operand.vmem [shape: bf16[544,128], index: 2, kind: output, shape index: {0}]   ;;  %s6910_s3 = inlined_call_operand.vmem [shape: f32[2,1,128], index: 3, kind: output, shape index: {1}]   ;;  %s6911_s4 = inlined_call_operand.vmem [shape: f32[2,1,128], index: 4, kind: output, shape index: {2}]  }
   0x1 LB: > { %s4686_s16 = sadd.s32 4294967295, %s4651_s15   ;;  %p3500_p0 = scmp.ge.s32.totalorder %s4651_s15, 1  ;;  %s4651_s15 = sphi %s4680_s15, %s15_s15  }
   0x2   : > { %p167_p1 = scmp.lt.s32.totalorder %s4651_s15, 3 }
   0x4   : > { %p168_p2 = pnand %p3500_p0, %p167_p1 }
   0x5   : > { %v4592_v0 = vld [vmem:[%s6908_s1 + $0x20] sm:$0xff] (!%p168_p2)   ;;  %v4653_v1 = vmov (!%p168_p2), 0.0   ;;  %v4594_v3 = vld [vmem:[%s6908_s1 + $0x28] sm:$0xff] (!%p168_p2)   ;;  %vm4654_vm0 = vmmov (!%p168_p2), 0   ;;  %p199_p3 = scmp.lt.s32.totalorder (!%p168_p2), %s4686_s16, 1  ;;  %v4596_v5 = vld [vmem:[%s6908_s1 + $0x30] sm:$0xff] (!%p168_p2)  }
   0x6   : > { %171 = sbr.rel (%p168_p2) target bundleno = 528 (0x210), region = 28  ;;  %3971 = vmatprep.subr.bf16.mxu1 (!%p168_p2), %v4653_v1  ;;  %4123 = vmatprep.subr.bf16.mxu0 (!%p168_p2), %v4653_v1  ;;  %v4593_v2 = vld [vmem:[%s6908_s1 + $0x40] sm:$0xff] (!%p168_p2)   ;;  %v4595_v4 = vld [vmem:[%s6908_s1 + $0x48] sm:$0xff] (!%p168_p2)   ;;  %v4597_v6 = vld [vmem:[%s6908_s1 + $0x50] sm:$0xff] (!%p168_p2)   ;;  %vm357_vm1 = vsmask.f32 (!%p168_p2), 7424 }
   0x7   : > { %3972 = vmatpush3.bf16.msra.mxu1 (!%p168_p2), %v4592_v0  ;;  %3979 = vmatprep.mubr.msk.bf16.mxu1 (!%p168_p2), %vm4654_vm0, %v4653_v1  ;;  %v4598_v7 = vld [vmem:[%s6908_s1 + $0x38] sm:$0xff] (!%p168_p2)   ;;  %vm522_vm2 = vcmask (!%p168_p2), 523264   ;;  %v4604_v23 = vld [vmem:[%s6908_s1] sm:$0xff] (!%p168_p2)   ;;  %v4614_v46 = vld [vmem:[%s6908_s1 + $0x8] sm:$0xff] (!%p168_p2)   ;;  %vm1533_vm3 = vcmask (!%p168_p2), 1046528   ;;  %s204_s5 = smul.u32 (!%p168_p2), 34, %s4686_s16 }
   0x8   : > { %4124 = vmatpush3.bf16.msra.mxu0 (!%p168_p2), %v4593_v2  ;;  %3973 = vmatprep.subr.bf16.mxu1 (!%p168_p2), %v4653_v1  ;;  %v4599_v8 = vld [vmem:[%s6908_s1 + $0x58] sm:$0xff] (!%p168_p2)   ;;  %v4605_v31 = vld [vmem:[%s6908_s1 + $0x60] sm:$0xff] (!%p168_p2)   ;;  %v4615_v50 = vld [vmem:[%s6908_s1 + $0x68] sm:$0xff] (!%p168_p2)  }
   0x9   : > { %4125 = vmatprep.subr.bf16.mxu0 (!%p168_p2), %v4653_v1  ;;  %4131 = vmatprep.mubr.msk.bf16.mxu0 (!%p168_p2), %vm4654_vm0, %v4653_v1  ;;  %p6099_p4 = scmp.lt.s32.totalorder (!%p168_p2), %s204_s5, 67 }
   0xb   : > { %3974 = vmatpush3.bf16.msra.mxu1 (!%p168_p2), %v4594_v3 }
   0xc   : > { %4126 = vmatpush3.bf16.msra.mxu0 (!%p168_p2), %v4595_v4  ;;  %3975 = vmatprep.subr.bf16.mxu1 (!%p168_p2), %v4653_v1 }
   0xd   : > { %s4712_s25 = scalar_select %p199_p3, %s4686_s16, 1  ;;  %4127 = vmatprep.subr.bf16.mxu0 %v4653_v1 }
   0xe   : > { %s7044_s5 = smov (!%p6099_p4, %s204_s5), 67 }
   0xf   : > { %s4445_s28 = smul.u32 148, %s4712_s25  ;;  %3976 = vmatpush3.bf16.msra.mxu1 %v4596_v5  ;;  %s3502_s16 = sshll.u32 %s7044_s5, 2 }
  0x10   : > { %4128 = vmatpush3.bf16.msra.mxu0 %v4597_v6  ;;  %3977 = vmatprep.subr.bf16.mxu1 %v4653_v1  ;;  %s212_s12 = scalar_lea.vmem %s6910_s3, %s4712_s25  ;;  %s215_s17 = scalar_lea.vmem %s6911_s4, %s4712_s25 }
  0x11   : > { %s4729_s9 = scalar_lea.vmem %s6907_s0, %s4445_s28  ;;  %4129 = vmatprep.subr.bf16.mxu0 %v4653_v1 }
  0x12   : > { %v4735_v9 = vld [vmem:[%s4729_s9] sm:$0xff]   ;;  %v4738_v10 = vld [vmem:[%s4729_s9 + $0x8] sm:$0xff]   ;;  %v4751_v17 = vld [vmem:[%s4729_s9 + $0x10] sm:$0xff]  }
  0x13   : > { %v970_v11 = vld [vmem:[%s4729_s9 + $0x8] sm:$0xf]  ;;  %v4743_v12 = vld [vmem:[%s4729_s9 + $0xc] sm:$0xf]  ;;  %v359_v13 = vshrl.u32 %v4735_v9, 16  ;;  %v361_v14 = vshll.u32 %v4735_v9, 16  ;;  %3978 = vmatpush3.bf16.msra.mxu1 %v4598_v7 }
  0x14   : > { %v366_v15 = vshll.u32 %v4738_v10, 16  ;;  %v3579_v16 = vcombine.low %v970_v11, %v4743_v12  ;;  %v370_v18 = vshrl.u32 %v4738_v10, 16  ;;  %v4758_v24 = vld [vmem:[%s4729_s9 + $0x10] sm:$0xff]   ;;  %4130 = vmatpush3.bf16.msra.mxu0 %v4599_v8  ;;  %4047 = vmatprep.subr.bf16.mxu1 %v4653_v1  ;;  %v1110_v25 = vshll.u32 %v4751_v17, 16  ;;  %v4763_v26 = vld [vmem:[%s4729_s9 + $0x18] sm:$0xff]   ;;  %v4785_v42 = vld [vmem:[%s4729_s9 + $0x20] sm:$0xff]  }
  0x15   : > { %v363_v19 = vrot.slane %v361_v14, 1  ;;  %4199 = vmatprep.subr.bf16.mxu0 %v4653_v1  ;;  %v374_v29 = vshll.u32 %v4758_v24, 16  ;;  %v1114_v34 = vshrl.u32 %v4751_v17, 16  ;;  %v1118_v35 = vshll.u32 %v4763_v26, 16  ;;  %v4778_v39 = vld [vmem:[%s4729_s9 + $0x18] sm:$0xff]   ;;  %v4804_v53 = vld [vmem:[%s4729_s9 + $0x20] sm:$0xff]  }
  0x16   : > { %v368_v20 = vrot.slane %v366_v15, 1  ;;  %v1103_v21 = vshrl.u32 %v3579_v16, 16  ;;  %v1105_v22 = vshll.u32 %v3579_v16, 16  ;;  %v1112_v30 = vrot.slane %v1110_v25, 1  ;;  %v4808_v54 = vld [vmem:[%s4729_s9 + $0x28] sm:$0xff]   ;;  %v4828_v2 = vld [vmem:[%s4729_s9 + $0x50] sm:$0xff]  }
  0x17   : > { %v364_v27 = vor.u32 %v363_v19, %v359_v13  ;;  %v376_v38 = vrot.slane %v374_v29, 1  ;;  %v1120_v41 = vrot.slane %v1118_v35, 1  ;;  %v378_v44 = vshrl.u32 %v4758_v24, 16  ;;  %v4821_v63 = vld [vmem:[%s4729_s9 + $0x28] sm:$0xff]   ;;  %v4833_v5 = vld [vmem:[%s4729_s9 + $0x30] sm:$0xff]  }
  0x18   : > { %v1107_v28 = vrot.slane %v1105_v22, 1  ;;  %v372_v37 = vor.u32 %v370_v18, %v368_v20  ;;  %v1116_v40 = vor.u32 %v1114_v34, %v1112_v30  ;;  %v382_v45 = vshll.u32 %v4778_v39, 16  ;;  %v4824_v0 = vld [vmem:[%s4729_s9 + $0x48] sm:$0xff]   ;;  %v4624_v7 = vld [vmem:[%s6908_s1 + $0x10] sm:$0xff]  }
  0x19   : > { %v369_v32 = vsel %vm357_vm1, %v364_v27, %v368_v20  ;;  %v1122_v48 = vshrl.u32 %v4763_v26, 16  ;;  %v1126_v49 = vshll.u32 %v4785_v42, 16  ;;  %v380_v51 = vor.u32 %v378_v44, %v376_v38  ;;  %v4625_v18 = vld [vmem:[%s6908_s1 + $0x70] sm:$0xff]  }
  0x1a   : > { %v1108_v33 = vor.u32 %v1107_v28, %v1103_v21  ;;  %3980 = vmatmul.mubr.msk.bf16.vlgmr.msra.gmra.mrb[0].mxu1 %vm522_vm2, %v369_v32  ;;  %v377_v43 = vsel %vm357_vm1, %v372_v37, %v376_v38  ;;  %v1121_v47 = vsel %vm357_vm1, %v1116_v40, %v1120_v41  ;;  %v384_v52 = vrot.slane %v382_v45, 1  ;;  %v4870_v35 = vld [vmem:[%s4729_s9 + $0x30] sm:$0xff]   ;;  %v4873_v37 = vld [vmem:[%s4729_s9 + $0x60] sm:$0xff]  }
  0x1b   : > { %4048 = vmatpush3.bf16.msra.mxu1 %v4604_v23  ;;  %3983 = vmatprep.mubr.msk.bf16.mxu1 %vm4654_vm0, %v4653_v1  ;;  %v1124_v55 = vor.u32 %v1122_v48, %v1120_v41  ;;  %v1128_v56 = vrot.slane %v1126_v49, 1  ;;  %v386_v58 = vshrl.u32 %v4778_v39, 16  ;;  %v390_v59 = vshll.u32 %v4804_v53, 16  ;;  %v4855_v23 = vld [vmem:[%s4729_s9 + $0x58] sm:$0xff]  }
  0x1c   : > { %v1113_v36 = vsel %vm357_vm1, %v1108_v33, %v1112_v30  ;;  %4049 = vmatprep.subr.bf16.mxu1 %v4653_v1  ;;  %v385_v57 = vsel %vm357_vm1, %v380_v51, %v384_v52  ;;  %v1134_v60 = vshll.u32 %v4808_v54, 16  ;;  %v1130_v62 = vshrl.u32 %v4785_v42, 16  ;;  %v4878_v41 = vld [vmem:[%s4729_s9 + $0x38] sm:$0xff]  }
  0x1d   : > { %4132 = vmatmul.mubr.msk.bf16.vlgmr.msra.gmra.mrb[0].mxu0 %vm522_vm2, %v1113_v36  ;;  %v1129_v61 = vsel %vm357_vm1, %v1124_v55, %v1128_v56  ;;  %v388_v3 = vor.u32 %v386_v58, %v384_v52  ;;  %v392_v4 = vrot.slane %v390_v59, 1  ;;  %v1166_v6 = vshll.u32 %v4824_v0, 16  ;;  %v4634_v58 = vld [vmem:[%s6908_s1 + $0x18] sm:$0xff]  }
  0x1e   : > { %4200 = vmatpush3.bf16.msra.mxu0 %v4605_v31  ;;  %4135 = vmatprep.mubr.msk.bf16.mxu0 %vm4654_vm0, %v4653_v1  ;;  %v1136_v8 = vrot.slane %v1134_v60, 1  ;;  %v1170_v11 = vshrl.u32 %v4824_v0, 16  ;;  %v1132_v13 = vor.u32 %v1130_v62, %v1128_v56  ;;  %v1174_v15 = vshll.u32 %v4828_v2, 16 }
  0x1f   : > { %4201 = vmatprep.subr.bf16.mxu0 %v4653_v1  ;;  %4050 = vmatpush3.bf16.msra.mxu1 %v4614_v46  ;;  %v4843_v14 = vrot.slane %v1166_v6, 1  ;;  %v398_v16 = vshll.u32 %v4821_v63, 16  ;;  %v393_v19 = vsel %vm357_vm1, %v388_v3, %v392_v4  ;;  %v394_v20 = vshrl.u32 %v4804_v53, 16 }
  0x20   : > { %4051 = vmatprep.subr.bf16.mxu1 %v4653_v1  ;;  %v1176_v22 = vrot.slane %v1174_v15, 1  ;;  %v1142_v25 = vshll.u32 %v4833_v5, 16  ;;  %v1178_v27 = vshrl.u32 %v4828_v2, 16  ;;  %v1137_v28 = vsel %vm357_vm1, %v1132_v13, %v1136_v8 }
  0x21   : > { %v1172_v21 = vor.u32 %v1170_v11, %v4843_v14  ;;  %v1138_v29 = vshrl.u32 %v4808_v54, 16  ;;  %v1182_v31 = vshll.u32 %v4855_v23, 16  ;;  %v400_v32 = vrot.slane %v398_v16, 1 }
  0x22   : > { %3984 = vmatmul.mubr.msk.bf16.gmra.mrb[4].mxu1 %vm522_vm2, %v377_v43  ;;  %4202 = vmatpush3.bf16.msra.mxu0 %v4615_v50  ;;  %v1180_v33 = vor.u32 %v1178_v27, %v1176_v22  ;;  %v396_v34 = vor.u32 %v394_v20, %v392_v4  ;;  %v1186_v38 = vshrl.u32 %v4855_v23, 16  ;;  %v1144_v40 = vrot.slane %v1142_v25, 1  ;;  %v4881_v43 = vld [vmem:[%s4729_s9 + $0x68] sm:$0xff]   ;;  %v4935_v27 = vld [vmem:[%s4729_s9 + $0x40] sm:$0xff]  }
  0x23   : > { %3987 = vmatprep.mubr.msk.bf16.mxu1 %vm4654_vm0, %v4653_v1  ;;  %4203 = vmatprep.subr.bf16.mxu0 %v4653_v1  ;;  %v4862_v30 = vsel %vm357_vm1, %v1172_v21, %v1176_v22  ;;  %v1184_v36 = vrot.slane %v1182_v31, 1  ;;  %v1140_v44 = vor.u32 %v1138_v29, %v1136_v8  ;;  %v402_v46 = vshrl.u32 %v4821_v63, 16  ;;  %v4916_v8 = vld [vmem:[%s4729_s9 + $0x40] sm:$0xff]  }
  0x24   : > { %4052 = vmatpush3.bf16.msra.mxu1 %v4624_v7  ;;  %v1190_v48 = vshll.u32 %v4873_v37, 16  ;;  %v1194_v49 = vshrl.u32 %v4873_v37, 16  ;;  %v401_v50 = vsel %vm357_vm1, %v396_v34, %v400_v32  ;;  %v406_v51 = vshll.u32 %v4870_v35, 16  ;;  %v4912_v7 = vld [vmem:[%s4729_s9 + $0x38] sm:$0xff]   ;;  %v4930_v22 = vld [vmem:[%s4729_s9 + $0x80] sm:$0xff]  }
  0x25   : > { %4136 = vmatmul.mubr.msk.bf16.gmra.mrb[4].mxu0 %vm522_vm2, %v1121_v47  ;;  %4053 = vmatprep.subr.bf16.mxu1 %v4653_v1  ;;  %v4886_v45 = vsel %vm357_vm1, %v1180_v33, %v1184_v36  ;;  %v1188_v47 = vor.u32 %v1186_v38, %v1184_v36  ;;  %v1198_v52 = vshll.u32 %v4881_v43, 16  ;;  %v1146_v55 = vshrl.u32 %v4833_v5, 16  ;;  %v1520_v38 = vld [vmem:[%s4729_s9 + $0x8] sm:$0xe] }
  0x26   : > { %4139 = vmatprep.mubr.msk.bf16.mxu0 %vm4654_vm0, %v4653_v1  ;;  %4204 = vmatpush3.bf16.msra.mxu0 %v4625_v18  ;;  %v1150_v56 = vshll.u32 %v4878_v41, 16  ;;  %v1145_v59 = vsel %vm357_vm1, %v1140_v44, %v1144_v40  ;;  %v404_v4 = vor.u32 %v402_v46, %v400_v32  ;;  %v408_v6 = vrot.slane %v406_v51, 1  ;;  %v4642_v32 = vld [vmem:[%s4729_s9 + $0x88] ss:$0 sps:$4 sm:$0x11]  }
  0x27   : > { %4205 = vmatprep.subr.bf16.mxu0 %v4653_v1  ;;  %v4900_v60 = vrot.slane %v1198_v52, 1  ;;  %v1148_v13 = vor.u32 %v1146_v55, %v1144_v40  ;;  %v410_v18 = vshrl.u32 %v4870_v35, 16  ;;  %v1154_v20 = vshrl.u32 %v4878_v41, 16 }
  0x28   : > { %4054 = vmatpush3.bf16.msra.mxu1 %v4634_v58  ;;  %v1152_v15 = vrot.slane %v1150_v56, 1  ;;  %v409_v16 = vsel %vm357_vm1, %v404_v4, %v408_v6  ;;  %v1158_v21 = vshll.u32 %v4916_v8, 16  ;;  %v486_v31 = vshll.u32 %v4930_v22, 16 }
  0x29   : > { %v490_v36 = vshrl.u32 %v4930_v22, 16  ;;  %v494_v44 = vshll.u32 %v4642_v32, 16  ;;  %v418_v46 = vshrl.u32 %v4912_v7, 16  ;;  %v1162_v55 = vshrl.u32 %v4916_v8, 16 }
  0x2a   : > { %3988 = vmatmul.mubr.msk.bf16.gmra.mrb[8].mxu1 %vm522_vm2, %v385_v57  ;;  %v1192_v57 = vrot.slane %v1190_v48, 1  ;;  %v1153_v25 = vsel %vm357_vm1, %v1148_v13, %v1152_v15  ;;  %v1156_v33 = vor.u32 %v1154_v20, %v1152_v15  ;;  %v1160_v34 = vrot.slane %v1158_v21, 1  ;;  %v4971_v15 = vld [vmem:[%s4729_s9 + $0x48] sm:$0xff]  }
  0x2b   : > { %3991 = vmatprep.mubr.msk.bf16.mxu1 %vm4654_vm0, %v4653_v1  ;;  %v4946_v40 = vrot.slane %v486_v31, 1  ;;  %v3626_v48 = vcombine.low %v1520_v38, %v4743_v12  ;;  %v496_v51 = vrot.slane %v494_v44, 1  ;;  %v1539_v12 = vrot.slane %v4785_v42, 1  ;;  %v5001_v31 = vld [vmem:[%s4729_s9 + $0x50] sm:$0xff]   ;;  %v5017_v44 = vld [vmem:[%s4729_s9 + $0x58] sm:$0xff]  }
  0x2c   : > { %v4907_v62 = vsel %vm357_vm1, %v1188_v47, %v1192_v57  ;;  %v1196_v3 = vor.u32 %v1194_v49, %v1192_v57  ;;  %v422_v47 = vshll.u32 %v4935_v27, 16  ;;  %v1161_v52 = vsel %vm357_vm1, %v1156_v33, %v1160_v34 }
  0x2d   : > { %4140 = vmatmul.mubr.msk.bf16.gmra.mrb[8].mxu0 %vm522_vm2, %v1129_v61  ;;  %v4635_v61 = vld [vmem:[%s6908_s1 + $0x78] sm:$0xff]   ;;  %v1534_v56 = vrot.slane %v3626_v48, 1  ;;  %v1535_v57 = vrot.slane %v4751_v17, 1  ;;  %v1545_v13 = vrot.slane %v4878_v41, 1  ;;  %v430_v20 = vshll.u32 %v4971_v15, 16 }
  0x2e   : > { %4143 = vmatprep.mubr.msk.bf16.mxu0 %vm4654_vm0, %v4653_v1  ;;  %v4920_v11 = vsel %vm357_vm1, %v1196_v3, %v4900_v60  ;;  %4206 = vmatpush3.bf16.msra.mxu0 %v4635_v61  ;;  %v1541_v61 = vrot.slane %v4808_v54, 1  ;;  %v424_v17 = vrot.slane %v422_v47, 1  ;;  %v438_v33 = vshll.u32 %v5001_v31, 16 }
  0x2f   : > { %v4964_v4 = vsel %vm1533_vm3, %v1534_v56, %v1535_v57  ;;  %v442_v47 = vshrl.u32 %v5001_v31, 16  ;;  %v446_v48 = vshll.u32 %v5017_v44, 16 }
  0x30   : > { %v4980_v54 = vsel %vm1533_vm3, %v1539_v12, %v1541_v61  ;;  %v440_v38 = vrot.slane %v438_v33, 1 }
  0x32   : > { %3992 = vmatmul.mubr.msk.bf16.gmra.mrb[12].mxu1 %vm522_vm2, %v393_v19  ;;  %v414_v19 = vshll.u32 %v4912_v7, 16 }
  0x33   : > { %3995 = vmatprep.mubr.msk.bf16.mxu1 %vm4654_vm0, %v4653_v1 }
  0x34   : > { %v416_v29 = vrot.slane %v414_v19, 1  ;;  %v426_v19 = vshrl.u32 %v4935_v27, 16 }
  0x35   : > { %4144 = vmatmul.mubr.msk.bf16.gmra.mrb[12].mxu0 %vm522_vm2, %v1137_v28  ;;  %v412_v28 = vor.u32 %v410_v18, %v408_v6  ;;  %v1543_v6 = vrot.slane %v4833_v5, 1 }
  0x36   : > { %4147 = vmatprep.mubr.msk.bf16.mxu0 %vm4654_vm0, %v4653_v1  ;;  %v420_v3 = vor.u32 %v418_v46, %v416_v29 }
  0x37   : > { %v417_v49 = vsel %vm357_vm1, %v412_v28, %v416_v29  ;;  %v4984_v5 = vsel %vm1533_vm3, %v1541_v61, %v1543_v6  ;;  %v4987_v41 = vsel %vm1533_vm3, %v1543_v6, %v1545_v13  ;;  %v428_v28 = vor.u32 %v426_v19, %v424_v17 }
  0x38   : > { %v425_v18 = vsel %vm357_vm1, %v420_v3, %v424_v17  ;;  %v432_v29 = vrot.slane %v430_v20, 1  ;;  %v1202_v17 = vshrl.u32 %v4881_v43, 16  ;;  %v5073_v20 = vld [vmem:[%s4729_s9 + $0x70] sm:$0xff]  }
  0x39   : > { %v470_v33 = vshll.u32 %v5073_v20, 16 }
  0x3a   : > { %3996 = vmatmul.mubr.msk.bf16.gmra.mrb[16].mxu1 %vm522_vm2, %v401_v50  ;;  %v492_v50 = vor.u32 %v490_v36, %v4946_v40 }
  0x3b   : > { %3999 = vmatprep.mubr.msk.bf16.mxu1 %vm4654_vm0, %v4653_v1 }
  0x3c   : > { %v4957_v58 = vsel %vm357_vm1, %v492_v50, %v496_v51  ;;  %v444_v50 = vor.u32 %v442_v47, %v440_v38  ;;  %v448_v51 = vrot.slane %v446_v48, 1 }
  0x3d   : > { %4148 = vmatmul.mubr.msk.bf16.gmra.mrb[16].mxu0 %vm522_vm2, %v1145_v59  ;;  %v1537_v59 = vrot.slane %v4763_v26, 1 }
  0x3e   : > { %4151 = vmatprep.mubr.msk.bf16.mxu0 %vm4654_vm0, %v4653_v1 }
  0x3f   : > { %v4974_v26 = vsel %vm1533_vm3, %v1535_v57, %v1537_v59  ;;  %v4977_v42 = vsel %vm1533_vm3, %v1537_v59, %v1539_v12  ;;  %v1553_v57 = vrot.slane %v4855_v23, 1  ;;  %v5061_v23 = vld [vmem:[%s4729_s9 + $0x70] sm:$0xff]  }
  0x42   : > { %4000 = vmatmul.mubr.msk.bf16.gmra.mrb[20].mxu1 %vm522_vm2, %v409_v16  ;;  %v1164_v16 = vor.u32 %v1162_v55, %v1160_v34  ;;  %v1549_v34 = vrot.slane %v4824_v0, 1  ;;  %v450_v55 = vshrl.u32 %v5017_v44, 16 }
  0x43   : > { %4003 = vmatprep.mubr.msk.bf16.mxu1 %vm4654_vm0, %v4653_v1 }
  0x44   : > { %v1169_v21 = vsel %vm357_vm1, %v1164_v16, %v4843_v14  ;;  %v433_v14 = vsel %vm357_vm1, %v428_v28, %v432_v29  ;;  %v452_v59 = vor.u32 %v450_v55, %v448_v51  ;;  %v1206_v16 = vshll.u32 %v5061_v23, 16 }
  0x45   : > { %4152 = vmatmul.mubr.msk.bf16.gmra.mrb[20].mxu0 %vm522_vm2, %v1153_v25  ;;  %v1547_v25 = vrot.slane %v4916_v8, 1  ;;  %v434_v8 = vshrl.u32 %v4971_v15, 16 }
  0x46   : > { %4155 = vmatprep.mubr.msk.bf16.mxu0 %vm4654_vm0, %v4653_v1  ;;  %v1208_v28 = vrot.slane %v1206_v16, 1 }
  0x47   : > { %v5004_v32 = vsel %vm1533_vm3, %v1545_v13, %v1547_v25  ;;  %v436_v36 = vor.u32 %v434_v8, %v432_v29  ;;  %v5020_v46 = vsel %vm1533_vm3, %v1547_v25, %v1549_v34  ;;  %v1204_v25 = vor.u32 %v1202_v17, %v4900_v60  ;;  %v5086_v29 = vld [vmem:[%s4729_s9 + $0x78] sm:$0xff]  }
  0x49   : > { %v441_v0 = vsel %vm357_vm1, %v436_v36, %v440_v38  ;;  %v1210_v36 = vshrl.u32 %v5061_v23, 16  ;;  %v472_v38 = vrot.slane %v470_v33, 1  ;;  %v5133_v33 = vld [vmem:[%s4729_s9 + $0x90] ss:$0 sps:$4 sm:$0x11]  }
  0x4a   : > { %4004 = vmatmul.mubr.msk.bf16.gmra.mrb[24].mxu1 %vm522_vm2, %v417_v49  ;;  %v1551_v49 = vrot.slane %v4828_v2, 1  ;;  %v449_v2 = vsel %vm357_vm1, %v444_v50, %v448_v51  ;;  %v474_v51 = vshrl.u32 %v5073_v20, 16 }
  0x4b   : > { %4007 = vmatprep.mubr.msk.bf16.mxu1 %vm4654_vm0, %v4653_v1  ;;  %v1212_v47 = vor.u32 %v1210_v36, %v1208_v28 }
  0x4c   : > { %v5054_v61 = vsel %vm1533_vm3, %v1551_v49, %v1553_v57 }
  0x4d   : > { %4156 = vmatmul.mubr.msk.bf16.gmra.mrb[24].mxu0 %vm522_vm2, %v1161_v52  ;;  %v5037_v52 = vsel %vm1533_vm3, %v1549_v34, %v1551_v49  ;;  %v1209_v34 = vsel %vm357_vm1, %v1204_v25, %v1208_v28  ;;  %v5104_v49 = vld [vmem:[%s4729_s9 + $0x80] sm:$0xff]  }
  0x4e   : > { %4159 = vmatprep.mubr.msk.bf16.mxu0 %vm4654_vm0, %v4653_v1 }
  0x52   : > { %4008 = vmatmul.mubr.msk.bf16.gmra.mrb[28].mxu1 %vm522_vm2, %v425_v18  ;;  %v1555_v18 = vrot.slane %v4873_v37, 1 }
  0x53   : > { %4011 = vmatprep.mubr.msk.bf16.mxu1 %vm4654_vm0, %v4653_v1 }
  0x55   : > { %4160 = vmatmul.mubr.msk.bf16.gmra.mrb[28].mxu0 %vm522_vm2, %v1169_v21  ;;  %v5078_v21 = vsel %vm1533_vm3, %v1553_v57, %v1555_v18  ;;  %v1222_v57 = vshll.u32 %v5104_v49, 16 }
  0x56   : > { %4163 = vmatprep.mubr.msk.bf16.mxu0 %vm4654_vm0, %v4653_v1 }
  0x5a   : > { %4012 = vmatmul.mubr.msk.bf16.gmra.mrb[32].mxu1 %vm522_vm2, %v433_v14 }
  0x5b   : > { %4015 = vmatprep.mubr.msk.bf16.mxu1 %vm4654_vm0, %v4653_v1 }
  0x5d   : > { %4164 = vmatmul.mubr.msk.bf16.gmra.mrb[32].mxu0 %vm522_vm2, %v4862_v30  ;;  %v5034_v30 = vld [vmem:[%s4729_s9 + $0x60] sm:$0xff]  }
  0x5e   : > { %4167 = vmatprep.mubr.msk.bf16.mxu0 %vm4654_vm0, %v4653_v1  ;;  %v454_v56 = vshll.u32 %v5034_v30, 16  ;;  %v458_v6 = vshrl.u32 %v5034_v30, 16 }
  0x60   : > { %v456_v12 = vrot.slane %v454_v56, 1  ;;  %v1218_v56 = vshrl.u32 %v5086_v29, 16 }
  0x62   : > { %4016 = vmatmul.mubr.msk.bf16.gmra.mrb[36].mxu1 %vm522_vm2, %v441_v0  ;;  %v457_v3 = vsel %vm357_vm1, %v452_v59, %v456_v12  ;;  %v5098_v0 = vld [vmem:[%s4729_s9 + $0x78] sm:$0xff]   ;;  %v476_v59 = vor.u32 %v474_v51, %v472_v38 }
  0x63   : > { %4019 = vmatprep.mubr.msk.bf16.mxu1 %vm4654_vm0, %v4653_v1  ;;  %v482_v16 = vshrl.u32 %v5098_v0, 16 }
  0x65   : > { %4168 = vmatmul.mubr.msk.bf16.gmra.mrb[36].mxu0 %vm522_vm2, %v4886_v45  ;;  %v5051_v45 = vld [vmem:[%s4729_s9 + $0x68] sm:$0xff]  }
  0x66   : > { %4171 = vmatprep.mubr.msk.bf16.mxu0 %vm4654_vm0, %v4653_v1  ;;  %v462_v13 = vshll.u32 %v5051_v45, 16  ;;  %v466_v8 = vshrl.u32 %v5051_v45, 16 }
  0x68   : > { %v464_v19 = vrot.slane %v462_v13, 1  ;;  %v5119_v13 = vld [vmem:[%s4729_s9 + $0x88] sm:$0xff]   ;;  %s6218_s9 = scalar_lea.vmem %s6909_s2, %s3502_s16 }
  0x69   : > { %v1230_v25 = vshll.u32 %v5119_v13, 16 }
  0x6a   : > { %4020 = vmatmul.mubr.msk.bf16.gmra.mrb[40].mxu1 %vm522_vm2, %v449_v2  ;;  %v468_v60 = vor.u32 %v466_v8, %v464_v19  ;;  %v478_v2 = vshll.u32 %v5098_v0, 16 }
  0x6b   : > { %4023 = vmatprep.mubr.msk.bf16.mxu1 %vm4654_vm0, %v4653_v1  ;;  %v1232_v8 = vrot.slane %v1230_v25, 1 }
  0x6c   : > { %v473_v50 = vsel %vm357_vm1, %v468_v60, %v472_v38  ;;  %v1238_v60 = vshll.u32 %v5133_v33, 16 }
  0x6d   : > { %4172 = vmatmul.mubr.msk.bf16.gmra.mrb[40].mxu0 %vm522_vm2, %v4907_v62  ;;  %v460_v62 = vor.u32 %v458_v6, %v456_v12  ;;  %v480_v12 = vrot.slane %v478_v2, 1  ;;  %v1224_v6 = vrot.slane %v1222_v57, 1 }
  0x6e   : > { %4175 = vmatprep.mubr.msk.bf16.mxu0 %vm4654_vm0, %v4653_v1 }
  0x6f   : > { %v465_v14 = vsel %vm357_vm1, %v460_v62, %v464_v19  ;;  %v481_v17 = vsel %vm357_vm1, %v476_v59, %v480_v12  ;;  %v1226_v19 = vshrl.u32 %v5104_v49, 16  ;;  %v484_v28 = vor.u32 %v482_v16, %v480_v12 }
  0x72   : > { %4024 = vmatmul.mubr.msk.bf16.gmra.mrb[44].mxu1 %vm522_vm2, %v457_v3 }
  0x73   : > { %4027 = vmatprep.mubr.msk.bf16.mxu1 %vm4654_vm0, %v4653_v1 }
  0x75   : > { %4176 = vmatmul.mubr.msk.bf16.gmra.mrb[44].mxu0 %vm522_vm2, %v4920_v11  ;;  %v1214_v11 = vshll.u32 %v5086_v29, 16 }
  0x76   : > { %4179 = vmatprep.mubr.msk.bf16.mxu0 %vm4654_vm0, %v4653_v1 }
  0x77   : > { %v1216_v48 = vrot.slane %v1214_v11, 1  ;;  %v1234_v11 = vshrl.u32 %v5119_v13, 16 }
  0x79   : > { %v1217_v55 = vsel %vm357_vm1, %v1212_v47, %v1216_v48  ;;  %v1220_v3 = vor.u32 %v1218_v56, %v1216_v48  ;;  %v1236_v38 = vor.u32 %v1234_v11, %v1232_v8  ;;  %v1240_v47 = vrot.slane %v1238_v60, 1 }
  0x7a   : > { %4028 = vmatmul.mubr.msk.bf16.gmra.mrb[48].mxu1 %vm522_vm2, %v465_v14  ;;  %v1228_v14 = vor.u32 %v1226_v19, %v1224_v6 }
  0x7b   : > { %4031 = vmatprep.mubr.msk.bf16.mxu1 %vm4654_vm0, %v4653_v1  ;;  %v1225_v62 = vsel %vm357_vm1, %v1220_v3, %v1224_v6 }
  0x7c   : > { %v1233_v36 = vsel %vm357_vm1, %v1228_v14, %v1232_v8 }
  0x7d   : > { %4180 = vmatmul.mubr.msk.bf16.gmra.mrb[48].mxu0 %vm522_vm2, %v1209_v34  ;;  %v489_v34 = vsel %vm357_vm1, %v484_v28, %v4946_v40  ;;  %v1241_v40 = vsel %vm357_vm1, %v1236_v38, %v1240_v47 }
  0x7e   : > { %4183 = vmatprep.mubr.msk.bf16.mxu0 %vm4654_vm0, %v4653_v1 }
  0x82   : > { %4032 = vmatmul.mubr.msk.bf16.gmra.mrb[52].mxu1 %vm522_vm2, %v473_v50 }
  0x83   : > { %4035 = vmatprep.mubr.msk.bf16.mxu1 %vm4654_vm0, %v4653_v1 }
  0x85   : > { %4184 = vmatmul.mubr.msk.bf16.gmra.mrb[52].mxu0 %vm522_vm2, %v1217_v55 }
  0x86   : > { %4187 = vmatprep.mubr.msk.bf16.mxu0 %vm4654_vm0, %v4653_v1 }
  0x8a   : > { %4036 = vmatmul.mubr.msk.bf16.gmra.mrb[56].mxu1 %vm522_vm2, %v481_v17 }
  0x8b   : > { %4039 = vmatprep.mubr.msk.bf16.mxu1 %vm4654_vm0, %v4653_v1 }
  0x8d   : > { %4188 = vmatmul.mubr.msk.bf16.gmra.mrb[56].mxu0 %vm522_vm2, %v1225_v62 }
  0x8e   : > { %4191 = vmatprep.mubr.msk.bf16.mxu0 %vm4654_vm0, %v4653_v1 }
  0x92   : > { %4040 = vmatmul.mubr.msk.bf16.gmra.mrb[60].mxu1 %vm522_vm2, %v489_v34 }
  0x93   : > { %4043 = vmatprep.mubr.msk.bf16.mxu1 %vm4654_vm0, %v4653_v1 }
  0x95   : > { %4192 = vmatmul.mubr.msk.bf16.gmra.mrb[60].mxu0 %vm522_vm2, %v1233_v36 }
  0x96   : > { %4195 = vmatprep.mubr.msk.bf16.mxu0 %vm4654_vm0, %v4653_v1 }
  0x9a   : > { %4044 = vmatmul.mubr.msk.bf16.gmra.mrb[64].mxu1 %vm522_vm2, %v4957_v58 }
  0x9b   : > { %4055 = vmatprep.mubr.msk.bf16.mxu1 %vm4654_vm0, %v4653_v1 }
  0x9d   : > { %4196 = vmatmul.mubr.msk.bf16.gmra.mrb[64].mxu0 %vm522_vm2, %v1241_v40 }
  0x9e   : > { %4207 = vmatprep.mubr.msk.bf16.mxu0 %vm4654_vm0, %v4653_v1 }
  0xa2   : > { %4056 = vmatmul.mubr.msk.bf16.vlgmr.msra.gmra.mrb[0].mxu1 %vm522_vm2, %v4735_v9  ;;  %v2017_v9 = vlaneseq }
  0xa3   : > { %4059 = vmatprep.mubr.msk.bf16.mxu1 %vm4654_vm0, %v4653_v1 }
  0xa5   : > { %4208 = vmatmul.mubr.msk.bf16.vlgmr.msra.gmra.mrb[0].mxu0 %vm522_vm2, %v4964_v4 }
  0xa6   : > { %4211 = vmatprep.mubr.msk.bf16.mxu0 %vm4654_vm0, %v4653_v1 }
  0xaa   : > { %4060 = vmatmul.mubr.msk.bf16.gmra.mrb[4].mxu1 %vm522_vm2, %v4738_v10  ;;  %v5210_v10 = vshrl.u32 %v2017_v9, 7 }
  0xab   : > { %4063 = vmatprep.mubr.msk.bf16.mxu1 %vm4654_vm0, %v4653_v1 }
  0xac   : > { %v2022_v59 = vadd.s32 32, %v5210_v10  ;;  %v2023_v62 = vadd.s32 40, %v5210_v10 }
  0xad   : > { %4212 = vmatmul.mubr.msk.bf16.gmra.mrb[4].mxu0 %vm522_vm2, %v4974_v26 }
  0xae   : > { %4215 = vmatprep.mubr.msk.bf16.mxu0 %vm4654_vm0, %v4653_v1  ;;  %v5269_v34 = vmul.u32.u64.low 4042322161, %v2023_v62  ;;  %v5270_v36 = vmul.u32.u64.high 4042322161, %v2023_v62, %v5269_v34 }
  0xb2   : > { %4064 = vmatmul.mubr.msk.bf16.gmra.mrb[8].mxu1 %vm522_vm2, %v4758_v24 }
  0xb3   : > { %4067 = vmatprep.mubr.msk.bf16.mxu1 %vm4654_vm0, %v4653_v1 }
  0xb5   : > { %4216 = vmatmul.mubr.msk.bf16.gmra.mrb[8].mxu0 %vm522_vm2, %v4977_v42  ;;  %v2020_v42 = vadd.s32 16, %v5210_v10 }
  0xb6   : > { %4219 = vmatprep.mubr.msk.bf16.mxu0 %vm4654_vm0, %v4653_v1 }
  0xba   : > { %4068 = vmatmul.mubr.msk.bf16.gmra.mrb[12].mxu1 %vm522_vm2, %v4778_v39  ;;  %v5213_v24 = vmul.u32.u64.low 4042322161, %v5210_v10  ;;  %v5214_v39 = vmul.u32.u64.high 4042322161, %v5210_v10, %v5213_v24 }
  0xbb   : > { %4071 = vmatprep.mubr.msk.bf16.mxu1 %vm4654_vm0, %v4653_v1 }
  0xbc   : > { %v2058_v58 = vshrl.u32 %v5214_v39, 8  ;;  %v2024_v39 = vadd.s32 48, %v5210_v10 }
  0xbd   : > { %4220 = vmatmul.mubr.msk.bf16.gmra.mrb[12].mxu0 %vm522_vm2, %v4980_v54 }
  0xbe   : > { %4223 = vmatprep.mubr.msk.bf16.mxu0 %vm4654_vm0, %v4653_v1  ;;  %v2059_v4 = vmul.u32 272, %v2058_v58  ;;  %v2113_v58 = vshrl.u32 %v5270_v36, 8 }
  0xc0   : > { %v2060_v54 = vsub.s32 %v5210_v10, %v2059_v4 }
  0xc2   : > { %4072 = vmatmul.mubr.msk.bf16.gmra.mrb[16].mxu1 %vm522_vm2, %v4804_v53  ;;  %v2019_v53 = vadd.s32 8, %v5210_v10  ;;  %vm2426_vm4 = vcmp.ne.s32.totalorder %v2060_v54, 0  ;;  %vm2460_vm5 = vcmp.lt.s32.totalorder %v2060_v54, 0  ;;  %v2528_v48 = vadd.s32 272, %v2060_v54 }
  0xc3   : > { %4075 = vmatprep.mubr.msk.bf16.mxu1 %vm4654_vm0, %v4653_v1  ;;  %vm2494_vm6 = vmand %vm2460_vm5, %vm2426_vm4 }
  0xc4   : > { %v5243_v2 = vsel %vm2494_vm6, %v2528_v48, %v2060_v54  ;;  %v2114_v48 = vmul.u32 272, %v2113_v58 }
  0xc5   : > { %4224 = vmatmul.mubr.msk.bf16.gmra.mrb[16].mxu0 %vm522_vm2, %v4984_v5  ;;  %v2597_v56 = vsub.s32 0, %v5243_v2  ;;  %vm2596_vm6 = vcmp.lt.s32.totalorder %v5243_v2, 0 }
  0xc6   : > { %4227 = vmatprep.mubr.msk.bf16.mxu0 %vm4654_vm0, %v4653_v1 }
  0xc7   : > { %v3682_v12 = vmin.u32 %v2597_v56, %v5243_v2 }
  0xc9   : > { %v5261_v25 = vmul.u32.u64.low 4042322161, %v3682_v12  ;;  %v5262_v28 = vmul.u32.u64.high 4042322161, %v3682_v12, %v5261_v25 }
  0xca   : > { %4076 = vmatmul.mubr.msk.bf16.gmra.mrb[20].mxu1 %vm522_vm2, %v4821_v63 }
  0xcb   : > { %4079 = vmatprep.mubr.msk.bf16.mxu1 %vm4654_vm0, %v4653_v1 }
  0xcd   : > { %4228 = vmatmul.mubr.msk.bf16.gmra.mrb[20].mxu0 %vm522_vm2, %v4987_v41 }
  0xce   : > { %4231 = vmatprep.mubr.msk.bf16.mxu0 %vm4654_vm0, %v4653_v1 }
  0xd2   : > { %4080 = vmatmul.mubr.msk.bf16.gmra.mrb[24].mxu1 %vm522_vm2, %v4870_v35  ;;  %v5217_v63 = vmul.u32.u64.low 4042322161, %v2019_v53  ;;  %v5218_v35 = vmul.u32.u64.high 4042322161, %v2019_v53, %v5217_v63 }
  0xd3   : > { %4083 = vmatprep.mubr.msk.bf16.mxu1 %vm4654_vm0, %v4653_v1 }
  0xd4   : > { %v2069_v26 = vshrl.u32 %v5218_v35, 8 }
  0xd5   : > { %4232 = vmatmul.mubr.msk.bf16.gmra.mrb[24].mxu0 %vm522_vm2, %v5004_v32  ;;  %v2021_v32 = vadd.s32 24, %v5210_v10 }
  0xd6   : > { %4235 = vmatprep.mubr.msk.bf16.mxu0 %vm4654_vm0, %v4653_v1  ;;  %v2070_v5 = vmul.u32 272, %v2069_v26  ;;  %v5296_v4 = vmul.u32.u64.low 4042322161, %v2024_v39  ;;  %v5297_v26 = vmul.u32.u64.high 4042322161, %v2024_v39, %v5296_v4 }
  0xd7   : > { %v5238_v50 = vmul.u32.u64.low 4042322161, %v2021_v32  ;;  %v5239_v51 = vmul.u32.u64.high 4042322161, %v2021_v32, %v5238_v50 }
  0xd8   : > { %v2124_v56 = vshrl.u32 %v5297_v26, 8 }
  0xd9   : > { %v2091_v17 = vshrl.u32 %v5239_v51, 8 }
  0xda   : > { %4084 = vmatmul.mubr.msk.bf16.gmra.mrb[28].mxu1 %vm522_vm2, %v4912_v7  ;;  %v5232_v7 = vmul.u32.u64.low 4042322161, %v2020_v42  ;;  %v5233_v41 = vmul.u32.u64.high 4042322161, %v2020_v42, %v5232_v7 }
  0xdb   : > { %4087 = vmatprep.mubr.msk.bf16.mxu1 %vm4654_vm0, %v4653_v1  ;;  %v2092_v8 = vmul.u32 272, %v2091_v17 }
  0xdd   : > { %4236 = vmatmul.mubr.msk.bf16.gmra.mrb[28].mxu0 %vm522_vm2, %v5020_v46  ;;  %v2071_v46 = vsub.s32 %v2019_v53, %v2070_v5  ;;  %v2093_v60 = vsub.s32 %v2021_v32, %v2092_v8 }
  0xde   : > { %4239 = vmatprep.mubr.msk.bf16.mxu0 %vm4654_vm0, %v4653_v1 }
  0xdf   : > { %vm2427_vm7 = vcmp.ne.s32.totalorder %v2071_v46, 0  ;;  %vm2461_vm8 = vcmp.lt.s32.totalorder %v2071_v46, 0  ;;  %v2529_v55 = vadd.s32 272, %v2071_v46  ;;  %vm2429_vm13 = vcmp.ne.s32.totalorder %v2093_v60, 0 }
  0xe0   : > { %vm2495_vm9 = vmand %vm2461_vm8, %vm2427_vm7  ;;  %vm2463_vm14 = vcmp.lt.s32.totalorder %v2093_v60, 0  ;;  %v2531_v53 = vadd.s32 272, %v2093_v60 }
  0xe1   : > { %v5251_v57 = vsel %vm2495_vm9, %v2529_v55, %v2071_v46  ;;  %vm2497_vm15 = vmand %vm2463_vm14, %vm2429_vm13  ;;  %v2115_v55 = vsub.s32 %v2023_v62, %v2114_v48 }
  0xe2   : > { %4088 = vmatmul.mubr.msk.bf16.gmra.mrb[32].mxu1 %vm522_vm2, %v4935_v27  ;;  %v2080_v27 = vshrl.u32 %v5233_v41, 8  ;;  %v2608_v3 = vsub.s32 0, %v5251_v57 }
  0xe3   : > { %4091 = vmatprep.mubr.msk.bf16.mxu1 %vm4654_vm0, %v4653_v1  ;;  %vm2431_vm7 = vcmp.ne.s32.totalorder %v2115_v55, 0  ;;  %vm2465_vm8 = vcmp.lt.s32.totalorder %v2115_v55, 0 }
  0xe4   : > { %v2081_v6 = vmul.u32 272, %v2080_v27  ;;  %v5265_v14 = vmin.u32 %v2608_v3, %v5251_v57  ;;  %v1561_v27 = vrot.slane %v5086_v29, 1 }
  0xe5   : > { %4240 = vmatmul.mubr.msk.bf16.gmra.mrb[32].mxu0 %vm522_vm2, %v5037_v52  ;;  %v5257_v52 = vmul.u32.u64.low 4042322161, %v2022_v59  ;;  %v5258_v16 = vmul.u32.u64.high 4042322161, %v2022_v59, %v5257_v52 }
  0xe6   : > { %4243 = vmatprep.mubr.msk.bf16.mxu0 %vm4654_vm0, %v4653_v1  ;;  %v2082_v19 = vsub.s32 %v2020_v42, %v2081_v6  ;;  %v5301_v42 = vsel %vm2497_vm15, %v2531_v53, %v2093_v60  ;;  %v2125_v6 = vmul.u32 272, %v2124_v56  ;;  %v1563_v60 = vrot.slane %v5104_v49, 1 }
  0xe7   : > { %v2102_v38 = vshrl.u32 %v5258_v16, 8  ;;  %v2630_v32 = vsub.s32 0, %v5301_v42 }
  0xe8   : > { %vm2428_vm10 = vcmp.ne.s32.totalorder %v2082_v19, 0  ;;  %vm2462_vm11 = vcmp.lt.s32.totalorder %v2082_v19, 0  ;;  %v2530_v11 = vadd.s32 272, %v2082_v19  ;;  %v2126_v62 = vsub.s32 %v2024_v39, %v2125_v6 }
  0xe9   : > { %vm2496_vm12 = vmand %vm2462_vm11, %vm2428_vm10  ;;  %v2103_v24 = vmul.u32 272, %v2102_v38  ;;  %v5320_v51 = vmin.u32 %v2630_v32, %v5301_v42  ;;  %v1564_v48 = vsel %vm1533_vm3, %v1561_v27, %v1563_v60  ;;  %v5439_v6 = vadd.s32 88, %v5210_v10 }
  0xea   : > { %4092 = vmatmul.mubr.msk.bf16.gmra.mrb[36].mxu1 %vm522_vm2, %v4971_v15  ;;  %v5280_v15 = vmul.u32.u64.low 4042322161, %v5265_v14  ;;  %v5281_v47 = vmul.u32.u64.high 4042322161, %v5265_v14, %v5280_v15  ;;  %v5283_v40 = vsel %vm2496_vm12, %v2530_v11, %v2082_v19  ;;  %vm2432_vm9 = vcmp.ne.s32.totalorder %v2126_v62, 0  ;;  %vm2499_vm11 = vmand %vm2465_vm8, %vm2431_vm7 }
  0xeb   : > { %4095 = vmatprep.mubr.msk.bf16.mxu1 %vm4654_vm0, %v4653_v1  ;;  %v2619_v9 = vsub.s32 0, %v5283_v40  ;;  %v2104_v35 = vsub.s32 %v2022_v59, %v2103_v24  ;;  %v5335_v17 = vmul.u32.u64.low 4042322161, %v5320_v51  ;;  %v5336_v52 = vmul.u32.u64.high 4042322161, %v5320_v51, %v5335_v17 }
  0xec   : > { %v2613_v41 = vshrl.u32 %v5281_v47, 4  ;;  %vm2466_vm10 = vcmp.lt.s32.totalorder %v2126_v62, 0  ;;  %vm2607_vm12 = vcmp.lt.s32.totalorder %v5251_v57, 0  ;;  %v5359_v11 = vadd.s32 64, %v5210_v10 }
  0xed   : > { %4244 = vmatmul.mubr.msk.bf16.gmra.mrb[36].mxu0 %vm522_vm2, %v5054_v61  ;;  %v5288_v63 = vmin.u32 %v2619_v9, %v5283_v40  ;;  %v2602_v61 = vshrl.u32 %v5262_v28, 4  ;;  %vm2430_vm1 = vcmp.ne.s32.totalorder %v2104_v35, 0  ;;  %vm2464_vm4 = vcmp.lt.s32.totalorder %v2104_v35, 0  ;;  %vm2500_vm13 = vmand %vm2466_vm10, %vm2432_vm9 }
  0xee   : > { %4247 = vmatprep.mubr.msk.bf16.mxu0 %vm4654_vm0, %v4653_v1  ;;  %vm2498_vm5 = vmand %vm2464_vm4, %vm2430_vm1  ;;  %v2614_v50 = vmul.u32 17, %v2613_v41  ;;  %v2533_v28 = vadd.s32 272, %v2115_v55  ;;  %v5367_v15 = vadd.s32 72, %v5210_v10  ;;  %vm2629_vm10 = vcmp.lt.s32.totalorder %v5301_v42, 0 }
  0xef   : > { %v5307_v54 = vmul.u32.u64.low 4042322161, %v5288_v63  ;;  %v5308_v5 = vmul.u32.u64.high 4042322161, %v5288_v63, %v5307_v54  ;;  %v2603_v7 = vmul.u32 17, %v2602_v61 }
  0xf0   : > { %v2615_v3 = vsub.s32 %v5265_v14, %v2614_v50  ;;  %v5373_v47 = vsel %vm2499_vm11, %v2533_v28, %v2115_v55  ;;  %v5385_v58 = vmul.u32.u64.low 4042322161, %v5359_v11  ;;  %v5386_v4 = vmul.u32.u64.high 4042322161, %v5359_v11, %v5385_v58 }
  0xf1   : > { %v2624_v59 = vshrl.u32 %v5308_v5, 4  ;;  %v2652_v54 = vsub.s32 0, %v5373_v47 }
  0xf2   : > { %4096 = vmatmul.mubr.msk.bf16.gmra.mrb[40].mxu1 %vm522_vm2, %v5001_v31  ;;  %v1557_v31 = vrot.slane %v4881_v43, 1  ;;  %v2604_v43 = vsub.s32 %v3682_v12, %v2603_v7  ;;  %v2616_v8 = vsub.s32 0, %v2615_v3 }
  0xf3   : > { %4099 = vmatprep.mubr.msk.bf16.mxu1 %vm4654_vm0, %v4653_v1  ;;  %v2625_v25 = vmul.u32 17, %v2624_v59  ;;  %v5394_v5 = vmul.u32.u64.low 4042322161, %v5367_v15  ;;  %v5395_v7 = vmul.u32.u64.high 4042322161, %v5367_v15, %v5394_v5  ;;  %v5420_v55 = vmin.u32 %v2652_v54, %v5373_v47 }
  0xf4   : > { %v1558_v46 = vsel %vm1533_vm3, %v1555_v18, %v1557_v31  ;;  %v2025_v18 = vadd.s32 56, %v5210_v10  ;;  %v2605_v12 = vsub.s32 0, %v2604_v43  ;;  %v5375_v24 = vsel %vm2607_vm12, %v2616_v8, %v2615_v3 }
  0xf5   : > { %4248 = vmatmul.mubr.msk.bf16.gmra.mrb[40].mxu0 %vm522_vm2, %v5078_v21  ;;  %v2532_v21 = vadd.s32 272, %v2104_v35  ;;  %v2626_v38 = vsub.s32 %v5288_v63, %v2625_v25  ;;  %v2635_v63 = vshrl.u32 %v5336_v52, 4  ;;  %vm2971_vm8 = vcmp.ne.s32.totalorder %v5375_v24, 0 }
  0xf6   : > { %4251 = vmatprep.mubr.msk.bf16.mxu0 %vm4654_vm0, %v4653_v1  ;;  %v5345_v2 = vsel %vm2596_vm6, %v2605_v12, %v2604_v43  ;;  %vm2618_vm6 = vcmp.lt.s32.totalorder %v5283_v40, 0  ;;  %v5414_v43 = vadd.s32 80, %v5210_v10  ;;  %vm3005_vm9 = vcmp.lt.s32.totalorder %v5375_v24, 0 }
  0xf7   : > { %v5324_v37 = vsel %vm2498_vm5, %v2532_v21, %v2104_v35  ;;  %vm2970_vm14 = vcmp.ne.s32.totalorder %v5345_v2, 0  ;;  %vm3004_vm15 = vcmp.lt.s32.totalorder %v5345_v2, 0  ;;  %v5371_v57 = vadd.s32 17, %v5345_v2 }
  0xf8   : > { %v2641_v16 = vsub.s32 0, %v5324_v37  ;;  %vm5388_vm1 = vmand %vm3004_vm15, %vm2970_vm14  ;;  %v1565_v21 = vrot.slane %v5119_v13, 1  ;;  %v2636_v50 = vmul.u32 17, %v2635_v63  ;;  %v2146_v12 = vshrl.u32 %v5386_v4, 8 }
  0xf9   : > { %v2157_v3 = vshrl.u32 %v5395_v7, 8  ;;  %v5444_v40 = vmul.u32.u64.low 4042322161, %v5414_v43  ;;  %v5445_v52 = vmul.u32.u64.high 4042322161, %v5414_v43, %v5444_v40 }
  0xfa   : > { %4100 = vmatmul.mubr.msk.bf16.gmra.mrb[44].mxu1 %vm522_vm2, %v5017_v44  ;;  %v1559_v44 = vrot.slane %v5061_v23, 1  ;;  %v5339_v23 = vmul.u32.u64.low 4042322161, %v2025_v18  ;;  %v5340_v19 = vmul.u32.u64.high 4042322161, %v2025_v18, %v5339_v23  ;;  %v5351_v34 = vmin.u32 %v2641_v16, %v5324_v37 }
  0xfb   : > { %4103 = vmatprep.mubr.msk.bf16.mxu1 %vm4654_vm0, %v4653_v1  ;;  %v2637_v16 = vsub.s32 %v5320_v51, %v2636_v50  ;;  %v1566_v58 = vsel %vm1533_vm3, %v1563_v60, %v1565_v21  ;;  %v2031_v40 = vadd.s32 104, %v5210_v10 }
  0xfc   : > { %v1560_v29 = vsel %vm1533_vm3, %v1557_v31, %v1559_v44  ;;  %v1562_v14 = vsel %vm1533_vm3, %v1559_v44, %v1561_v27  ;;  %v2135_v36 = vshrl.u32 %v5340_v19, 8  ;;  %v2627_v31 = vsub.s32 0, %v2626_v38 }
  0xfd   : > { %4252 = vmatmul.mubr.msk.bf16.gmra.mrb[44].mxu0 %vm522_vm2, %v1558_v46  ;;  %v5378_v39 = vmul.u32.u64.low 4042322161, %v5351_v34  ;;  %v5379_v53 = vmul.u32.u64.high 4042322161, %v5351_v34, %v5378_v39  ;;  %v3106_v46 = vsel %vm5388_vm1, %v5371_v57, %v5345_v2  ;;  %v2147_v19 = vmul.u32 272, %v2146_v12 }
  0xfe   : > { %4255 = vmatprep.mubr.msk.bf16.mxu0 %vm4654_vm0, %v4653_v1  ;;  %v2136_v9 = vmul.u32 272, %v2135_v36  ;;  %v5430_v44 = vsel %vm2618_vm6, %v2627_v31, %v2626_v38  ;;  %v2158_v2 = vmul.u32 272, %v2157_v3  ;;  %v2168_v36 = vshrl.u32 %v5445_v52, 8 }
  0xff   : > { %v2646_v59 = vshrl.u32 %v5379_v53, 4  ;;  %vm2972_vm11 = vcmp.ne.s32.totalorder %v5430_v44, 0  ;;  %v2148_v51 = vsub.s32 %v5359_v11, %v2147_v19  ;;  %vm3006_vm12 = vcmp.lt.s32.totalorder %v5430_v44, 0 }
 0x100   : > { %v2137_v35 = vsub.s32 %v2025_v18, %v2136_v9  ;;  %v5426_v18 = vadd.s32 17, %v5375_v24  ;;  %v2638_v38 = vsub.s32 0, %v2637_v16  ;;  %v3074_v9 = vadd.s32 17, %v5430_v44 }
 0x101   : > { %v2647_v28 = vmul.u32 17, %v2646_v59  ;;  %vm2434_vm14 = vcmp.ne.s32.totalorder %v2148_v51, 0  ;;  %vm2468_vm15 = vcmp.lt.s32.totalorder %v2148_v51, 0  ;;  %v2536_v57 = vadd.s32 272, %v2148_v51 }
 0x102   : > { %4104 = vmatmul.mubr.msk.bf16.gmra.mrb[48].mxu1 %vm522_vm2, %v5034_v30  ;;  %v2534_v30 = vadd.s32 272, %v2126_v62  ;;  %vm2433_vm4 = vcmp.ne.s32.totalorder %v2137_v35, 0  ;;  %vm2467_vm5 = vcmp.lt.s32.totalorder %v2137_v35, 0  ;;  %v2535_v32 = vadd.s32 272, %v2137_v35  ;;  %vm2502_vm1 = vmand %vm2468_vm15, %vm2434_vm14 }
 0x103   : > { %4107 = vmatprep.mubr.msk.bf16.mxu1 %vm4654_vm0, %v4653_v1  ;;  %vm2501_vm7 = vmand %vm2467_vm5, %vm2433_vm4  ;;  %v2648_v39 = vsub.s32 %v5351_v34, %v2647_v28  ;;  %v5485_v53 = vsel %vm2502_vm1, %v2536_v57, %v2148_v51  ;;  %v2169_v63 = vmul.u32 272, %v2168_v36  ;;  %v5513_v60 = vsel %vm2629_vm10, %v2638_v38, %v2637_v16 }
 0x104   : > { %v5381_v61 = vsel %vm2500_vm13, %v2534_v30, %v2126_v62  ;;  %v5422_v56 = vsel %vm2501_vm7, %v2535_v32, %v2137_v35  ;;  %v5449_v62 = vmul.u32.u64.low 4042322161, %v5420_v55  ;;  %v5450_v23 = vmul.u32.u64.high 4042322161, %v5420_v55, %v5449_v62  ;;  %vm5479_vm13 = vmand %vm3005_vm9, %vm2971_vm8 }
 0x105   : > { %4256 = vmatmul.mubr.msk.bf16.gmra.mrb[48].mxu0 %vm522_vm2, %v1560_v29  ;;  %v2663_v41 = vsub.s32 0, %v5381_v61  ;;  %v2674_v17 = vsub.s32 0, %v5422_v56  ;;  %v2159_v30 = vsub.s32 %v5367_v15, %v2158_v2  ;;  %vm5497_vm7 = vmand %vm3006_vm12, %vm2972_vm11  ;;  %vm3140_vm8 = vcmp.lt.s32.totalorder %v3106_v46, 16 }
 0x106   : > { %4259 = vmatprep.mubr.msk.bf16.mxu0 %vm4654_vm0, %v4653_v1  ;;  %v3107_v49 = vsel %vm5479_vm13, %v5426_v18, %v5375_v24  ;;  %v2685_v54 = vsub.s32 0, %v5485_v53  ;;  %v2657_v5 = vshrl.u32 %v5450_v23, 4  ;;  %v3108_v24 = vsel %vm5497_vm7, %v3074_v9, %v5430_v44 }
 0x107   : > { %v5433_v27 = vmin.u32 %v2663_v41, %v5381_v61  ;;  %vm2435_vm4 = vcmp.ne.s32.totalorder %v2159_v30, 0  ;;  %vm2469_vm5 = vcmp.lt.s32.totalorder %v2159_v30, 0  ;;  %v2537_v15 = vadd.s32 272, %v2159_v30 }
 0x108   : > { %vm2503_vm6 = vmand %vm2469_vm5, %vm2435_vm4  ;;  %v2170_v41 = vsub.s32 %v5414_v43, %v2169_v63  ;;  %vm5535_vm9 = vcmp.lt.s32.totalorder %v3107_v49, 16  ;;  %vm2973_vm10 = vcmp.ne.s32.totalorder %v5513_v60, 0  ;;  %vm2640_vm11 = vcmp.lt.s32.totalorder %v5324_v37, 0 }
 0x109   : > { %v5456_v29 = vmul.u32.u64.low 4042322161, %v5433_v27  ;;  %v5457_v25 = vmul.u32.u64.high 4042322161, %v5433_v27, %v5456_v29  ;;  %v5505_v31 = vsel %vm2503_vm6, %v2537_v15, %v2159_v30  ;;  %v5545_v13 = vmin.u32 %v2685_v54, %v5485_v53 }
 0x10a   : > { %4108 = vmatmul.mubr.msk.bf16.gmra.mrb[52].mxu1 %vm522_vm2, %v5051_v45  ;;  %v1567_v45 = vrot.slane %v5133_v33, 1  ;;  %v2696_v7 = vsub.s32 0, %v5505_v31  ;;  %vm2436_vm12 = vcmp.ne.s32.totalorder %v2170_v41, 0  ;;  %vm2470_vm13 = vcmp.lt.s32.totalorder %v2170_v41, 0 }
 0x10b   : > { %4111 = vmatprep.mubr.msk.bf16.mxu1 %vm4654_vm0, %v4653_v1  ;;  %vm5547_vm14 = vcmp.lt.s32.totalorder %v3108_v24, 16  ;;  %vm2504_vm15 = vmand %vm2470_vm13, %vm2436_vm12  ;;  %v2538_v37 = vadd.s32 272, %v2170_v41  ;;  %v2668_v18 = vshrl.u32 %v5457_v25, 4  ;;  %v2030_v59 = vadd.s32 96, %v5210_v10 }
 0x10c   : > { %v1568_v42 = vsel %vm1533_vm3, %v1565_v21, %v1567_v45  ;;  %vm3007_vm3 = vcmp.lt.s32.totalorder %v5513_v60, 0  ;;  %v3075_v21 = vadd.s32 17, %v5513_v60  ;;  %v2658_v45 = vmul.u32 17, %v2657_v5 }
 0x10d   : > { %4260 = vmatmul.mubr.msk.bf16.gmra.mrb[52].mxu0 %vm522_vm2, %v1562_v14  ;;  %v5463_v14 = vmul.u32.u64.low 4042322161, %v5439_v6  ;;  %v5464_v8 = vmul.u32.u64.high 4042322161, %v5439_v6, %v5463_v14  ;;  %v5553_v43 = vmin.u32 %v2696_v7, %v5505_v31  ;;  %v5571_v52 = vadd.s32 112, %v5210_v10 }
 0x10e   : > { %4263 = vmatprep.mubr.msk.bf16.mxu0 %vm4654_vm0, %v4653_v1  ;;  %v5590_v28 = vmul.u32.u64.low 4042322161, %v2030_v59  ;;  %v5591_v51 = vmul.u32.u64.high 4042322161, %v2030_v59, %v5590_v28  ;;  %v2669_v30 = vmul.u32 17, %v2668_v18  ;;  %v5617_v63 = vadd.s32 120, %v5210_v10 }
 0x10f   : > { %v2179_v35 = vshrl.u32 %v5464_v8, 8  ;;  %v5581_v23 = vmul.u32.u64.low 4042322161, %v5553_v43  ;;  %v5582_v19 = vmul.u32.u64.high 4042322161, %v5553_v43, %v5581_v23 }
 0x110   : > { %v5596_v14 = vmul.u32.u64.low 4042322161, %v2031_v40  ;;  %v5597_v8 = vmul.u32.u64.high 4042322161, %v2031_v40, %v5596_v14  ;;  %v5607_v9 = vmul.u32.u64.low 4042322161, %v5571_v52  ;;  %v5608_v15 = vmul.u32.u64.high 4042322161, %v5571_v52, %v5607_v9 }
 0x111   : > { %v2180_v32 = vmul.u32 272, %v2179_v35 }
 0x112   : > { %4112 = vmatmul.mubr.msk.bf16.gmra.mrb[56].mxu1 %vm522_vm2, %v5073_v20  ;;  %v5469_v20 = vmin.u32 %v2674_v17, %v5422_v56  ;;  %v5567_v17 = vsel %vm2504_vm15, %v2538_v37, %v2170_v41  ;;  %v2701_v41 = vshrl.u32 %v5582_v19, 4 }
 0x113   : > { %4115 = vmatprep.mubr.msk.bf16.mxu1 %vm4654_vm0, %v4653_v1  ;;  %v2181_v44 = vsub.s32 %v5439_v6, %v2180_v32  ;;  %v5574_v16 = vmul.u32.u64.low 4042322161, %v5545_v13  ;;  %v5575_v6 = vmul.u32.u64.high 4042322161, %v5545_v13, %v5574_v16  ;;  %v2707_v62 = vsub.s32 0, %v5567_v17 }
 0x114   : > { %v5502_v34 = vmul.u32.u64.low 4042322161, %v5469_v20  ;;  %v5503_v26 = vmul.u32.u64.high 4042322161, %v5469_v20, %v5502_v34  ;;  %v5647_v32 = vmul.u32.u64.low 4042322161, %v5617_v63  ;;  %v5648_v46 = vmul.u32.u64.high 4042322161, %v5617_v63, %v5647_v32 }
 0x115   : > { %4264 = vmatmul.mubr.msk.bf16.gmra.mrb[56].mxu0 %vm522_vm2, %v1564_v48  ;;  %v5533_v48 = vsel %vm3140_vm8, 1.0, %v4653_v1  ;;  %vm2437_vm1 = vcmp.ne.s32.totalorder %v2181_v44, 0  ;;  %vm2471_vm4 = vcmp.lt.s32.totalorder %v2181_v44, 0  ;;  %v2539_v29 = vadd.s32 272, %v2181_v44 }
 0x116   : > { %4267 = vmatprep.mubr.msk.bf16.mxu0 %vm4654_vm0, %v4653_v1  ;;  %v2679_v3 = vshrl.u32 %v5503_v26, 4  ;;  %v5588_v2 = vmin.u32 %v2707_v62, %v5567_v17  ;;  %vm2505_vm5 = vmand %vm2471_vm4, %vm2437_vm1  ;;  %v2201_v34 = vshrl.u32 %v5597_v8, 8  ;;  %v5627_v26 = vsel %vm5547_vm14, 1.0, %v4653_v1 }
 0x117   : > { %v5600_v11 = vsel %vm2505_vm5, %v2539_v29, %v2181_v44  ;;  %v2690_v7 = vshrl.u32 %v5575_v6, 4 }
 0x118   : > { %v2680_v36 = vmul.u32 17, %v2679_v3  ;;  %v5603_v38 = vmul.u32.u64.low 4042322161, %v5588_v2  ;;  %v5604_v57 = vmul.u32.u64.high 4042322161, %v5588_v2, %v5603_v38  ;;  %v2718_v4 = vsub.s32 0, %v5600_v11 }
 0x119   : > { %v2202_v24 = vmul.u32 272, %v2201_v34  ;;  %v2691_v18 = vmul.u32 17, %v2690_v7 }
 0x11a   : > { %4116 = vmatmul.mubr.msk.bf16.gmra.mrb[60].mxu1 %vm522_vm2, %v5098_v0  ;;  %v2649_v0 = vsub.s32 0, %v2648_v39  ;;  %v2681_v54 = vsub.s32 %v5469_v20, %v2680_v36  ;;  %v5658_v20 = vmin.u32 %v2718_v4, %v5600_v11  ;;  %v2712_v44 = vshrl.u32 %v5604_v57, 4 }
 0x11b   : > { %4119 = vmatprep.mubr.msk.bf16.mxu1 %vm4654_vm0, %v4653_v1  ;;  %v2203_v37 = vsub.s32 %v2031_v40, %v2202_v24  ;;  %v2702_v3 = vmul.u32 17, %v2701_v41  ;;  %v2692_v62 = vsub.s32 %v5545_v13, %v2691_v18  ;;  %v2038_v18 = vadd.s32 160, %v5210_v10 }
 0x11c   : > { %v5555_v50 = vsel %vm2640_vm11, %v2649_v0, %v2648_v39  ;;  %v2190_v39 = vshrl.u32 %v5591_v51, 8  ;;  %v2212_v0 = vshrl.u32 %v5608_v15, 8  ;;  %vm2673_vm11 = vcmp.lt.s32.totalorder %v5422_v56, 0 }
 0x11d   : > { %4268 = vmatmul.mubr.msk.bf16.gmra.mrb[60].mxu0 %vm522_vm2, %v1566_v58  ;;  %vm2974_vm6 = vcmp.ne.s32.totalorder %v5555_v50, 0  ;;  %vm3008_vm7 = vcmp.lt.s32.totalorder %v5555_v50, 0  ;;  %v5620_v35 = vadd.s32 17, %v5555_v50  ;;  %vm2473_vm1 = vcmp.lt.s32.totalorder %v2203_v37, 0 }
 0x11e   : > { %4271 = vmatprep.mubr.msk.bf16.mxu0 %vm4654_vm0, %v4653_v1  ;;  %vm5562_vm0 = vmand %vm3007_vm3, %vm2973_vm10  ;;  %vm2662_vm10 = vcmp.lt.s32.totalorder %v5381_v61, 0  ;;  %v2213_v12 = vmul.u32 272, %v2212_v0  ;;  %v5665_v16 = vmul.u32.u64.low 4042322161, %v5658_v20  ;;  %v5666_v6 = vmul.u32.u64.high 4042322161, %v5658_v20, %v5665_v16 }
 0x11f   : > { %v3109_v25 = vsel %vm5562_vm0, %v3075_v21, %v5513_v60  ;;  %vm5633_vm8 = vmand %vm3008_vm7, %vm2974_vm6  ;;  %v2670_v60 = vsub.s32 %v5433_v27, %v2669_v30  ;;  %v2682_v21 = vsub.s32 0, %v2681_v54  ;;  %vm2439_vm0 = vcmp.ne.s32.totalorder %v2203_v37, 0 }
 0x120   : > { %v2713_v23 = vmul.u32 17, %v2712_v44  ;;  %v2214_v29 = vsub.s32 %v5571_v52, %v2213_v12  ;;  %v2541_v51 = vadd.s32 272, %v2203_v37  ;;  %vm2684_vm6 = vcmp.lt.s32.totalorder %v5485_v53, 0  ;;  %vm2507_vm7 = vmand %vm2473_vm1, %vm2439_vm0 }
 0x121   : > { %v2671_v33 = vsub.s32 0, %v2670_v60  ;;  %v5670_v40 = vsel %vm2673_vm11, %v2682_v21, %v2681_v54  ;;  %v2693_v14 = vsub.s32 0, %v2692_v62  ;;  %v5718_v54 = vadd.s32 136, %v5210_v10 }
 0x122   : > { %4120 = vmatmul.mubr.msk.bf16.gmra.mrb[64].mxu1 %vm522_vm2, %v4930_v22  ;;  %v2659_v22 = vsub.s32 %v5420_v55, %v2658_v45  ;;  %v5613_v55 = vsel %vm5535_vm9, 1.0, %v4653_v1  ;;  %vm2651_vm9 = vcmp.lt.s32.totalorder %v5373_v47, 0  ;;  %v3110_v47 = vsel %vm5633_vm8, %v5620_v35, %v5555_v50 }
 0x123   : > { %v2672_v56 = vsel %vm2662_vm10, %v2671_v33, %v2670_v60  ;;  %v2714_v8 = vsub.s32 %v5588_v2, %v2713_v23  ;;  %vm2440_vm11 = vcmp.ne.s32.totalorder %v2214_v29, 0  ;;  %v3079_v36 = vadd.s32 17, %v5670_v40 }
 0x124   : > { %v2660_v58 = vsub.s32 0, %v2659_v22  ;;  %vm2976_vm4 = vcmp.ne.s32.totalorder %v2672_v56, 0  ;;  %vm3010_vm5 = vcmp.lt.s32.totalorder %v2672_v56, 0  ;;  %v3078_v13 = vadd.s32 17, %v2672_v56 }
 0x125   : > { %4272 = vmatmul.mubr.msk.bf16.gmra.mrb[64].mxu0 %vm522_vm2, %v1568_v42  ;;  %vm3143_vm2 = vcmp.lt.s32.totalorder %v3109_v25, 16  ;;  %v2191_v42 = vmul.u32 272, %v2190_v39  ;;  %v2703_v25 = vsub.s32 %v5553_v43, %v2702_v3  ;;  %v5701_v57 = vsel %vm2507_vm7, %v2541_v51, %v2203_v37 }
 0x126   : > { %v5641_v5 = vsel %vm3143_vm2, 1.0, %v4653_v1  ;;  %v5654_v27 = vsel %vm2651_vm9, %v2660_v58, %v2659_v22  ;;  %v2223_v22 = vshrl.u32 %v5648_v46, 8  ;;  %vm2977_vm2 = vcmp.ne.s32.totalorder %v5670_v40, 0 }
 0x127   : > { %v2192_v45 = vsub.s32 %v2030_v59, %v2191_v42  ;;  %vm2975_vm3 = vcmp.ne.s32.totalorder %v5654_v27, 0  ;;  %vm3009_vm14 = vcmp.lt.s32.totalorder %v5654_v27, 0  ;;  %v3077_v61 = vadd.s32 17, %v5654_v27 }
 0x128   : > { %vm3011_vm9 = vcmp.lt.s32.totalorder %v5670_v40, 0  ;;  %vm5691_vm10 = vmand %vm3009_vm14, %vm2975_vm3  ;;  %v2704_v38 = vsub.s32 0, %v2703_v25  ;;  %v2224_v9 = vmul.u32 272, %v2223_v22  ;;  %vm2695_vm3 = vcmp.lt.s32.totalorder %v5505_v31, 0 }
 0x129   : > { %vm2438_vm12 = vcmp.ne.s32.totalorder %v2192_v45, 0  ;;  %vm2472_vm13 = vcmp.lt.s32.totalorder %v2192_v45, 0  ;;  %v2540_v59 = vadd.s32 272, %v2192_v45  ;;  %v2723_v2 = vshrl.u32 %v5666_v6, 4 }
 0x12a   : > { %vm2506_vm15 = vmand %vm2472_vm13, %vm2438_vm12  ;;  %vm2474_vm12 = vcmp.lt.s32.totalorder %v2214_v29, 0  ;;  %v2542_v39 = vadd.s32 272, %v2214_v29  ;;  %v2034_v58 = vadd.s32 128, %v5210_v10  ;;  %v3111_v4 = vsel %vm5691_vm10, %v3077_v61, %v5654_v27 }
 0x12b   : > { %v5673_v19 = vsel %vm2506_vm15, %v2540_v59, %v2192_v45  ;;  %vm5696_vm13 = vmand %vm3010_vm5, %vm2976_vm4  ;;  %v5724_v7 = vsel %vm2684_vm6, %v2693_v14, %v2692_v62  ;;  %v2715_v41 = vsub.s32 0, %v2714_v8  ;;  %v2740_v42 = vsub.s32 0, %v5701_v57 }
 0x12c   : > { %v2729_v28 = vsub.s32 0, %v5673_v19  ;;  %vm5703_vm15 = vmand %vm3011_vm9, %vm2977_vm2  ;;  %v3112_v31 = vsel %vm5696_vm13, %v3078_v13, %v2672_v56  ;;  %v5730_v0 = vsel %vm2695_vm3, %v2704_v38, %v2703_v25  ;;  %vm2706_vm0 = vcmp.lt.s32.totalorder %v5567_v17, 0 }
 0x12d   : > { %vm2508_vm14 = vmand %vm2474_vm12, %vm2440_vm11  ;;  %v3113_v24 = vsel %vm5703_vm15, %v3079_v36, %v5670_v40  ;;  %v2225_v32 = vsub.s32 %v5617_v63, %v2224_v9  ;;  %vm5739_vm1 = vcmp.lt.s32.totalorder %v3110_v47, 16  ;;  %vm5743_vm4 = vcmp.lt.s32.totalorder %v3111_v4, 16 }
 0x12e   : > { %v5685_v43 = vmin.u32 %v2729_v28, %v5673_v19  ;;  %v2724_v27 = vmul.u32 17, %v2723_v2  ;;  %v5747_v33 = vsel %vm2508_vm14, %v2542_v39, %v2214_v29  ;;  %vm5752_vm5 = vcmp.lt.s32.totalorder %v3112_v31, 16 }
 0x12f   : > { %v5749_v21 = vmul.u32.u64.low 4042322161, %v2034_v58  ;;  %v5750_v17 = vmul.u32.u64.high 4042322161, %v2034_v58, %v5749_v21  ;;  %vm2978_vm8 = vcmp.ne.s32.totalorder %v5724_v7, 0  ;;  %vm3012_vm6 = vcmp.lt.s32.totalorder %v5724_v7, 0 }
 0x130   : > { %v5714_v34 = vmul.u32.u64.low 4042322161, %v5685_v43  ;;  %v5715_v60 = vmul.u32.u64.high 4042322161, %v5685_v43, %v5714_v34  ;;  %v5759_v50 = vmul.u32.u64.low 4042322161, %v5718_v54  ;;  %v5760_v35 = vmul.u32.u64.high 4042322161, %v5718_v54, %v5759_v50  ;;  %vm5779_vm12 = vmand %vm3012_vm6, %vm2978_vm8 }
 0x131   : > { %vm2979_vm7 = vcmp.ne.s32.totalorder %v5730_v0, 0  ;;  %vm3013_vm2 = vcmp.lt.s32.totalorder %v5730_v0, 0  ;;  %v5764_v49 = vsel %vm2706_vm0, %v2715_v41, %v2714_v8  ;;  %v5767_v47 = vmin.u32 %v2740_v42, %v5701_v57 }
 0x132   : > { %v2751_v45 = vsub.s32 0, %v5747_v33  ;;  %vm2441_vm9 = vcmp.ne.s32.totalorder %v2225_v32, 0  ;;  %vm2475_vm10 = vcmp.lt.s32.totalorder %v2225_v32, 0  ;;  %v5771_v37 = vadd.s32 144, %v5210_v10  ;;  %vm5788_vm13 = vmand %vm3013_vm2, %vm2979_vm7 }
 0x133   : > { %vm5773_vm11 = vcmp.lt.s32.totalorder %v3113_v24, 16  ;;  %v3080_v12 = vadd.s32 17, %v5724_v7  ;;  %v2725_v3 = vsub.s32 %v5658_v20, %v2724_v27  ;;  %v2234_v16 = vshrl.u32 %v5750_v17, 8  ;;  %vm2509_vm3 = vmand %vm2475_vm10, %vm2441_vm9 }
 0x134   : > { %v3081_v59 = vadd.s32 17, %v5730_v0  ;;  %vm2980_vm15 = vcmp.ne.s32.totalorder %v5764_v49, 0  ;;  %v2734_v56 = vshrl.u32 %v5715_v60, 4  ;;  %v2543_v40 = vadd.s32 272, %v2225_v32 }
 0x135   : > { %v5796_v62 = vmul.u32.u64.low 4042322161, %v5767_v47  ;;  %v5797_v23 = vmul.u32.u64.high 4042322161, %v5767_v47, %v5796_v62  ;;  %v2235_v20 = vmul.u32 272, %v2234_v16  ;;  %v2245_v29 = vshrl.u32 %v5760_v35, 8 }
 0x136   : > { %vm3014_vm14 = vcmp.lt.s32.totalorder %v5764_v49, 0  ;;  %v5803_v25 = vmin.u32 %v2751_v45, %v5747_v33  ;;  %v5806_v28 = vmul.u32.u64.low 4042322161, %v5771_v37  ;;  %v5807_v51 = vmul.u32.u64.high 4042322161, %v5771_v37, %v5806_v28 }
 0x137   : > { %v3114_v22 = vsel %vm5779_vm12, %v3080_v12, %v5724_v7  ;;  %vm2717_vm0 = vcmp.lt.s32.totalorder %v5600_v11, 0  ;;  %v2726_v61 = vsub.s32 0, %v2725_v3  ;;  %v2236_v13 = vsub.s32 %v2034_v58, %v2235_v20  ;;  %vm5821_vm8 = vmand %vm3014_vm14, %vm2980_vm15 }
 0x138   : > { %v3115_v52 = vsel %vm5788_vm13, %v3081_v59, %v5730_v0  ;;  %v3082_v14 = vadd.s32 17, %v5764_v49  ;;  %v2735_v8 = vmul.u32 17, %v2734_v56  ;;  %v5817_v30 = vsel %vm2509_vm3, %v2543_v40, %v2225_v32 }
 0x139   : > { %vm2442_vm6 = vcmp.ne.s32.totalorder %v2236_v13, 0  ;;  %vm2476_vm7 = vcmp.lt.s32.totalorder %v2236_v13, 0  ;;  %v2544_v38 = vadd.s32 272, %v2236_v13  ;;  %v2246_v9 = vmul.u32 272, %v2245_v29 }
 0x13a   : > { %v5828_v15 = vsel %vm5739_vm1, 1.0, %v4653_v1  ;;  %v5833_v2 = vsel %vm5743_vm4, 1.0, %v4653_v1  ;;  %v5836_v39 = vmul.u32.u64.low 4042322161, %v5803_v25  ;;  %v5837_v58 = vmul.u32.u64.high 4042322161, %v5803_v25, %v5836_v39  ;;  %vm2510_vm2 = vmand %vm2476_vm7, %vm2442_vm6 }
 0x13b   : > { %v5842_v4 = vsel %vm5752_vm5, 1.0, %v4653_v1  ;;  %v2727_v34 = vsel %vm2717_vm0, %v2726_v61, %v2725_v3  ;;  %v2762_v60 = vsub.s32 0, %v5817_v30  ;;  %v5847_v31 = vsel %vm2510_vm2, %v2544_v38, %v2236_v13 }
 0x13c   : > { %v5852_v7 = vsel %vm5773_vm11, 1.0, %v4653_v1  ;;  %vm5854_vm1 = vcmp.lt.s32.totalorder %v3114_v22, 16  ;;  %vm5858_vm4 = vcmp.lt.s32.totalorder %v3115_v52, 16  ;;  %v2773_v11 = vsub.s32 0, %v5847_v31 }
 0x13d   : > { %v3116_v24 = vsel %vm5821_vm8, %v3082_v14, %v5764_v49  ;;  %v2736_v0 = vsub.s32 %v5685_v43, %v2735_v8  ;;  %v2745_v32 = vshrl.u32 %v5797_v23, 4  ;;  %v2247_v53 = vsub.s32 %v5718_v54, %v2246_v9 }
 0x13e   : > { %vm2981_vm5 = vcmp.ne.s32.totalorder %v2727_v34, 0  ;;  %vm3015_vm9 = vcmp.lt.s32.totalorder %v2727_v34, 0  ;;  %v2256_v46 = vshrl.u32 %v5807_v51, 8  ;;  %v2037_v27 = vadd.s32 152, %v5210_v10 }
 0x13f   : > { %v5872_v21 = vmin.u32 %v2762_v60, %v5817_v30  ;;  %v5875_v17 = vmin.u32 %v2773_v11, %v5847_v31  ;;  %vm2443_vm10 = vcmp.ne.s32.totalorder %v2247_v53, 0  ;;  %vm2477_vm11 = vcmp.lt.s32.totalorder %v2247_v53, 0  ;;  %vm5882_vm3 = vmand %vm3015_vm9, %vm2981_vm5 }
 0x140   : > { %vm5877_vm12 = vcmp.lt.s32.totalorder %v3116_v24, 16  ;;  %v3083_v63 = vadd.s32 17, %v2727_v34  ;;  %vm2728_vm13 = vcmp.lt.s32.totalorder %v5673_v19, 0  ;;  %vm2511_vm15 = vmand %vm2477_vm11, %vm2443_vm10  ;;  %v2545_v54 = vadd.s32 272, %v2247_v53 }
 0x141   : > { %v2737_v35 = vsub.s32 0, %v2736_v0  ;;  %v2746_v49 = vmul.u32 17, %v2745_v32  ;;  %v2257_v45 = vmul.u32 272, %v2256_v46  ;;  %v2756_v44 = vshrl.u32 %v5837_v58, 4 }
 0x142   : > { %v5888_v12 = vsel %vm2511_vm15, %v2545_v54, %v2247_v53  ;;  %v5890_v3 = vmul.u32.u64.low 4042322161, %v2037_v27  ;;  %v5891_v16 = vmul.u32.u64.high 4042322161, %v2037_v27, %v5890_v3  ;;  %v5904_v62 = vsel %vm5854_vm1, 1.0, %v4653_v1 }
 0x143   : > { %v5894_v6 = vmul.u32.u64.low 4042322161, %v5872_v21  ;;  %v5895_v59 = vmul.u32.u64.high 4042322161, %v5872_v21, %v5894_v6  ;;  %v5898_v56 = vmul.u32.u64.low 4042322161, %v5875_v17  ;;  %v5899_v40 = vmul.u32.u64.high 4042322161, %v5875_v17, %v5898_v56 }
 0x144   : > { %v5909_v23 = vsel %vm5858_vm4, 1.0, %v4653_v1  ;;  %v3117_v20 = vsel %vm5882_vm3, %v3083_v63, %v2727_v34  ;;  %v2784_v29 = vsub.s32 0, %v5888_v12  ;;  %v5917_v28 = vsel %vm5877_vm12, 1.0, %v4653_v1 }
 0x145   : > { %v2258_v51 = vsub.s32 %v5771_v37, %v2257_v45  ;;  %v5921_v22 = vadd.s32 168, %v5210_v10  ;;  %v5924_v61 = vadd.s32 176, %v5210_v10  ;;  %v5928_v13 = vsel %vm2728_vm13, %v2737_v35, %v2736_v0 }
 0x146   : > { %vm2739_vm14 = vcmp.lt.s32.totalorder %v5701_v57, 0  ;;  %v2267_v52 = vshrl.u32 %v5891_v16, 8  ;;  %v5932_v14 = vmul.u32.u64.low 4042322161, %v2038_v18  ;;  %v5933_v8 = vmul.u32.u64.high 4042322161, %v2038_v18, %v5932_v14 }
 0x147   : > { %vm5935_vm0 = vcmp.lt.s32.totalorder %v3117_v20, 16  ;;  %v2747_v37 = vsub.s32 %v5767_v47, %v2746_v49  ;;  %v2757_v38 = vmul.u32 17, %v2756_v44  ;;  %v5941_v9 = vadd.s32 184, %v5210_v10 }
 0x148   : > { %v5944_v19 = vmin.u32 %v2784_v29, %v5888_v12  ;;  %vm2444_vm8 = vcmp.ne.s32.totalorder %v2258_v51, 0  ;;  %vm2478_vm6 = vcmp.lt.s32.totalorder %v2258_v51, 0  ;;  %v2546_v39 = vadd.s32 272, %v2258_v51 }
 0x149   : > { %vm2982_vm7 = vcmp.ne.s32.totalorder %v5928_v13, 0  ;;  %vm2512_vm2 = vmand %vm2478_vm6, %vm2444_vm8  ;;  %v2268_v58 = vmul.u32 272, %v2267_v52  ;;  %v5948_v34 = vmul.u32.u64.low 4042322161, %v5921_v22  ;;  %v5949_v60 = vmul.u32.u64.high 4042322161, %v5921_v22, %v5948_v34 }
 0x14a   : > { %v5951_v41 = vsel %vm2512_vm2, %v2546_v39, %v2258_v51  ;;  %v2278_v47 = vshrl.u32 %v5933_v8, 8  ;;  %v5955_v42 = vmul.u32.u64.low 4042322161, %v5924_v61  ;;  %v5956_v11 = vmul.u32.u64.high 4042322161, %v5924_v61, %v5955_v42 }
 0x14b   : > { %vm3016_vm1 = vcmp.lt.s32.totalorder %v5928_v13, 0  ;;  %v2767_v24 = vshrl.u32 %v5895_v59, 4  ;;  %v2778_v0 = vshrl.u32 %v5899_v40, 4  ;;  %v2795_v32 = vsub.s32 0, %v5951_v41 }
 0x14c   : > { %v5963_v53 = vmul.u32.u64.low 4042322161, %v5944_v19  ;;  %v5964_v46 = vmul.u32.u64.high 4042322161, %v5944_v19, %v5963_v53  ;;  %v2269_v43 = vsub.s32 %v2037_v27, %v2268_v58  ;;  %v2279_v63 = vmul.u32 272, %v2278_v47  ;;  %vm5980_vm5 = vmand %vm3016_vm1, %vm2982_vm7 }
 0x14d   : > { %v3084_v54 = vadd.s32 17, %v5928_v13  ;;  %v2748_v50 = vsub.s32 0, %v2747_v37  ;;  %v5968_v35 = vmin.u32 %v2795_v32, %v5951_v41  ;;  %v2289_v49 = vshrl.u32 %v5949_v60, 8 }
 0x14e   : > { %v2758_v45 = vsub.s32 %v5803_v25, %v2757_v38  ;;  %vm2445_vm4 = vcmp.ne.s32.totalorder %v2269_v43, 0  ;;  %v5973_v44 = vmul.u32.u64.low 4042322161, %v5941_v9  ;;  %v5974_v3 = vmul.u32.u64.high 4042322161, %v5941_v9, %v5973_v44 }
 0x14f   : > { %v2768_v16 = vmul.u32 17, %v2767_v24  ;;  %v5985_v6 = vmul.u32.u64.low 4042322161, %v5968_v35  ;;  %v5986_v59 = vmul.u32.u64.high 4042322161, %v5968_v35, %v5985_v6  ;;  %vm2479_vm9 = vcmp.lt.s32.totalorder %v2269_v43, 0 }
 0x150   : > { %vm2750_vm10 = vcmp.lt.s32.totalorder %v5747_v33, 0  ;;  %v2779_v25 = vmul.u32 17, %v2778_v0  ;;  %vm2513_vm11 = vmand %vm2479_vm9, %vm2445_vm4  ;;  %v2547_v56 = vadd.s32 272, %v2269_v43  ;;  %v2280_v40 = vsub.s32 %v2038_v18, %v2279_v63 }
 0x151   : > { %v5992_v20 = vsel %vm5935_vm0, 1.0, %v4653_v1  ;;  %v5996_v29 = vsel %vm2739_vm14, %v2748_v50, %v2747_v37  ;;  %v2290_v51 = vmul.u32 272, %v2289_v49  ;;  %v2300_v52 = vshrl.u32 %v5956_v11, 8 }
 0x152   : > { %v2759_v14 = vsub.s32 0, %v2758_v45  ;;  %v5999_v8 = vsel %vm2513_vm11, %v2547_v56, %v2269_v43  ;;  %vm2446_vm12 = vcmp.ne.s32.totalorder %v2280_v40, 0  ;;  %vm2480_vm13 = vcmp.lt.s32.totalorder %v2280_v40, 0 }
 0x153   : > { %v3118_v18 = vsel %vm5980_vm5, %v3084_v54, %v5928_v13  ;;  %vm2761_vm15 = vcmp.lt.s32.totalorder %v5817_v30, 0  ;;  %v2769_v36 = vsub.s32 %v5872_v21, %v2768_v16  ;;  %v2806_v57 = vsub.s32 0, %v5999_v8  ;;  %vm2514_vm3 = vmand %vm2480_vm13, %vm2446_vm12 }
 0x154   : > { %vm2983_vm14 = vcmp.ne.s32.totalorder %v5996_v29, 0  ;;  %v2780_v37 = vsub.s32 %v5875_v17, %v2779_v25  ;;  %v2789_v38 = vshrl.u32 %v5964_v46, 4  ;;  %v2548_v39 = vadd.s32 272, %v2280_v40 }
 0x155   : > { %v2800_v58 = vshrl.u32 %v5986_v59, 4  ;;  %v6012_v34 = vmin.u32 %v2806_v57, %v5999_v8  ;;  %v2291_v13 = vsub.s32 %v5921_v22, %v2290_v51  ;;  %v2301_v60 = vmul.u32 272, %v2300_v52 }
 0x156   : > { %vm3017_vm0 = vcmp.lt.s32.totalorder %v5996_v29, 0  ;;  %v6017_v21 = vadd.s32 17, %v5996_v29  ;;  %v6021_v47 = vsel %vm2750_vm10, %v2759_v14, %v2758_v45  ;;  %v6023_v17 = vsel %vm2514_vm3, %v2548_v39, %v2280_v40 }
 0x157   : > { %v2770_v42 = vsub.s32 0, %v2769_v36  ;;  %v6026_v11 = vmul.u32.u64.low 4042322161, %v6012_v34  ;;  %v6027_v24 = vmul.u32.u64.high 4042322161, %v6012_v34, %v6026_v11  ;;  %v2311_v0 = vshrl.u32 %v5974_v3, 8  ;;  %vm6033_vm6 = vmand %vm3017_vm0, %vm2983_vm14 }
 0x158   : > { %v2781_v22 = vsub.s32 0, %v2780_v37  ;;  %v2790_v32 = vmul.u32 17, %v2789_v38  ;;  %v2817_v53 = vsub.s32 0, %v6023_v17  ;;  %vm2447_vm8 = vcmp.ne.s32.totalorder %v2291_v13, 0 }
 0x159   : > { %v2801_v46 = vmul.u32 17, %v2800_v58  ;;  %vm2481_vm7 = vcmp.lt.s32.totalorder %v2291_v13, 0  ;;  %v2549_v43 = vadd.s32 272, %v2291_v13  ;;  %v2302_v63 = vsub.s32 %v5924_v61, %v2301_v60 }
 0x15a   : > { %vm6038_vm2 = vcmp.lt.s32.totalorder %v3118_v18, 16  ;;  %vm2772_vm1 = vcmp.lt.s32.totalorder %v5847_v31, 0  ;;  %v6044_v50 = vmin.u32 %v2817_v53, %v6023_v17  ;;  %vm2515_vm4 = vmand %vm2481_vm7, %vm2447_vm8  ;;  %v6047_v49 = vadd.s32 192, %v5210_v10 }
 0x15b   : > { %vm2984_vm5 = vcmp.ne.s32.totalorder %v6021_v47, 0  ;;  %vm3018_vm9 = vcmp.lt.s32.totalorder %v6021_v47, 0  ;;  %v6051_v45 = vsel %vm2515_vm4, %v2549_v43, %v2291_v13  ;;  %v2312_v61 = vmul.u32 272, %v2311_v0 }
 0x15c   : > { %v3119_v31 = vsel %vm6033_vm6, %v6017_v21, %v5996_v29  ;;  %v6059_v44 = vsel %vm2761_vm15, %v2770_v42, %v2769_v36  ;;  %v2791_v3 = vsub.s32 %v5944_v19, %v2790_v32  ;;  %vm2448_vm10 = vcmp.ne.s32.totalorder %v2302_v63, 0  ;;  %vm6067_vm11 = vmand %vm3018_vm9, %vm2984_vm5 }
 0x15d   : > { %v3086_v27 = vadd.s32 17, %v6021_v47  ;;  %v6063_v16 = vsel %vm2772_vm1, %v2781_v22, %v2780_v37  ;;  %v2802_v6 = vsub.s32 %v5968_v35, %v2801_v46  ;;  %v2828_v59 = vsub.s32 0, %v6051_v45 }
 0x15e   : > { %v6072_v56 = vmul.u32.u64.low 4042322161, %v6044_v50  ;;  %v6073_v30 = vmul.u32.u64.high 4042322161, %v6044_v50, %v6072_v56  ;;  %vm2482_vm12 = vcmp.lt.s32.totalorder %v2302_v63, 0  ;;  %v2550_v40 = vadd.s32 272, %v2302_v63 }
 0x15f   : > { %vm2985_vm13 = vcmp.ne.s32.totalorder %v6059_v44, 0  ;;  %vm2783_vm15 = vcmp.lt.s32.totalorder %v5888_v12, 0  ;;  %v2811_v19 = vshrl.u32 %v6027_v24, 4  ;;  %vm2516_vm3 = vmand %vm2482_vm12, %vm2448_vm10  ;;  %v2313_v35 = vsub.s32 %v5941_v9, %v2312_v61 }
 0x160   : > { %vm3019_vm14 = vcmp.lt.s32.totalorder %v6059_v44, 0  ;;  %vm2986_vm0 = vcmp.ne.s32.totalorder %v6063_v16, 0  ;;  %v2792_v29 = vsub.s32 0, %v2791_v3  ;;  %v6083_v51 = vmin.u32 %v2828_v59, %v6051_v45 }
 0x161   : > { %vm3020_vm8 = vcmp.lt.s32.totalorder %v6063_v16, 0  ;;  %v6086_v52 = vsel %vm2516_vm3, %v2550_v40, %v2302_v63  ;;  %v6089_v14 = vmul.u32.u64.low 4042322161, %v6047_v49  ;;  %v6090_v18 = vmul.u32.u64.high 4042322161, %v6047_v49, %v6089_v14  ;;  %vm6105_vm7 = vmand %vm3019_vm14, %vm2985_vm13 }
 0x162   : > { %v3120_v9 = vsel %vm6067_vm11, %v3086_v27, %v6021_v47  ;;  %v3087_v36 = vadd.s32 17, %v6059_v44  ;;  %vm2794_vm6 = vcmp.lt.s32.totalorder %v5951_v41, 0  ;;  %v2803_v57 = vsub.s32 0, %v2802_v6  ;;  %vm6112_vm5 = vmand %vm3020_vm8, %vm2986_vm0 }
 0x163   : > { %v3088_v38 = vadd.s32 17, %v6063_v16  ;;  %v2812_v39 = vmul.u32 17, %v2811_v19  ;;  %vm2449_vm1 = vcmp.ne.s32.totalorder %v2313_v35, 0  ;;  %vm2483_vm4 = vcmp.lt.s32.totalorder %v2313_v35, 0 }
 0x164   : > { %v6118_v13 = vsel %vm2783_vm15, %v2792_v29, %v2791_v3  ;;  %v6121_v60 = vmul.u32.u64.low 4042322161, %v6083_v51  ;;  %v6122_v21 = vmul.u32.u64.high 4042322161, %v6083_v51, %v6121_v60  ;;  %v2839_v47 = vsub.s32 0, %v6086_v52 }
 0x165   : > { %v6128_v42 = vsel %vm6038_vm2, 1.0, %v4653_v1  ;;  %vm3153_vm9 = vcmp.lt.s32.totalorder %v3119_v31, 16  ;;  %v2551_v11 = vadd.s32 272, %v2313_v35  ;;  %v6131_v24 = vadd.s32 200, %v5210_v10  ;;  %vm2517_vm2 = vmand %vm2483_vm4, %vm2449_vm1 }
 0x166   : > { %vm6133_vm10 = vcmp.lt.s32.totalorder %v3120_v9, 16  ;;  %v3121_v0 = vsel %vm6105_vm7, %v3087_v36, %v6059_v44  ;;  %v6142_v22 = vsel %vm2794_vm6, %v2803_v57, %v2802_v6  ;;  %v2822_v32 = vshrl.u32 %v6073_v30, 4 }
 0x167   : > { %v3122_v53 = vsel %vm6112_vm5, %v3088_v38, %v6063_v16  ;;  %vm2987_vm11 = vcmp.ne.s32.totalorder %v6118_v13, 0  ;;  %vm3021_vm12 = vcmp.lt.s32.totalorder %v6118_v13, 0  ;;  %v2813_v41 = vsub.s32 %v6012_v34, %v2812_v39 }
 0x168   : > { %v6159_v46 = vsel %vm3153_vm9, 1.0, %v4653_v1  ;;  %v3089_v43 = vadd.s32 17, %v6118_v13  ;;  %v6163_v63 = vmin.u32 %v2839_v47, %v6086_v52  ;;  %v6166_v54 = vadd.s32 208, %v5210_v10  ;;  %vm6190_vm0 = vmand %vm3021_vm12, %vm2987_vm11 }
 0x169   : > { %vm2988_vm13 = vcmp.ne.s32.totalorder %v6142_v22, 0  ;;  %vm3022_vm15 = vcmp.lt.s32.totalorder %v6142_v22, 0  ;;  %v6170_v31 = vsel %vm2517_vm2, %v2551_v11, %v2313_v35  ;;  %v2322_v34 = vshrl.u32 %v6090_v18, 8 }
 0x16a   : > { %v6176_v27 = vsel %vm6133_vm10, 1.0, %v4653_v1  ;;  %vm6178_vm3 = vcmp.lt.s32.totalorder %v3121_v0, 16  ;;  %vm6182_vm14 = vcmp.lt.s32.totalorder %v3122_v53, 16  ;;  %v2823_v25 = vmul.u32 17, %v2822_v32  ;;  %vm6201_vm6 = vmand %vm3022_vm15, %vm2988_vm13 }
 0x16b   : > { %v3090_v19 = vadd.s32 17, %v6142_v22  ;;  %vm2805_vm8 = vcmp.lt.s32.totalorder %v5999_v8, 0  ;;  %v2814_v35 = vsub.s32 0, %v2813_v41  ;;  %v2833_v18 = vshrl.u32 %v6122_v21, 4 }
 0x16c   : > { %v6207_v9 = vmul.u32.u64.low 4042322161, %v6163_v63  ;;  %v6208_v36 = vmul.u32.u64.high 4042322161, %v6163_v63, %v6207_v9  ;;  %v2850_v57 = vsub.s32 0, %v6170_v31  ;;  %v3123_v58 = vsel %vm6190_vm0, %v3089_v43, %v6118_v13 }
 0x16d   : > { %v2323_v60 = vmul.u32 272, %v2322_v34  ;;  %v6223_v21 = vsel %vm6178_vm3, 1.0, %v4653_v1  ;;  %v2824_v47 = vsub.s32 %v6044_v50, %v2823_v25  ;;  %v6232_v13 = vadd.s32 216, %v5210_v10 }
 0x16e   : > { %v3124_v0 = vsel %vm6201_vm6, %v3090_v19, %v6142_v22  ;;  %v6240_v32 = vsel %vm2805_vm8, %v2814_v35, %v2813_v41  ;;  %vm6242_vm7 = vcmp.lt.s32.totalorder %v3123_v58, 16  ;;  %v2834_v50 = vmul.u32 17, %v2833_v18 }
 0x16f   : > { %v6247_v43 = vmin.u32 %v2850_v57, %v6170_v31  ;;  %v2324_v8 = vsub.s32 %v6047_v49, %v2323_v60  ;;  %vm6254_vm1 = vcmp.lt.s32.totalorder %v3124_v0, 16  ;;  %vm2989_vm4 = vcmp.ne.s32.totalorder %v6240_v32, 0 }
 0x170   : > { %vm2816_vm5 = vcmp.lt.s32.totalorder %v6023_v17, 0  ;;  %v2825_v6 = vsub.s32 0, %v2824_v47  ;;  %vm3023_vm9 = vcmp.lt.s32.totalorder %v6240_v32, 0  ;;  %v2835_v19 = vsub.s32 %v6083_v51, %v2834_v50 }
 0x171   : > { %v2844_v35 = vshrl.u32 %v6208_v36, 4  ;;  %vm2450_vm10 = vcmp.ne.s32.totalorder %v2324_v8, 0  ;;  %vm2484_vm2 = vcmp.lt.s32.totalorder %v2324_v8, 0  ;;  %vm6284_vm11 = vmand %vm3023_vm9, %vm2989_vm4  ;;  %vm2827_vm12 = vcmp.lt.s32.totalorder %v6051_v45, 0 }
 0x172   : > { %vm6296_vm13 = vmand %vm2484_vm2, %vm2450_vm10 }
 0x173   : > { %v2845_v0 = vmul.u32 17, %v2844_v35 }
 0x175   : > { %v835_v33 = vpop.f32.mrb[0].mxu1 }
 0x176   : > { %v4057_v61 = vpop.f32.mrb[1].mxu1 }
 0x177   : > { %v838_v3 = vpop.f32.mrb[2].mxu1  ;;  %v6250_v61 = vadd.s32 224, %v5210_v10 }
 0x178   : > { %v1678_v44 = vpop.f32.mrb[0].mxu0  ;;  %v4058_v40 = vpop.f32.mrb[3].mxu1 }
 0x179   : > { %v4275_v56 = vadd.f32 %v1678_v44, %v835_v33  ;;  %v4209_v30 = vpop.f32.mrb[1].mxu0  ;;  %v6262_v40 = vadd.s32 17, %v6240_v32  ;;  %v6304_v33 = vsel %vm6254_vm1, 1.0, %v4653_v1 }
 0x17a   : > { %v1681_v29 = vpop.f32.mrb[2].mxu0 }
 0x17b   : > { %v3242_v37 = vmul.f32 %v4275_v56, %v5533_v48  ;;  %v4276_v38 = vadd.f32 %v1681_v29, %v838_v3  ;;  %v4210_v39 = vpop.f32.mrb[3].mxu0  ;;  %v6228_v48 = vsel %vm6182_vm14, 1.0, %v4653_v1  ;;  %vm2838_vm14 = vcmp.lt.s32.totalorder %v6086_v52, 0 }
 0x17c   : > { %v6267_v29 = vmul.u32.u64.low 4042322161, %v6247_v43  ;;  %v6268_v14 = vmul.u32.u64.high 4042322161, %v6247_v43, %v6267_v29  ;;  %v6276_v51 = vmul.u32.u64.low 4042322161, %v6131_v24  ;;  %v6277_v39 = vmul.u32.u64.high 4042322161, %v6131_v24, %v6276_v51 }
 0x17d   : > { %v3789_v11 = vpack.c.bf16 %v4276_v38, %v4275_v56  ;;  %v3243_v12 = vmul.f32 %v4276_v38, %v5613_v55  ;;  %v843_v53 = vpop.f32.mrb[4].mxu1  ;;  %v3316_v55 = vmul.f32 %v4275_v56, %v3242_v37 }
 0x17e   : > { %v4061_v44 = vpop.f32.mrb[5].mxu1  ;;  %v2855_v35 = vshrl.u32 %v6268_v14, 4 }
 0x17f   : > { %3790 = vst [vmem:[%s6218_s9] sm:$0xff] %v3789_v11   ;;  %v3276_v34 = vadd.f32 %v3243_v12, %v3242_v37  ;;  %v3317_v22 = vmul.f32 %v4276_v38, %v3243_v12  ;;  %v846_v3 = vpop.f32.mrb[6].mxu1  ;;  %v6273_v37 = vsel %vm2816_vm5, %v2825_v6, %v2824_v47  ;;  %v2552_v38 = vadd.s32 272, %v2324_v8 }
 0x180   : > { %v1686_v41 = vpop.f32.mrb[4].mxu0  ;;  %v4062_v30 = vpop.f32.mrb[7].mxu1  ;;  %v6291_v47 = vsel %vm6242_vm7, 1.0, %v4653_v1  ;;  %v2836_v12 = vsub.s32 0, %v2835_v19  ;;  %vm2990_vm15 = vcmp.ne.s32.totalorder %v6273_v37, 0  ;;  %vm3024_vm3 = vcmp.lt.s32.totalorder %v6273_v37, 0 }
 0x181   : > { %v3350_v59 = vadd.f32 %v3317_v22, %v3316_v55  ;;  %v4277_v25 = vadd.f32 %v1686_v41, %v843_v53  ;;  %v4213_v56 = vpop.f32.mrb[5].mxu0  ;;  %v3125_v41 = vsel %vm6284_vm11, %v6262_v40, %v6240_v32  ;;  %v6319_v30 = vsel %vm6296_vm13, %v2552_v38, %v2324_v8  ;;  %vm6344_vm6 = vmand %vm3024_vm3, %vm2990_vm15 }
 0x182   : > { %v1689_v49 = vpop.f32.mrb[6].mxu0  ;;  %v6315_v56 = vadd.s32 17, %v6273_v37  ;;  %v6323_v40 = vsel %vm2827_vm12, %v2836_v12, %v2835_v19  ;;  %v2861_v8 = vsub.s32 0, %v6319_v30  ;;  %vm6361_vm5 = vcmp.lt.s32.totalorder %v3125_v41, 16 }
 0x183   : > { %v3244_v18 = vmul.f32 %v4277_v25, %v5627_v26  ;;  %v4278_v9 = vadd.f32 %v1689_v49, %v846_v3  ;;  %v4214_v57 = vpop.f32.mrb[7].mxu0  ;;  %v2333_v3 = vshrl.u32 %v6277_v39, 8  ;;  %v2846_v49 = vsub.s32 %v6163_v63, %v2845_v0 }
 0x184   : > { %v6329_v51 = vmul.u32.u64.low 4042322161, %v6166_v54  ;;  %v6330_v39 = vmul.u32.u64.high 4042322161, %v6166_v54, %v6329_v51  ;;  %v6335_v19 = vmul.u32.u64.low 4042322161, %v6232_v13  ;;  %v6336_v38 = vmul.u32.u64.high 4042322161, %v6232_v13, %v6335_v19 }
 0x185   : > { %v3277_v36 = vadd.f32 %v3276_v34, %v3244_v18  ;;  %v3318_v58 = vmul.f32 %v4277_v25, %v3244_v18  ;;  %v3794_v60 = vpack.c.bf16 %v4278_v9, %v4277_v25  ;;  %v3245_v11 = vmul.f32 %v4278_v9, %v5641_v5  ;;  %v851_v17 = vpop.f32.mrb[8].mxu1 }
 0x186   : > { %v4065_v34 = vpop.f32.mrb[9].mxu1  ;;  %v2334_v29 = vmul.u32 272, %v2333_v3  ;;  %vm2991_vm7 = vcmp.ne.s32.totalorder %v6323_v40, 0  ;;  %vm3025_vm1 = vcmp.lt.s32.totalorder %v6323_v40, 0  ;;  %vm2849_vm13 = vcmp.lt.s32.totalorder %v6170_v31, 0 }
 0x187   : > { %v3351_v53 = vadd.f32 %v3350_v59, %v3318_v58  ;;  %3871 = vst [vmem:[%s6218_s9 + $0x8] sm:$0xff] %v3794_v60   ;;  %v3278_v50 = vadd.f32 %v3277_v36, %v3245_v11  ;;  %v3319_v55 = vmul.f32 %v4278_v9, %v3245_v11  ;;  %v854_v44 = vpop.f32.mrb[10].mxu1  ;;  %v2847_v60 = vsub.s32 0, %v2846_v49  ;;  %vm6380_vm9 = vmand %vm3025_vm1, %vm2991_vm7 }
 0x188   : > { %v1694_v22 = vpop.f32.mrb[8].mxu0  ;;  %v4066_v25 = vpop.f32.mrb[11].mxu1  ;;  %v2335_v45 = vsub.s32 %v6131_v24, %v2334_v29  ;;  %v2355_v34 = vshrl.u32 %v6336_v38, 8  ;;  %v6373_v29 = vadd.s32 17, %v6323_v40  ;;  %vm2860_vm1 = vcmp.lt.s32.totalorder %v6319_v30, 0 }
 0x189   : > { %v3352_v6 = vadd.f32 %v3351_v53, %v3319_v55  ;;  %v4279_v59 = vadd.f32 %v1694_v22, %v851_v17  ;;  %v4217_v16 = vpop.f32.mrb[9].mxu0 }
 0x18a   : > { %v1697_v32 = vpop.f32.mrb[10].mxu0  ;;  %vm2451_vm0 = vcmp.ne.s32.totalorder %v2335_v45, 0  ;;  %vm2485_vm8 = vcmp.lt.s32.totalorder %v2335_v45, 0  ;;  %v2553_v11 = vadd.s32 272, %v2335_v45  ;;  %v6366_v16 = vadd.s32 232, %v5210_v10 }
 0x18b   : > { %v3246_v18 = vmul.f32 %v4279_v59, %v5828_v15  ;;  %v4280_v9 = vadd.f32 %v1697_v32, %v854_v44  ;;  %v4218_v57 = vpop.f32.mrb[11].mxu0  ;;  %vm6356_vm4 = vmand %vm2485_vm8, %vm2451_vm0  ;;  %v3126_v32 = vsel %vm6344_vm6, %v6315_v56, %v6273_v37  ;;  %v6386_v37 = vsel %vm2838_vm14, %v2847_v60, %v2846_v49 }
 0x18c   : > { %v6390_v56 = vsel %vm6356_vm4, %v2553_v11, %v2335_v45  ;;  %v2356_v19 = vmul.u32 272, %v2355_v34  ;;  %v6401_v49 = vsel %vm6361_vm5, 1.0, %v4653_v1  ;;  %v3127_v45 = vsel %vm6380_vm9, %v6373_v29, %v6323_v40 }
 0x18d   : > { %v3279_v63 = vadd.f32 %v3278_v50, %v3246_v18  ;;  %v3320_v14 = vmul.f32 %v4279_v59, %v3246_v18  ;;  %v3799_v36 = vpack.c.bf16 %v4280_v9, %v4279_v59  ;;  %v3247_v15 = vmul.f32 %v4280_v9, %v5833_v2  ;;  %v859_v58 = vpop.f32.mrb[12].mxu1 }
 0x18e   : > { %v4069_v0 = vpop.f32.mrb[13].mxu1  ;;  %v2344_v2 = vshrl.u32 %v6330_v39, 8  ;;  %v6352_v50 = vmin.u32 %v2861_v8, %v6319_v30  ;;  %v2856_v18 = vmul.u32 17, %v2855_v35  ;;  %vm6412_vm2 = vcmp.lt.s32.totalorder %v3126_v32, 16 }
 0x18f   : > { %v3353_v26 = vadd.f32 %v3352_v6, %v3320_v14  ;;  %3872 = vst [vmem:[%s6218_s9 + $0x10] sm:$0xff] %v3799_v36   ;;  %v3280_v17 = vadd.f32 %v3279_v63, %v3247_v15  ;;  %v3321_v12 = vmul.f32 %v4280_v9, %v3247_v15  ;;  %v862_v53 = vpop.f32.mrb[14].mxu1  ;;  %v2872_v15 = vsub.s32 0, %v6390_v56 }
 0x190   : > { %v1702_v5 = vpop.f32.mrb[12].mxu0  ;;  %v4070_v6 = vpop.f32.mrb[15].mxu1  ;;  %v2345_v9 = vmul.u32 272, %v2344_v2  ;;  %vm2992_vm11 = vcmp.ne.s32.totalorder %v6386_v37, 0  ;;  %v2357_v0 = vsub.s32 %v6232_v13, %v2356_v19  ;;  %vm3026_vm0 = vcmp.lt.s32.totalorder %v6386_v37, 0 }
 0x191   : > { %v3354_v22 = vadd.f32 %v3353_v26, %v3321_v12  ;;  %v4281_v44 = vadd.f32 %v1702_v5, %v859_v58  ;;  %v4221_v3 = vpop.f32.mrb[13].mxu0  ;;  %vm6463_vm6 = vcmp.lt.s32.totalorder %v3127_v45, 16  ;;  %vm6471_vm7 = vmand %vm3026_vm0, %vm2992_vm11  ;;  %v6480_v45 = vadd.s32 248, %v5210_v10 }
 0x192   : > { %v1705_v25 = vpop.f32.mrb[14].mxu0  ;;  %v2346_v8 = vsub.s32 %v6166_v54, %v2345_v9  ;;  %vm2453_vm3 = vcmp.ne.s32.totalorder %v2357_v0, 0  ;;  %vm2487_vm14 = vcmp.lt.s32.totalorder %v2357_v0, 0  ;;  %v2555_v29 = vadd.s32 272, %v2357_v0 }
 0x193   : > { %v3248_v57 = vmul.f32 %v4281_v44, %v5842_v4  ;;  %v4282_v41 = vadd.f32 %v1705_v25, %v862_v53  ;;  %v4222_v51 = vpop.f32.mrb[15].mxu0  ;;  %v6393_v4 = vmul.u32.u64.low 4042322161, %v6352_v50  ;;  %v6394_v35 = vmul.u32.u64.high 4042322161, %v6352_v50, %v6393_v4  ;;  %vm6433_vm8 = vmand %vm2487_vm14, %vm2453_vm3 }
 0x194   : > { %vm2452_vm10 = vcmp.ne.s32.totalorder %v2346_v8, 0  ;;  %vm2486_vm12 = vcmp.lt.s32.totalorder %v2346_v8, 0  ;;  %v2554_v40 = vadd.s32 272, %v2346_v8  ;;  %v6495_v32 = vsel %vm6463_vm6, 1.0, %v4653_v1 }
 0x195   : > { %v3281_v38 = vadd.f32 %v3280_v17, %v3248_v57  ;;  %v3322_v63 = vmul.f32 %v4281_v44, %v3248_v57  ;;  %v3804_v14 = vpack.c.bf16 %v4282_v41, %v4281_v44  ;;  %v3249_v36 = vmul.f32 %v4282_v41, %v5852_v7  ;;  %v867_v52 = vpop.f32.mrb[16].mxu1  ;;  %vm2520_vm15 = vmand %vm2486_vm12, %vm2452_vm10 }
 0x196   : > { %v4073_v11 = vpop.f32.mrb[17].mxu1  ;;  %v6410_v7 = vsub.s32 %v6247_v43, %v2856_v18  ;;  %v6421_v43 = vmul.u32.u64.low 4042322161, %v6250_v61  ;;  %v6422_v55 = vmul.u32.u64.high 4042322161, %v6250_v61, %v6421_v43  ;;  %v6427_v44 = vsel %vm2520_vm15, %v2554_v40, %v2346_v8 }
 0x197   : > { %v3355_v54 = vadd.f32 %v3354_v22, %v3322_v63  ;;  %3873 = vst [vmem:[%s6218_s9 + $0x18] sm:$0xff] %v3804_v14   ;;  %v3282_v58 = vadd.f32 %v3281_v38, %v3249_v36  ;;  %v3323_v60 = vmul.f32 %v4282_v41, %v3249_v36  ;;  %v870_v17 = vpop.f32.mrb[18].mxu1  ;;  %v6425_v22 = vmin.u32 %v2872_v15, %v6390_v56 }
 0x198   : > { %v1710_v26 = vpop.f32.mrb[16].mxu0  ;;  %v4074_v53 = vpop.f32.mrb[19].mxu1  ;;  %v2883_v59 = vsub.s32 0, %v6427_v44  ;;  %v2866_v25 = vshrl.u32 %v6394_v35, 4  ;;  %v6438_v18 = vmul.u32.u64.low 4042322161, %v6366_v16  ;;  %v6439_v9 = vmul.u32.u64.high 4042322161, %v6366_v16, %v6438_v18 }
 0x199   : > { %v3356_v24 = vadd.f32 %v3355_v54, %v3323_v60  ;;  %v4283_v2 = vadd.f32 %v1710_v26, %v867_v52  ;;  %v4225_v5 = vpop.f32.mrb[17].mxu0  ;;  %v6443_v4 = vmul.u32.u64.low 4042322161, %v6425_v22  ;;  %v6444_v8 = vmul.u32.u64.high 4042322161, %v6425_v22, %v6443_v4 }
 0x19a   : > { %v1713_v34 = vpop.f32.mrb[18].mxu0  ;;  %v6447_v35 = vmin.u32 %v2883_v59, %v6427_v44  ;;  %v2366_v19 = vshrl.u32 %v6422_v55, 8  ;;  %v6453_v52 = vsel %vm6433_vm8, %v2555_v29, %v2357_v0  ;;  %v6456_v54 = vadd.s32 17, %v6386_v37 }
 0x19b   : > { %v3250_v13 = vmul.f32 %v4283_v2, %v5904_v62  ;;  %v4284_v3 = vadd.f32 %v1713_v34, %v870_v17  ;;  %v4226_v6 = vpop.f32.mrb[19].mxu0  ;;  %v6476_v5 = vadd.s32 240, %v5210_v10  ;;  %v2867_v43 = vmul.u32 17, %v2866_v25 }
 0x19c   : > { %v6460_v60 = vmul.u32.u64.low 4042322161, %v6447_v35  ;;  %v6461_v11 = vmul.u32.u64.high 4042322161, %v6447_v35, %v6460_v60  ;;  %v2894_v55 = vsub.s32 0, %v6453_v52  ;;  %v2367_v34 = vmul.u32 272, %v2366_v19 }
 0x19d   : > { %v3283_v57 = vadd.f32 %v3282_v58, %v3250_v13  ;;  %v3324_v62 = vmul.f32 %v4283_v2, %v3250_v13  ;;  %v3809_v41 = vpack.c.bf16 %v4284_v3, %v4283_v2  ;;  %v3251_v51 = vmul.f32 %v4284_v3, %v5909_v23  ;;  %v875_v39 = vpop.f32.mrb[20].mxu1 }
 0x19e   : > { %v4077_v36 = vpop.f32.mrb[21].mxu1  ;;  %v2858_v58 = vsub.s32 0, %v6410_v7  ;;  %v6486_v59 = vsel %vm6412_vm2, 1.0, %v4653_v1  ;;  %v6490_v25 = vadd.s32 256, %v5210_v10  ;;  %v2377_v29 = vshrl.u32 %v6439_v9, 8 }
 0x19f   : > { %v3357_v38 = vadd.f32 %v3356_v24, %v3324_v62  ;;  %3874 = vst [vmem:[%s6218_s9 + $0x20] sm:$0xff] %v3809_v41   ;;  %v3284_v63 = vadd.f32 %v3283_v57, %v3251_v51  ;;  %v3325_v14 = vmul.f32 %v4284_v3, %v3251_v51  ;;  %v878_v15 = vpop.f32.mrb[22].mxu1  ;;  %v2877_v4 = vshrl.u32 %v6444_v8, 4 }
 0x1a0   : > { %v1718_v23 = vpop.f32.mrb[20].mxu0  ;;  %v4078_v24 = vpop.f32.mrb[23].mxu1  ;;  %v6504_v12 = vsel %vm2849_vm13, %v2858_v58, %v6410_v7  ;;  %v6511_v19 = vmin.u32 %v2894_v55, %v6453_v52  ;;  %vm2871_vm0 = vcmp.lt.s32.totalorder %v6390_v56, 0  ;;  %vm2882_vm6 = vcmp.lt.s32.totalorder %v6427_v44, 0 }
 0x1a1   : > { %v3358_v26 = vadd.f32 %v3357_v38, %v3325_v14  ;;  %v4285_v17 = vadd.f32 %v1718_v23, %v875_v39  ;;  %v4229_v40 = vpop.f32.mrb[21].mxu0  ;;  %v2868_v39 = vsub.s32 %v6352_v50, %v2867_v43  ;;  %v6526_v43 = vadd.s32 264, %v5210_v10 }
 0x1a2   : > { %v1721_v53 = vpop.f32.mrb[22].mxu0  ;;  %v6517_v50 = vmul.u32.u64.low 4042322161, %v6476_v5  ;;  %v6518_v23 = vmul.u32.u64.high 4042322161, %v6476_v5, %v6517_v50  ;;  %vm2993_vm2 = vcmp.ne.s32.totalorder %v6504_v12, 0  ;;  %vm3027_vm11 = vcmp.lt.s32.totalorder %v6504_v12, 0 }
 0x1a3   : > { %v3252_v13 = vmul.f32 %v4285_v17, %v5917_v28  ;;  %v4286_v3 = vadd.f32 %v1721_v53, %v878_v15  ;;  %v4230_v6 = vpop.f32.mrb[23].mxu0  ;;  %v3128_v28 = vsel %vm6471_vm7, %v6456_v54, %v6386_v37  ;;  %v2368_v37 = vsub.s32 %v6250_v61, %v2367_v34  ;;  %vm6573_vm8 = vmand %vm3027_vm11, %vm2993_vm2 }
 0x1a4   : > { %vm6528_vm10 = vcmp.lt.s32.totalorder %v3128_v28, 16  ;;  %v6539_v10 = vadd.s32 17, %v6504_v12 }
 0x1a5   : > { %v3285_v18 = vadd.f32 %v3284_v63, %v3252_v13  ;;  %v3326_v57 = vmul.f32 %v4285_v17, %v3252_v13  ;;  %v3814_v62 = vpack.c.bf16 %v4286_v3, %v4285_v17  ;;  %v3253_v41 = vmul.f32 %v4286_v3, %v5992_v20  ;;  %v883_v51 = vpop.f32.mrb[24].mxu1 }
 0x1a6   : > { %v4081_v9 = vpop.f32.mrb[25].mxu1  ;;  %v2888_v63 = vshrl.u32 %v6461_v11, 4  ;;  %vm2454_vm4 = vcmp.ne.s32.totalorder %v2368_v37, 0  ;;  %v2378_v20 = vmul.u32 272, %v2377_v29  ;;  %vm2488_vm5 = vcmp.lt.s32.totalorder %v2368_v37, 0 }
 0x1a7   : > { %v3359_v31 = vadd.f32 %v3358_v26, %v3326_v57  ;;  %3875 = vst [vmem:[%s6218_s9 + $0x28] sm:$0xff] %v3814_v62   ;;  %v3286_v7 = vadd.f32 %v3285_v18, %v3253_v41  ;;  %v3327_v38 = vmul.f32 %v4286_v3, %v3253_v41  ;;  %v886_v36 = vpop.f32.mrb[26].mxu1  ;;  %v2556_v61 = vadd.s32 272, %v2368_v37  ;;  %vm2522_vm9 = vmand %vm2488_vm5, %vm2454_vm4 }
 0x1a8   : > { %v1726_v14 = vpop.f32.mrb[24].mxu0  ;;  %v4082_v58 = vpop.f32.mrb[27].mxu1  ;;  %v2869_v26 = vsub.s32 0, %v2868_v39  ;;  %v2878_v17 = vmul.u32 17, %v2877_v4  ;;  %v6521_v40 = vmul.u32.u64.low 4042322161, %v6511_v19  ;;  %v6522_v11 = vmul.u32.u64.high 4042322161, %v6511_v19, %v6521_v40 }
 0x1a9   : > { %v3360_v8 = vadd.f32 %v3359_v31, %v3327_v38  ;;  %v4287_v15 = vadd.f32 %v1726_v14, %v883_v51  ;;  %v4233_v54 = vpop.f32.mrb[25].mxu0  ;;  %v2889_v53 = vmul.u32 17, %v2888_v63  ;;  %v6533_v34 = vsel %vm2522_vm9, %v2556_v61, %v2368_v37 }
 0x1aa   : > { %v1729_v60 = vpop.f32.mrb[26].mxu0  ;;  %v2379_v13 = vsub.s32 %v6366_v16, %v2378_v20  ;;  %v6543_v28 = vsel %vm2860_vm1, %v2869_v26, %v2868_v39  ;;  %v2879_v57 = vsub.s32 %v6425_v22, %v2878_v17  ;;  %v2905_v31 = vsub.s32 0, %v6533_v34 }
 0x1ab   : > { %v3254_v24 = vmul.f32 %v4287_v15, %v6128_v42  ;;  %v4288_v2 = vadd.f32 %v1729_v60, %v886_v36  ;;  %v4234_v0 = vpop.f32.mrb[27].mxu0  ;;  %v2890_v4 = vsub.s32 %v6447_v35, %v2889_v53  ;;  %v6553_v22 = vsel %vm6528_vm10, 1.0, %v4653_v1 }
 0x1ac   : > { %vm2455_vm12 = vcmp.ne.s32.totalorder %v2379_v13, 0  ;;  %vm2489_vm13 = vcmp.lt.s32.totalorder %v2379_v13, 0  ;;  %vm2994_vm15 = vcmp.ne.s32.totalorder %v6543_v28, 0  ;;  %vm3028_vm14 = vcmp.lt.s32.totalorder %v6543_v28, 0 }
 0x1ad   : > { %v3287_v3 = vadd.f32 %v3286_v7, %v3254_v24  ;;  %v3328_v6 = vmul.f32 %v4287_v15, %v3254_v24  ;;  %v3819_v42 = vpack.c.bf16 %v4288_v2, %v4287_v15  ;;  %v3255_v29 = vmul.f32 %v4288_v2, %v6159_v46  ;;  %v891_v18 = vpop.f32.mrb[28].mxu1  ;;  %vm2523_vm3 = vmand %vm2489_vm13, %vm2455_vm12 }
 0x1ae   : > { %v4085_v51 = vpop.f32.mrb[29].mxu1  ;;  %v2388_v7 = vshrl.u32 %v6518_v23, 8  ;;  %v6558_v63 = vadd.s32 17, %v6543_v28  ;;  %v2880_v14 = vsub.s32 0, %v2879_v57  ;;  %v2557_v36 = vadd.s32 272, %v2379_v13  ;;  %vm6587_vm7 = vmand %vm3028_vm14, %vm2994_vm15 }
 0x1af   : > { %v3361_v62 = vadd.f32 %v3360_v8, %v3328_v6  ;;  %3876 = vst [vmem:[%s6218_s9 + $0x30] sm:$0xff] %v3819_v42   ;;  %v3288_v16 = vadd.f32 %v3287_v3, %v3255_v29  ;;  %v3329_v41 = vmul.f32 %v4288_v2, %v3255_v29  ;;  %v894_v37 = vpop.f32.mrb[30].mxu1  ;;  %v2899_v8 = vshrl.u32 %v6522_v11, 4 }
 0x1b0   : > { %v1734_v46 = vpop.f32.mrb[28].mxu0  ;;  %v4086_v9 = vpop.f32.mrb[31].mxu1  ;;  %v2891_v15 = vsub.s32 0, %v2890_v4  ;;  %v6564_v54 = vmin.u32 %v2905_v31, %v6533_v34  ;;  %v6566_v58 = vsel %vm2523_vm3, %v2557_v36, %v2379_v13  ;;  %v2389_v61 = vmul.u32 272, %v2388_v7 }
 0x1b1   : > { %v3362_v30 = vadd.f32 %v3361_v62, %v3329_v41  ;;  %v4289_v39 = vadd.f32 %v1734_v46, %v891_v18  ;;  %v4237_v38 = vpop.f32.mrb[29].mxu0  ;;  %v6577_v11 = vsel %vm2871_vm0, %v2880_v14, %v2879_v57  ;;  %v2916_v24 = vsub.s32 0, %v6566_v58 }
 0x1b2   : > { %v1737_v35 = vpop.f32.mrb[30].mxu0  ;;  %v2390_v2 = vsub.s32 %v6476_v5, %v2389_v61  ;;  %v2900_v3 = vmul.u32 17, %v2899_v8  ;;  %v6592_v29 = vmul.u32.u64.low 4042322161, %v6564_v54  ;;  %v6593_v18 = vmul.u32.u64.high 4042322161, %v6564_v54, %v6592_v29 }
 0x1b3   : > { %v3256_v20 = vmul.f32 %v4289_v39, %v6176_v27  ;;  %v4290_v50 = vadd.f32 %v1737_v35, %v894_v37  ;;  %v4238_v23 = vpop.f32.mrb[31].mxu0  ;;  %v6597_v41 = vsel %vm2882_vm6, %v2891_v15, %v2890_v4  ;;  %v3129_v37 = vsel %vm6573_vm8, %v6539_v10, %v6504_v12 }
 0x1b4   : > { %vm2456_vm1 = vcmp.ne.s32.totalorder %v2390_v2, 0  ;;  %vm2490_vm4 = vcmp.lt.s32.totalorder %v2390_v2, 0  ;;  %v2558_v51 = vadd.s32 272, %v2390_v2  ;;  %v3130_v31 = vsel %vm6587_vm7, %v6558_v63, %v6543_v28 }
 0x1b5   : > { %v3289_v60 = vadd.f32 %v3288_v16, %v3256_v20  ;;  %v3330_v26 = vmul.f32 %v4289_v39, %v3256_v20  ;;  %v3824_v17 = vpack.c.bf16 %v4290_v50, %v4289_v39  ;;  %v3257_v40 = vmul.f32 %v4290_v50, %v6223_v21  ;;  %v899_v27 = vpop.f32.mrb[32].mxu1  ;;  %vm2524_vm5 = vmand %vm2490_vm4, %vm2456_vm1 }
 0x1b6   : > { %v4089_v55 = vpop.f32.mrb[33].mxu1  ;;  %vm2995_vm9 = vcmp.ne.s32.totalorder %v6577_v11, 0  ;;  %v6609_v7 = vmin.u32 %v2916_v24, %v6566_v58  ;;  %vm3029_vm10 = vcmp.lt.s32.totalorder %v6577_v11, 0  ;;  %v6613_v39 = vsel %vm2524_vm5, %v2558_v51, %v2390_v2 }
 0x1b7   : > { %v3363_v0 = vadd.f32 %v3362_v30, %v3330_v26  ;;  %3877 = vst [vmem:[%s6218_s9 + $0x38] sm:$0xff] %v3824_v17   ;;  %v3290_v21 = vadd.f32 %v3289_v60, %v3257_v40  ;;  %v3331_v53 = vmul.f32 %v4290_v50, %v3257_v40  ;;  %v902_v42 = vpop.f32.mrb[34].mxu1  ;;  %v3097_v12 = vadd.s32 17, %v6577_v11  ;;  %vm6622_vm11 = vmand %vm3029_vm10, %vm2995_vm9 }
 0x1b8   : > { %v1742_v6 = vpop.f32.mrb[32].mxu0  ;;  %v4090_v16 = vpop.f32.mrb[35].mxu1  ;;  %vm2996_vm2 = vcmp.ne.s32.totalorder %v6597_v41, 0  ;;  %v2901_v10 = vsub.s32 %v6511_v19, %v2900_v3  ;;  %v2927_v28 = vsub.s32 0, %v6613_v39  ;;  %vm3030_vm12 = vcmp.lt.s32.totalorder %v6597_v41, 0 }
 0x1b9   : > { %v3364_v5 = vadd.f32 %v3363_v0, %v3331_v53  ;;  %v4291_v57 = vadd.f32 %v1742_v6, %v899_v27  ;;  %v4241_v62 = vpop.f32.mrb[33].mxu0  ;;  %v6628_v36 = vmul.u32.u64.low 4042322161, %v6609_v7  ;;  %v6629_v20 = vmul.u32.u64.high 4042322161, %v6609_v7, %v6628_v36  ;;  %vm6652_vm3 = vmand %vm3030_vm12, %vm2996_vm2 }
 0x1ba   : > { %v1745_v46 = vpop.f32.mrb[34].mxu0  ;;  %v6632_v19 = vmin.u32 %v2927_v28, %v6613_v39  ;;  %vm6635_vm13 = vcmp.lt.s32.totalorder %v3129_v37, 16  ;;  %vm6639_vm15 = vcmp.lt.s32.totalorder %v3130_v31, 16  ;;  %v3098_v17 = vadd.s32 17, %v6597_v41 }
 0x1bb   : > { %v3258_v44 = vmul.f32 %v4291_v57, %v6228_v48  ;;  %v4292_v4 = vadd.f32 %v1745_v46, %v902_v42  ;;  %v4242_v30 = vpop.f32.mrb[35].mxu0  ;;  %v2902_v40 = vsub.s32 0, %v2901_v10  ;;  %v2910_v27 = vshrl.u32 %v6593_v18, 4 }
 0x1bc   : > { %vm2893_vm14 = vcmp.lt.s32.totalorder %v6453_v52, 0  ;;  %v6658_v13 = vmul.u32.u64.low 4042322161, %v6632_v19  ;;  %v6659_v3 = vmul.u32.u64.high 4042322161, %v6632_v19, %v6658_v13  ;;  %v6673_v52 = vsel %vm6635_vm13, 1.0, %v4653_v1 }
 0x1bd   : > { %v3291_v38 = vadd.f32 %v3290_v21, %v3258_v44  ;;  %v3332_v9 = vmul.f32 %v4291_v57, %v3258_v44  ;;  %v3829_v35 = vpack.c.bf16 %v4292_v4, %v4291_v57  ;;  %v3259_v48 = vmul.f32 %v4292_v4, %v6291_v47  ;;  %v907_v63 = vpop.f32.mrb[36].mxu1 }
 0x1be   : > { %v4093_v8 = vpop.f32.mrb[37].mxu1  ;;  %v3131_v21 = vsel %vm6622_vm11, %v3097_v12, %v6577_v11  ;;  %v6662_v6 = vmul.u32.u64.low 4042322161, %v6480_v45  ;;  %v6663_v42 = vmul.u32.u64.high 4042322161, %v6480_v45, %v6662_v6  ;;  %v3132_v62 = vsel %vm6652_vm3, %v3098_v17, %v6597_v41 }
 0x1bf   : > { %v3365_v50 = vadd.f32 %v3364_v5, %v3332_v9  ;;  %3878 = vst [vmem:[%s6218_s9 + $0x40] sm:$0xff] %v3829_v35   ;;  %v3292_v23 = vadd.f32 %v3291_v38, %v3259_v48  ;;  %v3333_v47 = vmul.f32 %v4292_v4, %v3259_v48  ;;  %v910_v60 = vpop.f32.mrb[38].mxu1  ;;  %v6678_v16 = vsel %vm2893_vm14, %v2902_v40, %v2901_v10 }
 0x1c0   : > { %v1750_v61 = vpop.f32.mrb[36].mxu0  ;;  %v4094_v0 = vpop.f32.mrb[39].mxu1  ;;  %v6667_v5 = vmul.u32.u64.low 4042322161, %v6490_v25  ;;  %v6668_v57 = vmul.u32.u64.high 4042322161, %v6490_v25, %v6667_v5  ;;  %v2911_v51 = vmul.u32 17, %v2910_v27  ;;  %v6684_v4 = vsel %vm6639_vm15, 1.0, %v4653_v1 }
 0x1c1   : > { %v3366_v56 = vadd.f32 %v3365_v50, %v3333_v47  ;;  %v4293_v24 = vadd.f32 %v1750_v61, %v907_v63  ;;  %v4245_v2 = vpop.f32.mrb[37].mxu0  ;;  %vm6686_vm0 = vcmp.lt.s32.totalorder %v3131_v21, 16  ;;  %v2921_v41 = vshrl.u32 %v6629_v20, 4 }
 0x1c2   : > { %v1753_v55 = vpop.f32.mrb[38].mxu0  ;;  %v2399_v12 = vshrl.u32 %v6663_v42, 8  ;;  %vm6693_vm8 = vcmp.lt.s32.totalorder %v3132_v62, 16  ;;  %vm2997_vm6 = vcmp.ne.s32.totalorder %v6678_v16, 0  ;;  %vm3031_vm7 = vcmp.lt.s32.totalorder %v6678_v16, 0 }
 0x1c3   : > { %v3260_v11 = vmul.f32 %v4293_v24, %v6304_v33  ;;  %v4294_v29 = vadd.f32 %v1753_v55, %v910_v60  ;;  %v4246_v18 = vpop.f32.mrb[39].mxu0  ;;  %v6700_v63 = vadd.s32 17, %v6678_v16  ;;  %v2912_v14 = vsub.s32 %v6564_v54, %v2911_v51  ;;  %vm6719_vm1 = vmand %vm3031_vm7, %vm2997_vm6 }
 0x1c4   : > { %v2400_v47 = vmul.u32 272, %v2399_v12  ;;  %v2410_v8 = vshrl.u32 %v6668_v57, 8  ;;  %v2922_v61 = vmul.u32 17, %v2921_v41  ;;  %v2932_v60 = vshrl.u32 %v6659_v3, 4 }
 0x1c5   : > { %v3293_v33 = vadd.f32 %v3292_v23, %v3260_v11  ;;  %v3334_v46 = vmul.f32 %v4293_v24, %v3260_v11  ;;  %v3834_v37 = vpack.c.bf16 %v4294_v29, %v4293_v24  ;;  %v3261_v31 = vmul.f32 %v4294_v29, %v6401_v49  ;;  %v915_v44 = vpop.f32.mrb[40].mxu1 }
 0x1c6   : > { %v4097_v9 = vpop.f32.mrb[41].mxu1  ;;  %v6706_v26 = vmul.u32.u64.low 4042322161, %v6526_v43  ;;  %v6707_v17 = vmul.u32.u64.high 4042322161, %v6526_v43, %v6706_v26  ;;  %v6713_v54 = vsel %vm6686_vm0, 1.0, %v4653_v1  ;;  %v2401_v2 = vsub.s32 %v6480_v45, %v2400_v47 }
 0x1c7   : > { %v3367_v10 = vadd.f32 %v3366_v56, %v3334_v46  ;;  %3879 = vst [vmem:[%s6218_s9 + $0x48] sm:$0xff] %v3834_v37   ;;  %v3294_v28 = vadd.f32 %v3293_v33, %v3261_v31  ;;  %v3335_v38 = vmul.f32 %v4294_v29, %v3261_v31  ;;  %v918_v48 = vpop.f32.mrb[42].mxu1  ;;  %vm2904_vm4 = vcmp.lt.s32.totalorder %v6533_v34, 0 }
 0x1c8   : > { %v1758_v35 = vpop.f32.mrb[40].mxu0  ;;  %v4098_v23 = vpop.f32.mrb[43].mxu1  ;;  %v2913_v0 = vsub.s32 0, %v2912_v14  ;;  %v2411_v21 = vmul.u32 272, %v2410_v8  ;;  %v3133_v45 = vsel %vm6719_vm1, %v6700_v63, %v6678_v16  ;;  %v2923_v42 = vsub.s32 %v6609_v7, %v2922_v61 }
 0x1c9   : > { %v3368_v36 = vadd.f32 %v3367_v10, %v3335_v38  ;;  %v4295_v20 = vadd.f32 %v1758_v35, %v915_v44  ;;  %v4249_v50 = vpop.f32.mrb[41].mxu0  ;;  %v2933_v11 = vmul.u32 17, %v2932_v60  ;;  %vm2457_vm5 = vcmp.ne.s32.totalorder %v2401_v2, 0 }
 0x1ca   : > { %v1761_v15 = vpop.f32.mrb[42].mxu0  ;;  %vm2491_vm9 = vcmp.lt.s32.totalorder %v2401_v2, 0  ;;  %vm2915_vm10 = vcmp.lt.s32.totalorder %v6566_v58, 0  ;;  %v2412_v33 = vsub.s32 %v6490_v25, %v2411_v21  ;;  %v2421_v46 = vshrl.u32 %v6707_v17, 8 }
 0x1cb   : > { %v3262_v40 = vmul.f32 %v4295_v20, %v6486_v59  ;;  %v4296_v27 = vadd.f32 %v1761_v15, %v918_v48  ;;  %v4250_v56 = vpop.f32.mrb[43].mxu0  ;;  %v6727_v59 = vsel %vm6693_vm8, 1.0, %v4653_v1  ;;  %vm2525_vm2 = vmand %vm2491_vm9, %vm2457_vm5  ;;  %v6742_v30 = vsel %vm2904_vm4, %v2913_v0, %v2912_v14 }
 0x1cc   : > { %vm2926_vm11 = vcmp.lt.s32.totalorder %v6613_v39, 0  ;;  %v2924_v12 = vsub.s32 0, %v2923_v42  ;;  %vm2458_vm12 = vcmp.ne.s32.totalorder %v2412_v33, 0  ;;  %vm2492_vm13 = vcmp.lt.s32.totalorder %v2412_v33, 0 }
 0x1cd   : > { %v3295_v53 = vadd.f32 %v3294_v28, %v3262_v40  ;;  %v3336_v55 = vmul.f32 %v4295_v20, %v3262_v40  ;;  %v3839_v13 = vpack.c.bf16 %v4296_v27, %v4295_v20  ;;  %v3263_v3 = vmul.f32 %v4296_v27, %v6495_v32  ;;  %v923_v6 = vpop.f32.mrb[44].mxu1  ;;  %vm2526_vm15 = vmand %vm2492_vm13, %vm2458_vm12 }
 0x1ce   : > { %v4101_v57 = vpop.f32.mrb[45].mxu1  ;;  %v2559_v32 = vadd.s32 272, %v2401_v2  ;;  %v2934_v9 = vsub.s32 %v6632_v19, %v2933_v11  ;;  %vm2998_vm3 = vcmp.ne.s32.totalorder %v6742_v30, 0  ;;  %vm3032_vm14 = vcmp.lt.s32.totalorder %v6742_v30, 0 }
 0x1cf   : > { %v3369_v29 = vadd.f32 %v3368_v36, %v3336_v55  ;;  %3880 = vst [vmem:[%s6218_s9 + $0x50] sm:$0xff] %v3839_v13   ;;  %v3296_v18 = vadd.f32 %v3295_v53, %v3263_v3  ;;  %v3337_v5 = vmul.f32 %v4296_v27, %v3263_v3  ;;  %v926_v51 = vpop.f32.mrb[46].mxu1  ;;  %v2560_v34 = vadd.s32 272, %v2412_v33  ;;  %vm6783_vm1 = vmand %vm3032_vm14, %vm2998_vm3 }
 0x1d0   : > { %v1766_v62 = vpop.f32.mrb[44].mxu0  ;;  %v4102_v44 = vpop.f32.mrb[47].mxu1  ;;  %v6745_v10 = vsel %vm2525_vm2, %v2559_v32, %v2401_v2  ;;  %v2422_v35 = vmul.u32 272, %v2421_v46  ;;  %v6755_v50 = vsel %vm2915_vm10, %v2924_v12, %v2923_v42  ;;  %v2935_v26 = vsub.s32 0, %v2934_v9 }
 0x1d1   : > { %v3370_v37 = vadd.f32 %v3369_v29, %v3337_v5  ;;  %v4297_v7 = vadd.f32 %v1766_v62, %v923_v6  ;;  %v4253_v31 = vpop.f32.mrb[45].mxu0  ;;  %v2938_v49 = vsub.s32 0, %v6745_v10  ;;  %v6758_v23 = vsel %vm2526_vm15, %v2560_v34, %v2412_v33 }
 0x1d2   : > { %v1769_v41 = vpop.f32.mrb[46].mxu0  ;;  %v2423_v47 = vsub.s32 %v6526_v43, %v2422_v35  ;;  %v2949_v58 = vsub.s32 0, %v6758_v23  ;;  %vm6771_vm6 = vcmp.lt.s32.totalorder %v3133_v45, 16  ;;  %v3100_v13 = vadd.s32 17, %v6742_v30 }
 0x1d3   : > { %v3264_v25 = vmul.f32 %v4297_v7, %v6553_v22  ;;  %v4298_v28 = vadd.f32 %v1769_v41, %v926_v51  ;;  %v4254_v38 = vpop.f32.mrb[47].mxu0  ;;  %v3713_v19 = vmin.u32 %v2938_v49, %v6745_v10  ;;  %vm2999_vm7 = vcmp.ne.s32.totalorder %v6755_v50, 0 }
 0x1d4   : > { %vm2459_vm0 = vcmp.ne.s32.totalorder %v2423_v47, 0  ;;  %vm2493_vm8 = vcmp.lt.s32.totalorder %v2423_v47, 0  ;;  %v2561_v43 = vadd.s32 272, %v2423_v47  ;;  %v3714_v3 = vmin.u32 %v2949_v58, %v6758_v23 }
 0x1d5   : > { %v3297_v48 = vadd.f32 %v3296_v18, %v3264_v25  ;;  %v3338_v14 = vmul.f32 %v4297_v7, %v3264_v25  ;;  %v3844_v36 = vpack.c.bf16 %v4298_v28, %v4297_v7  ;;  %v3265_v20 = vmul.f32 %v4298_v28, %v6673_v52  ;;  %v931_v22 = vpop.f32.mrb[48].mxu1  ;;  %vm2527_vm4 = vmand %vm2493_vm8, %vm2459_vm0 }
 0x1d6   : > { %v4105_v60 = vpop.f32.mrb[49].mxu1  ;;  %v6762_v52 = vmul.u32.u64.low 4042322161, %v3713_v19  ;;  %v6763_v27 = vmul.u32.u64.high 4042322161, %v3713_v19, %v6762_v52  ;;  %vm3033_vm5 = vcmp.lt.s32.totalorder %v6755_v50, 0  ;;  %v6788_v63 = vsel %vm2527_vm4, %v2561_v43, %v2423_v47 }
 0x1d7   : > { %v3371_v8 = vadd.f32 %v3370_v37, %v3338_v14  ;;  %3881 = vst [vmem:[%s6218_s9 + $0x58] sm:$0xff] %v3844_v36   ;;  %v3298_v15 = vadd.f32 %v3297_v48, %v3265_v20  ;;  %v3339_v61 = vmul.f32 %v4298_v28, %v3265_v20  ;;  %v934_v40 = vpop.f32.mrb[50].mxu1  ;;  %v6792_v24 = vsel %vm2926_vm11, %v2935_v26, %v2934_v9  ;;  %vm6812_vm9 = vmand %vm3033_vm5, %vm2999_vm7 }
 0x1d8   : > { %v1774_v17 = vpop.f32.mrb[48].mxu0  ;;  %v4106_v21 = vpop.f32.mrb[51].mxu1  ;;  %v6795_v45 = vmul.u32.u64.low 4042322161, %v3714_v3  ;;  %v6796_v29 = vmul.u32.u64.high 4042322161, %v3714_v3, %v6795_v45  ;;  %v3743_v32 = vsel %vm6771_vm6, 1.0, %v4653_v1  ;;  %v3134_v39 = vsel %vm6783_vm1, %v3100_v13, %v6742_v30 }
 0x1d9   : > { %v3372_v56 = vadd.f32 %v3371_v8, %v3339_v61  ;;  %v4299_v2 = vadd.f32 %v1774_v17, %v931_v22  ;;  %v4257_v0 = vpop.f32.mrb[49].mxu0  ;;  %v2960_v46 = vsub.s32 0, %v6788_v63  ;;  %v3101_v41 = vadd.s32 17, %v6755_v50 }
 0x1da   : > { %v1777_v53 = vpop.f32.mrb[50].mxu0  ;;  %vm3000_vm10 = vcmp.ne.s32.totalorder %v6792_v24, 0  ;;  %v2954_v28 = vshrl.u32 %v6796_v29, 4  ;;  %vm3034_vm2 = vcmp.lt.s32.totalorder %v6792_v24, 0  ;;  %vm2937_vm11 = vcmp.lt.s32.totalorder %v6745_v10, 0 }
 0x1db   : > { %v3266_v6 = vmul.f32 %v4299_v2, %v6684_v4  ;;  %v4300_v42 = vadd.f32 %v1777_v53, %v934_v40  ;;  %v4258_v11 = vpop.f32.mrb[51].mxu0  ;;  %v2943_v4 = vshrl.u32 %v6763_v27, 4  ;;  %v3715_v38 = vmin.u32 %v2960_v46, %v6788_v63  ;;  %vm6838_vm15 = vmand %vm3034_vm2, %vm3000_vm10 }
 0x1dc   : > { %v2955_v36 = vmul.u32 17, %v2954_v28  ;;  %vm6825_vm12 = vcmp.lt.s32.totalorder %v3134_v39, 16  ;;  %v3135_v61 = vsel %vm6812_vm9, %v3101_v41, %v6755_v50  ;;  %v3102_v10 = vadd.s32 17, %v6792_v24 }
 0x1dd   : > { %v3299_v18 = vadd.f32 %v3298_v15, %v3266_v6  ;;  %v3340_v5 = vmul.f32 %v4299_v2, %v3266_v6  ;;  %v3849_v57 = vpack.c.bf16 %v4300_v42, %v4299_v2  ;;  %v3267_v62 = vmul.f32 %v4300_v42, %v6713_v54  ;;  %v939_v51 = vpop.f32.mrb[52].mxu1 }
 0x1de   : > { %v2944_v33 = vmul.u32 17, %v2943_v4  ;;  %v4109_v44 = vpop.f32.mrb[53].mxu1  ;;  %v6821_v20 = vmul.u32.u64.low 4042322161, %v3715_v38  ;;  %v6822_v22 = vmul.u32.u64.high 4042322161, %v3715_v38, %v6821_v20  ;;  %vm2948_vm13 = vcmp.lt.s32.totalorder %v6758_v23, 0 }
 0x1df   : > { %v3373_v37 = vadd.f32 %v3372_v56, %v3340_v5  ;;  %3882 = vst [vmem:[%s6218_s9 + $0x60] sm:$0xff] %v3849_v57   ;;  %v3300_v7 = vadd.f32 %v3299_v18, %v3267_v62  ;;  %v3341_v31 = vmul.f32 %v4300_v42, %v3267_v62  ;;  %v942_v12 = vpop.f32.mrb[54].mxu1  ;;  %v2956_v26 = vsub.s32 %v3714_v3, %v2955_v36 }
 0x1e0   : > { %v1782_v54 = vpop.f32.mrb[52].mxu0  ;;  %v2945_v30 = vsub.s32 %v3713_v19, %v2944_v33  ;;  %v4110_v35 = vpop.f32.mrb[55].mxu1  ;;  %vm6842_vm3 = vcmp.lt.s32.totalorder %v3135_v61, 16  ;;  %v2965_v53 = vshrl.u32 %v6822_v22, 4  ;;  %v3744_v13 = vsel %vm6825_vm12, 1.0, %v4653_v1 }
 0x1e1   : > { %v3374_v9 = vadd.f32 %v3373_v37, %v3341_v31  ;;  %v4301_v49 = vadd.f32 %v1782_v54, %v939_v51  ;;  %v4261_v34 = vpop.f32.mrb[53].mxu0  ;;  %v2957_v56 = vsub.s32 0, %v2956_v26  ;;  %v3136_v6 = vsel %vm6838_vm15, %v3102_v10, %v6792_v24 }
 0x1e2   : > { %v1785_v48 = vpop.f32.mrb[54].mxu0  ;;  %v2946_v14 = vsub.s32 0, %v2945_v30  ;;  %v3745_v57 = vsel %vm6842_vm3, 1.0, %v4653_v1  ;;  %v2966_v24 = vmul.u32 17, %v2965_v53  ;;  %vm6865_vm4 = vcmp.lt.s32.totalorder %v3136_v6, 16 }
 0x1e3   : > { %v3268_v19 = vmul.f32 %v4301_v49, %v6727_v59  ;;  %v4302_v47 = vadd.f32 %v1785_v48, %v942_v12  ;;  %v4262_v8 = vpop.f32.mrb[55].mxu0  ;;  %v2958_v11 = vsel %vm2948_vm13, %v2957_v56, %v2956_v26  ;;  %vm2959_vm1 = vcmp.lt.s32.totalorder %v6788_v63, 0 }
 0x1e4   : > { %v2947_v60 = vsel %vm2937_vm11, %v2946_v14, %v2945_v30  ;;  %vm3002_vm6 = vcmp.ne.s32.totalorder %v2958_v11, 0  ;;  %vm3036_vm7 = vcmp.lt.s32.totalorder %v2958_v11, 0  ;;  %v3104_v33 = vadd.s32 17, %v2958_v11 }
 0x1e5   : > { %v3301_v17 = vadd.f32 %v3300_v7, %v3268_v19  ;;  %v3342_v40 = vmul.f32 %v4301_v49, %v3268_v19  ;;  %v3854_v59 = vpack.c.bf16 %v4302_v47, %v4301_v49  ;;  %v3269_v52 = vmul.f32 %v4302_v47, %v3743_v32  ;;  %v947_v50 = vpop.f32.mrb[56].mxu1  ;;  %vm6873_vm5 = vmand %vm3036_vm7, %vm3002_vm6 }
 0x1e6   : > { %vm3001_vm14 = vcmp.ne.s32.totalorder %v2947_v60, 0  ;;  %vm3035_vm0 = vcmp.lt.s32.totalorder %v2947_v60, 0  ;;  %v4113_v43 = vpop.f32.mrb[57].mxu1  ;;  %v3103_v42 = vadd.s32 17, %v2947_v60  ;;  %v2967_v46 = vsub.s32 %v3715_v38, %v2966_v24 }
 0x1e7   : > { %v3375_v2 = vadd.f32 %v3374_v9, %v3342_v40  ;;  %3883 = vst [vmem:[%s6218_s9 + $0x68] sm:$0xff] %v3854_v59   ;;  %v3302_v0 = vadd.f32 %v3301_v17, %v3269_v52  ;;  %v3343_v21 = vmul.f32 %v4302_v47, %v3269_v52  ;;  %v950_v3 = vpop.f32.mrb[58].mxu1  ;;  %vm6858_vm8 = vmand %vm3035_vm0, %vm3001_vm14  ;;  %v3746_v38 = vsel %vm6865_vm4, 1.0, %v4653_v1 }
 0x1e8   : > { %v1790_v55 = vpop.f32.mrb[56].mxu0  ;;  %v4114_v29 = vpop.f32.mrb[59].mxu1  ;;  %v3137_v39 = vsel %vm6858_vm8, %v3103_v42, %v2947_v60  ;;  %v2968_v12 = vsub.s32 0, %v2967_v46  ;;  %v3138_v35 = vsel %vm6873_vm5, %v3104_v33, %v2958_v11 }
 0x1e9   : > { %v3376_v16 = vadd.f32 %v3375_v2, %v3343_v21  ;;  %v4303_v4 = vadd.f32 %v1790_v55, %v947_v50  ;;  %v4265_v45 = vpop.f32.mrb[57].mxu0  ;;  %vm3171_vm9 = vcmp.lt.s32.totalorder %v3137_v39, 16  ;;  %vm3172_vm12 = vcmp.lt.s32.totalorder %v3138_v35, 16 }
 0x1ea   : > { %v1793_v5 = vpop.f32.mrb[58].mxu0  ;;  %v2969_v48 = vsel %vm2959_vm1, %v2968_v12, %v2967_v46  ;;  %v3747_v47 = vsel %vm3171_vm9, 1.0, %v4653_v1 }
 0x1eb   : > { %v3270_v23 = vmul.f32 %v4303_v4, %v3744_v13  ;;  %v4304_v62 = vadd.f32 %v1793_v5, %v950_v3  ;;  %v4266_v51 = vpop.f32.mrb[59].mxu0  ;;  %vm3003_vm10 = vcmp.ne.s32.totalorder %v2969_v48, 0  ;;  %vm3037_vm2 = vcmp.lt.s32.totalorder %v2969_v48, 0 }
 0x1ec   : > { %vm6886_vm11 = vmand %vm3037_vm2, %vm3003_vm10  ;;  %v3105_v15 = vadd.s32 17, %v2969_v48 }
 0x1ed   : > { %v3303_v37 = vadd.f32 %v3302_v0, %v3270_v23  ;;  %v3344_v7 = vmul.f32 %v4303_v4, %v3270_v23  ;;  %v3859_v31 = vpack.c.bf16 %v4304_v62, %v4303_v4  ;;  %v3271_v44 = vmul.f32 %v4304_v62, %v3745_v57  ;;  %v955_v54 = vpop.f32.mrb[60].mxu1 }
 0x1ee   : > { %v4117_v9 = vpop.f32.mrb[61].mxu1  ;;  %v3139_v63 = vsel %vm6886_vm11, %v3105_v15, %v2969_v48  ;;  %v3748_v0 = vsel %vm3172_vm12, 1.0, %v4653_v1 }
 0x1ef   : > { %v3377_v25 = vadd.f32 %v3376_v16, %v3344_v7  ;;  %3884 = vst [vmem:[%s6218_s9 + $0x70] sm:$0xff] %v3859_v31   ;;  %v3304_v30 = vadd.f32 %v3303_v37, %v3271_v44  ;;  %v3345_v28 = vmul.f32 %v4304_v62, %v3271_v44  ;;  %v958_v34 = vpop.f32.mrb[62].mxu1  ;;  %vm3173_vm13 = vcmp.lt.s32.totalorder %v3139_v63, 16 }
 0x1f0   : > { %v1798_v49 = vpop.f32.mrb[60].mxu0  ;;  %v4118_v22 = vpop.f32.mrb[63].mxu1  ;;  %v3749_v6 = vsel %vm3173_vm13, 1.0, %v4653_v1 }
 0x1f1   : > { %v3378_v14 = vadd.f32 %v3377_v25, %v3345_v28  ;;  %v4305_v36 = vadd.f32 %v1798_v49, %v955_v54  ;;  %v4269_v20 = vpop.f32.mrb[61].mxu0 }
 0x1f2   : > { %v1801_v19 = vpop.f32.mrb[62].mxu0 }
 0x1f3   : > { %v3272_v61 = vmul.f32 %v4305_v36, %v3746_v38  ;;  %v4306_v10 = vadd.f32 %v1801_v19, %v958_v34  ;;  %v4270_v60 = vpop.f32.mrb[63].mxu0 }
 0x1f5   : > { %v3305_v26 = vadd.f32 %v3304_v30, %v3272_v61  ;;  %v3346_v17 = vmul.f32 %v4305_v36, %v3272_v61  ;;  %v3864_v40 = vpack.c.bf16 %v4306_v10, %v4305_v36  ;;  %v3273_v59 = vmul.f32 %v4306_v10, %v3747_v47  ;;  %v963_v52 = vpop.f32.mrb[64].mxu1 }
 0x1f6   : > { %v4121_v56 = vpop.f32.mrb[65].mxu1 }
 0x1f7   : > { %v3379_v27 = vadd.f32 %v3378_v14, %v3346_v17  ;;  %3885 = vst [vmem:[%s6218_s9 + $0x78] sm:$0xff] %v3864_v40   ;;  %v3306_v50 = vadd.f32 %v3305_v26, %v3273_v59  ;;  %v3347_v58 = vmul.f32 %v4306_v10, %v3273_v59  ;;  %v966_v21 = vpop.f32.mrb[66].mxu1 }
 0x1f8   : > { %v1806_v2 = vpop.f32.mrb[64].mxu0  ;;  %v4122_v13 = vpop.f32.mrb[67].mxu1 }
 0x1f9   : > { %v3380_v43 = vadd.f32 %v3379_v27, %v3347_v58  ;;  %v4307_v53 = vadd.f32 %v1806_v2, %v963_v52  ;;  %v4273_v55 = vpop.f32.mrb[65].mxu0 }
 0x1fa   : > { %v1809_v3 = vpop.f32.mrb[66].mxu0 }
 0x1fb   : > { %v3274_v42 = vmul.f32 %v4307_v53, %v3748_v0  ;;  %v4308_v11 = vadd.f32 %v1809_v3, %v966_v21  ;;  %v4274_v16 = vpop.f32.mrb[67].mxu0 }
 0x1fd   : > { %v3307_v4 = vadd.f32 %v3306_v50, %v3274_v42  ;;  %v3348_v45 = vmul.f32 %v4307_v53, %v3274_v42  ;;  %v3869_v29 = vpack.c.bf16 %v4308_v11, %v4307_v53  ;;  %v3275_v18 = vmul.f32 %v4308_v11, %v3749_v6 }
 0x1ff   : > { %v3381_v5 = vadd.f32 %v3380_v43, %v3348_v45  ;;  %3886 = vst [vmem:[%s6218_s9 + $0x80] sm:$0xff] %v3869_v29   ;;  %v3308_v57 = vadd.f32 %v3307_v4, %v3275_v18  ;;  %v3349_v24 = vmul.f32 %v4308_v11, %v3275_v18 }
 0x201   : > { %v3309_v23 = vrot.slane %v3308_v57, 4  ;;  %v3382_v62 = vadd.f32 %v3381_v5, %v3349_v24 }
 0x203   : > { %v3310_v51 = vadd.f32 %v3309_v23, %v3308_v57  ;;  %v3383_v32 = vrot.slane %v3382_v62, 4 }
 0x205   : > { %v3311_v39 = vrot.slane %v3310_v51, 2  ;;  %v3384_v33 = vadd.f32 %v3383_v32, %v3382_v62 }
 0x207   : > { %v3312_v1 = vadd.f32 %v3311_v39, %v3310_v51  ;;  %v3385_v46 = vrot.slane %v3384_v33, 2 }
 0x209   : > { %v3313_v37 = vrot.slane %v3312_v1, 1  ;;  %v3386_v7 = vadd.f32 %v3385_v46, %v3384_v33 }
 0x20b   : > { %v3314_v31 = vadd.f32 %v3313_v37, %v3312_v1  ;;  %v3387_v44 = vrot.slane %v3386_v7, 1 }
 0x20d   : > { %3315 = vst [vmem:[%s212_s12] sm:$0x1] %v3314_v31  ;;  %v3388_v41 = vadd.f32 %v3387_v44, %v3386_v7 }
 0x20f   : > { %3389 = vst [vmem:[%s215_s17] sm:$0x1] %v3388_v41 }
 0x210 PF: > { %s15_s15 = sadd.s32 1, %s4651_s15  }
 0x211   : > { %p12_p5 = scmp.ge.s32.totalorder %s15_s15, 4  }
 0x213   :  { %14 = sbr.rel (!%p12_p5) target bundleno = 1 (0x1), region = 85 }

// kernel: dcgan_discriminator_forward.6
= control target key start
LH: loop header
LB: loop body
LE: loop exit
PB: predicated region body
PF: predicated region fallthrough
CT: control target
= control target key end

     0   :  { %s2022_s15 = smov 0   ;;  %s2553_s0 = inlined_call_operand.vmem [shape: bf16[2,82,128], index: 0, kind: input, shape index: {}]   ;;  %s2554_s1 = inlined_call_operand.vmem [shape: bf16[4,128,128], index: 1, kind: input, shape index: {}]   ;;  %s2555_s2 = inlined_call_operand.vmem [shape: bf16[144,128], index: 2, kind: output, shape index: {0}]   ;;  %s2556_s3 = inlined_call_operand.vmem [shape: f32[2,1,128], index: 3, kind: output, shape index: {1}]   ;;  %s2557_s4 = inlined_call_operand.vmem [shape: f32[2,1,128], index: 4, kind: output, shape index: {2}]  }
   0x1 LB: > { %s2028_s16 = sadd.s32 4294967295, %s1993_s15   ;;  %p1495_p0 = scmp.ge.s32.totalorder %s1993_s15, 1  ;;  %s1993_s15 = sphi %s2022_s15, %s15_s15  }
   0x2   : > { %p167_p1 = scmp.lt.s32.totalorder %s1993_s15, 3 }
   0x4   : > { %p168_p2 = pnand %p1495_p0, %p167_p1 }
   0x5   : > { %v1943_v0 = vld [vmem:[%s2554_s1 + $0x40] sm:$0xff] (!%p168_p2)   ;;  %v1995_v1 = vmov (!%p168_p2), 0.0   ;;  %v1945_v3 = vld [vmem:[%s2554_s1 + $0x48] sm:$0xff] (!%p168_p2)   ;;  %vm1996_vm0 = vmmov (!%p168_p2), 0   ;;  %p199_p3 = scmp.lt.s32.totalorder (!%p168_p2), %s2028_s16, 1  ;;  %v1947_v5 = vld [vmem:[%s2554_s1 + $0x50] sm:$0xff] (!%p168_p2)  }
   0x6   : > { %171 = sbr.rel (%p168_p2) target bundleno = 344 (0x158), region = 28  ;;  %1703 = vmatprep.subr.bf16.mxu1 (!%p168_p2), %v1995_v1  ;;  %1775 = vmatprep.subr.bf16.mxu0 (!%p168_p2), %v1995_v1  ;;  %v1944_v2 = vld [vmem:[%s2554_s1 + $0x80] sm:$0xff] (!%p168_p2)   ;;  %v1946_v4 = vld [vmem:[%s2554_s1 + $0x88] sm:$0xff] (!%p168_p2)   ;;  %v1948_v6 = vld [vmem:[%s2554_s1 + $0x90] sm:$0xff] (!%p168_p2)   ;;  %vm285_vm1 = vsmask.f32 (!%p168_p2), 7424 }
   0x7   : > { %1704 = vmatpush3.bf16.msra.mxu1 (!%p168_p2), %v1943_v0  ;;  %1719 = vmatprep.mubr.msk.bf16.mxu1 (!%p168_p2), %vm1996_vm0, %v1995_v1  ;;  %v1949_v7 = vld [vmem:[%s2554_s1 + $0x58] sm:$0xff] (!%p168_p2)   ;;  %v1951_v9 = vld [vmem:[%s2554_s1 + $0x60] sm:$0xff] (!%p168_p2)   ;;  %v1953_v11 = vld [vmem:[%s2554_s1 + $0x68] sm:$0xff] (!%p168_p2)   ;;  %vm822_vm2 = vcmask (!%p168_p2), 1046528  }
   0x8   : > { %1776 = vmatpush3.bf16.msra.mxu0 (!%p168_p2), %v1944_v2  ;;  %1705 = vmatprep.subr.bf16.mxu1 (!%p168_p2), %v1995_v1  ;;  %v1950_v8 = vld [vmem:[%s2554_s1 + $0x98] sm:$0xff] (!%p168_p2)   ;;  %v1952_v10 = vld [vmem:[%s2554_s1 + $0xa0] sm:$0xff] (!%p168_p2)   ;;  %v1954_v16 = vld [vmem:[%s2554_s1 + $0xa8] sm:$0xff] (!%p168_p2)  }
   0x9   : > { %1777 = vmatprep.subr.bf16.mxu0 (!%p168_p2), %v1995_v1  ;;  %1791 = vmatprep.mubr.msk.bf16.mxu0 (!%p168_p2), %vm1996_vm0, %v1995_v1  ;;  %v1955_v20 = vld [vmem:[%s2554_s1 + $0x70] sm:$0xff] (!%p168_p2)   ;;  %v1957_v29 = vld [vmem:[%s2554_s1 + $0x78] sm:$0xff] (!%p168_p2)   ;;  %v1963_v37 = vld [vmem:[%s2554_s1] sm:$0xff] (!%p168_p2)  }
   0xa   : > { %v1956_v21 = vld [vmem:[%s2554_s1 + $0xb0] sm:$0xff] (!%p168_p2)   ;;  %v1958_v30 = vld [vmem:[%s2554_s1 + $0xb8] sm:$0xff] (!%p168_p2)   ;;  %v1964_v40 = vld [vmem:[%s2554_s1 + $0xc0] sm:$0xff] (!%p168_p2)  }
   0xb   : > { %1706 = vmatpush3.bf16.msra.mxu1 (!%p168_p2), %v1945_v3  ;;  %v1965_v47 = vld [vmem:[%s2554_s1 + $0x8] sm:$0xff] (!%p168_p2)   ;;  %v1969_v53 = vld [vmem:[%s2554_s1 + $0x10] sm:$0xff] (!%p168_p2)   ;;  %v1972_v0 = vld [vmem:[%s2554_s1 + $0x18] sm:$0xff] (!%p168_p2)  }
   0xc   : > { %1778 = vmatpush3.bf16.msra.mxu0 (!%p168_p2), %v1946_v4  ;;  %1707 = vmatprep.subr.bf16.mxu1 (!%p168_p2), %v1995_v1  ;;  %v1966_v50 = vld [vmem:[%s2554_s1 + $0xc8] sm:$0xff] (!%p168_p2)   ;;  %v1970_v56 = vld [vmem:[%s2554_s1 + $0xd0] sm:$0xff] (!%p168_p2)  }
   0xd   : > { %s2057_s27 = scalar_select %p199_p3, %s2028_s16, 1  ;;  %1779 = vmatprep.subr.bf16.mxu0 %v1995_v1 }
   0xf   : > { %1708 = vmatpush3.bf16.msra.mxu1 %v1947_v5  ;;  %s1896_s6 = smul.u32 44, %s2057_s27  ;;  %s212_s24 = scalar_lea.vmem %s2556_s3, %s2057_s27 }
  0x10   : > { %1780 = vmatpush3.bf16.msra.mxu0 %v1948_v6  ;;  %1709 = vmatprep.subr.bf16.mxu1 %v1995_v1  ;;  %v1974_v6 = vld [vmem:[%s2554_s1 + $0xd8] sm:$0xff]   ;;  %s215_s28 = scalar_lea.vmem %s2557_s4, %s2057_s27 }
  0x11   : > { %1781 = vmatprep.subr.bf16.mxu0 %v1995_v1  ;;  %s2079_s13 = scalar_lea.vmem %s2553_s0, %s1896_s6 }
  0x12   : > { %v2090_v12 = vld [vmem:[%s2079_s13] sm:$0xff]   ;;  %v2093_v13 = vld [vmem:[%s2079_s13 + $0x8] sm:$0xff]   ;;  %v2127_v33 = vld [vmem:[%s2079_s13 + $0x10] sm:$0xff]  }
  0x13   : > { %1710 = vmatpush3.bf16.msra.mxu1 %v1949_v7  ;;  %v576_v14 = vld [vmem:[%s2079_s13 + $0x4] sm:$0xf]  ;;  %v2097_v15 = vld [vmem:[%s2079_s13 + $0x8] sm:$0xf]  ;;  %v289_v17 = vshll.u32 %v2090_v12, 16  ;;  %v2106_v19 = vld [vmem:[%s2079_s13 + $0xc] sm:$0xff]  }
  0x14   : > { %1782 = vmatpush3.bf16.msra.mxu0 %v1950_v8  ;;  %1711 = vmatprep.subr.bf16.mxu1 %v1995_v1  ;;  %v1552_v18 = vcombine.low %v576_v14, %v2097_v15  ;;  %v287_v22 = vshrl.u32 %v2090_v12, 16  ;;  %v294_v23 = vshll.u32 %v2093_v13, 16  ;;  %v636_v28 = vshll.u32 %v2106_v19, 16  ;;  %v2131_v36 = vld [vmem:[%s2079_s13 + $0x14] sm:$0xff]   ;;  %v2152_v46 = vld [vmem:[%s2079_s13 + $0x1c] sm:$0xff]  }
  0x15   : > { %1783 = vmatprep.subr.bf16.mxu0 %v1995_v1  ;;  %v291_v25 = vrot.slane %v289_v17, 1  ;;  %v298_v38 = vshrl.u32 %v2093_v13, 16  ;;  %v302_v41 = vshll.u32 %v2127_v33, 16  ;;  %v640_v43 = vshrl.u32 %v2106_v19, 16  ;;  %v2149_v45 = vld [vmem:[%s2079_s13 + $0x18] sm:$0xff]  }
  0x16   : > { %v631_v24 = vshll.u32 %v1552_v18, 16  ;;  %v629_v26 = vshrl.u32 %v1552_v18, 16  ;;  %v296_v32 = vrot.slane %v294_v23, 1  ;;  %v638_v35 = vrot.slane %v636_v28, 1  ;;  %v2178_v60 = vld [vmem:[%s2079_s13 + $0x20] sm:$0xf] }
  0x17   : > { %1712 = vmatpush3.bf16.msra.mxu1 %v1951_v9  ;;  %v292_v31 = vor.u32 %v291_v25, %v287_v22  ;;  %v644_v44 = vshll.u32 %v2131_v36, 16  ;;  %v304_v49 = vrot.slane %v302_v41, 1  ;;  %v306_v54 = vshrl.u32 %v2127_v33, 16  ;;  %v242_v62 = vld [vmem:[%s2079_s13 + $0x24] sm:$0x1]  ;;  %v1979_v22 = vld [vmem:[%s2554_s1 + $0x28] sm:$0xff]  }
  0x18   : > { %1784 = vmatpush3.bf16.msra.mxu0 %v1952_v10  ;;  %1713 = vmatprep.subr.bf16.mxu1 %v1995_v1  ;;  %v633_v27 = vrot.slane %v631_v24, 1  ;;  %v300_v48 = vor.u32 %v298_v38, %v296_v32  ;;  %v642_v51 = vor.u32 %v640_v43, %v638_v35  ;;  %v310_v55 = vshll.u32 %v2149_v45, 16  ;;  %v2194_v7 = vld [vmem:[%s2079_s13 + $0x24] sm:$0x1f]   ;;  %v1981_v28 = vld [vmem:[%s2554_s1 + $0x30] sm:$0xff]  }
  0x19   : > { %1785 = vmatprep.subr.bf16.mxu0 %v1995_v1  ;;  %v297_v39 = vsel %vm285_vm1, %v292_v31, %v296_v32  ;;  %v646_v52 = vrot.slane %v644_v44, 1  ;;  %v648_v57 = vshrl.u32 %v2131_v36, 16  ;;  %v652_v58 = vshll.u32 %v2152_v46, 16  ;;  %v1975_v9 = vld [vmem:[%s2554_s1 + $0x20] sm:$0xff]   ;;  %v1980_v25 = vld [vmem:[%s2554_s1 + $0xe8] sm:$0xff]   ;;  %v1983_v32 = vld [vmem:[%s2554_s1 + $0x38] sm:$0xff]  }
  0x1a   : > { %v634_v34 = vor.u32 %v633_v27, %v629_v26  ;;  %v305_v59 = vsel %vm285_vm1, %v300_v48, %v304_v49  ;;  %v312_v63 = vrot.slane %v310_v55, 1  ;;  %v308_v2 = vor.u32 %v306_v54, %v304_v49 }
  0x1b   : > { %1714 = vmatpush3.bf16.msra.mxu1 %v1953_v11  ;;  %v647_v61 = vsel %vm285_vm1, %v642_v51, %v646_v52  ;;  %v1518_v3 = vcombine.low %v2178_v60, %v242_v62  ;;  %v650_v4 = vor.u32 %v648_v57, %v646_v52  ;;  %v654_v5 = vrot.slane %v652_v58, 1 }
  0x1c   : > { %1786 = vmatpush3.bf16.msra.mxu0 %v1954_v16  ;;  %1715 = vmatprep.subr.bf16.mxu1 %v1995_v1  ;;  %v639_v42 = vsel %vm285_vm1, %v634_v34, %v638_v35  ;;  %v313_v8 = vsel %vm285_vm1, %v308_v2, %v312_v63  ;;  %v314_v10 = vshrl.u32 %v2149_v45, 16  ;;  %v1976_v16 = vld [vmem:[%s2554_s1 + $0xe0] sm:$0xff]   ;;  %v656_v17 = vshrl.u32 %v2152_v46, 16  ;;  %v1984_v34 = vld [vmem:[%s2554_s1 + $0xf8] sm:$0xff]  }
  0x1d   : > { %1787 = vmatprep.subr.bf16.mxu0 %v1995_v1  ;;  %v318_v11 = vshll.u32 %v1518_v3, 16  ;;  %v655_v14 = vsel %vm285_vm1, %v650_v4, %v654_v5  ;;  %v660_v18 = vshll.u32 %v2194_v7, 16  ;;  %v664_v31 = vshrl.u32 %v2194_v7, 16  ;;  %v801_v35 = vld [vmem:[%s2079_s13 + $0x4] sm:$0xe]  ;;  %s204_s13 = smul.u32 9, %s2028_s16 }
  0x1e   : > { %v658_v23 = vor.u32 %v656_v17, %v654_v5  ;;  %v824_v41 = vrot.slane %v2106_v19, 1  ;;  %v1012_v44 = vlaneseq }
  0x1f   : > { %1716 = vmatpush3.bf16.msra.mxu1 %v1955_v20  ;;  %v316_v20 = vor.u32 %v314_v10, %v312_v63  ;;  %v662_v24 = vrot.slane %v660_v18, 1  ;;  %p2414_p4 = scmp.lt.s32.totalorder %s204_s13, 17 }
  0x20   : > { %1788 = vmatpush3.bf16.msra.mxu0 %v1956_v21  ;;  %1717 = vmatprep.subr.bf16.mxu1 %v1995_v1  ;;  %v320_v21 = vrot.slane %v318_v11, 1 }
  0x21   : > { %1789 = vmatprep.subr.bf16.mxu0 %v1995_v1  ;;  %v663_v27 = vsel %vm285_vm1, %v658_v23, %v662_v24  ;;  %v666_v38 = vor.u32 %v664_v31, %v662_v24  ;;  %s2584_s13 = smov (!%p2414_p4, %s204_s13), 17 }
  0x22   : > { %v321_v26 = vsel %vm285_vm1, %v316_v20, %v320_v21  ;;  %s1497_s18 = sshll.u32 %s2584_s13, 2 }
  0x23   : > { %1718 = vmatpush3.bf16.msra.mxu1 %v1957_v29  ;;  %v1982_v29 = vld [vmem:[%s2554_s1 + $0xf0] sm:$0xff]   ;;  %s2470_s21 = scalar_lea.vmem %s2555_s2, %s1497_s18 }
  0x24   : > { %1790 = vmatpush3.bf16.msra.mxu0 %v1958_v30  ;;  %1739 = vmatprep.subr.bf16.mxu1 %v1995_v1  ;;  %v322_v30 = vshrl.u32 %v1518_v3, 16 }
  0x25   : > { %1811 = vmatprep.subr.bf16.mxu0 %v1995_v1 }
  0x26   : > { %1720 = vmatmul.mubr.bf16.vlgmr.msra.gmra.mrb[0].mxu1 %v297_v39  ;;  %v1581_v39 = vcombine.low %v801_v35, %v2097_v15  ;;  %v826_v15 = vrot.slane %v2131_v36, 1 }
  0x27   : > { %1792 = vmatmul.mubr.bf16.vlgmr.msra.gmra.mrb[0].mxu0 %v639_v42  ;;  %1740 = vmatpush3.bf16.msra.mxu1 %v1963_v37  ;;  %v324_v37 = vor.u32 %v322_v30, %v320_v21 }
  0x28   : > { %1812 = vmatpush3.bf16.msra.mxu0 %v1964_v40  ;;  %1741 = vmatprep.subr.bf16.mxu1 %v1995_v1  ;;  %v823_v40 = vrot.slane %v1581_v39, 1  ;;  %v827_v43 = vsel %vm822_vm2, %v824_v41, %v826_v15 }
  0x29   : > { %1813 = vmatprep.subr.bf16.mxu0 %v1995_v1  ;;  %1723 = vmatprep.mubr.msk.bf16.mxu1 %vm1996_vm0, %v1995_v1 }
  0x2a   : > { %1795 = vmatprep.mubr.msk.bf16.mxu0 %vm1996_vm0, %v1995_v1  ;;  %v825_v42 = vsel %vm822_vm2, %v823_v40, %v824_v41 }
  0x2b   : > { %1742 = vmatpush3.bf16.msra.mxu1 %v1965_v47 }
  0x2c   : > { %1814 = vmatpush3.bf16.msra.mxu0 %v1966_v50  ;;  %1743 = vmatprep.subr.bf16.mxu1 %v1995_v1 }
  0x2d   : > { %1815 = vmatprep.subr.bf16.mxu0 %v1995_v1 }
  0x2e   : > { %1724 = vmatmul.mubr.bf16.gmra.mrb[4].mxu1 %v305_v59 }
  0x2f   : > { %1796 = vmatmul.mubr.bf16.gmra.mrb[4].mxu0 %v647_v61  ;;  %1744 = vmatpush3.bf16.msra.mxu1 %v1969_v53 }
  0x30   : > { %1816 = vmatpush3.bf16.msra.mxu0 %v1970_v56  ;;  %1727 = vmatprep.mubr.msk.bf16.mxu1 %vm1996_vm0, %v1995_v1 }
  0x31   : > { %1745 = vmatprep.subr.bf16.mxu1 %v1995_v1  ;;  %1799 = vmatprep.mubr.msk.bf16.mxu0 %vm1996_vm0, %v1995_v1 }
  0x32   : > { %1817 = vmatprep.subr.bf16.mxu0 %v1995_v1 }
  0x33   : > { %1746 = vmatpush3.bf16.msra.mxu1 %v1972_v0 }
  0x34   : > { %1818 = vmatpush3.bf16.msra.mxu0 %v1974_v6  ;;  %1747 = vmatprep.subr.bf16.mxu1 %v1995_v1 }
  0x35   : > { %1819 = vmatprep.subr.bf16.mxu0 %v1995_v1 }
  0x36   : > { %1728 = vmatmul.mubr.bf16.gmra.mrb[8].mxu1 %v313_v8 }
  0x37   : > { %1800 = vmatmul.mubr.bf16.gmra.mrb[8].mxu0 %v655_v14  ;;  %1748 = vmatpush3.bf16.msra.mxu1 %v1975_v9 }
  0x38   : > { %1820 = vmatpush3.bf16.msra.mxu0 %v1976_v16  ;;  %1731 = vmatprep.mubr.msk.bf16.mxu1 %vm1996_vm0, %v1995_v1 }
  0x39   : > { %1803 = vmatprep.mubr.msk.bf16.mxu0 %vm1996_vm0, %v1995_v1  ;;  %1749 = vmatprep.subr.bf16.mxu1 %v1995_v1 }
  0x3a   : > { %1821 = vmatprep.subr.bf16.mxu0 %v1995_v1 }
  0x3b   : > { %1750 = vmatpush3.bf16.msra.mxu1 %v1979_v22 }
  0x3c   : > { %1822 = vmatpush3.bf16.msra.mxu0 %v1980_v25  ;;  %1751 = vmatprep.subr.bf16.mxu1 %v1995_v1 }
  0x3d   : > { %1823 = vmatprep.subr.bf16.mxu0 %v1995_v1 }
  0x3e   : > { %1732 = vmatmul.mubr.bf16.gmra.mrb[12].mxu1 %v321_v26 }
  0x3f   : > { %1804 = vmatmul.mubr.bf16.gmra.mrb[12].mxu0 %v663_v27  ;;  %1735 = vmatprep.mubr.msk.bf16.mxu1 %vm1996_vm0, %v1995_v1 }
  0x40   : > { %1752 = vmatpush3.bf16.msra.mxu1 %v1981_v28  ;;  %1807 = vmatprep.mubr.msk.bf16.mxu0 %vm1996_vm0, %v1995_v1 }
  0x41   : > { %1824 = vmatpush3.bf16.msra.mxu0 %v1982_v29  ;;  %1753 = vmatprep.subr.bf16.mxu1 %v1995_v1 }
  0x42   : > { %1825 = vmatprep.subr.bf16.mxu0 %v1995_v1 }
  0x44   : > { %1754 = vmatpush3.bf16.msra.mxu1 %v1983_v32 }
  0x45   : > { %1826 = vmatpush3.bf16.msra.mxu0 %v1984_v34 }
  0x46   : > { %1736 = vmatmul.mubr.bf16.gmra.mrb[16].mxu1 %v324_v37 }
  0x47   : > { %1808 = vmatmul.mubr.bf16.gmra.mrb[16].mxu0 %v666_v38  ;;  %1755 = vmatprep.mubr.msk.bf16.mxu1 %vm1996_vm0, %v1995_v1 }
  0x48   : > { %1827 = vmatprep.mubr.msk.bf16.mxu0 %vm1996_vm0, %v1995_v1 }
  0x4e   : > { %1756 = vmatmul.mubr.bf16.vlgmr.msra.gmra.mrb[0].mxu1 %v2090_v12  ;;  %v828_v12 = vrot.slane %v2152_v46, 1  ;;  %v1013_v46 = vshrl.u32 %v1012_v44, 7 }
  0x4f   : > { %1828 = vmatmul.mubr.bf16.vlgmr.msra.gmra.mrb[0].mxu0 %v825_v42  ;;  %1759 = vmatprep.mubr.msk.bf16.mxu1 %vm1996_vm0, %v1995_v1 }
  0x50   : > { %1831 = vmatprep.mubr.msk.bf16.mxu0 %vm1996_vm0, %v1995_v1  ;;  %v829_v19 = vsel %vm822_vm2, %v826_v15, %v828_v12  ;;  %v1014_v47 = vadd.s32 8, %v1013_v46  ;;  %v2284_v48 = vmul.u32.u64.low 3817748708, %v1013_v46  ;;  %v2285_v49 = vmul.u32.u64.high 3817748708, %v1013_v46, %v2284_v48 }
  0x51   : > { %v1015_v51 = vadd.s32 16, %v1013_v46  ;;  %v1016_v52 = vadd.s32 24, %v1013_v46  ;;  %v1017_v59 = vadd.s32 32, %v1013_v46  ;;  %v1018_v2 = vadd.s32 40, %v1013_v46 }
  0x52   : > { %v1028_v53 = vshrl.u32 %v2285_v49, 6  ;;  %v1019_v6 = vadd.s32 48, %v1013_v46  ;;  %v1020_v20 = vadd.s32 56, %v1013_v46  ;;  %v1021_v30 = vadd.s32 64, %v1013_v46 }
  0x53   : > { %v2291_v54 = vmul.u32.u64.low 3817748708, %v1015_v51  ;;  %v2292_v55 = vmul.u32.u64.high 3817748708, %v1015_v51, %v2291_v54  ;;  %v2295_v57 = vmul.u32.u64.low 3817748708, %v1016_v52  ;;  %v2296_v58 = vmul.u32.u64.high 3817748708, %v1016_v52, %v2295_v57 }
  0x54   : > { %v2298_v62 = vmul.u32.u64.low 3817748708, %v1017_v59  ;;  %v2299_v63 = vmul.u32.u64.high 3817748708, %v1017_v59, %v2298_v62  ;;  %v2307_v16 = vmul.u32.u64.low 3817748708, %v1019_v6  ;;  %v2308_v17 = vmul.u32.u64.high 3817748708, %v1019_v6, %v2307_v16 }
  0x55   : > { %v1050_v3 = vshrl.u32 %v2292_v55, 6  ;;  %v1061_v5 = vshrl.u32 %v2296_v58, 6  ;;  %v2315_v27 = vmul.u32.u64.low 3817748708, %v1020_v20  ;;  %v2316_v28 = vmul.u32.u64.high 3817748708, %v1020_v20, %v2315_v27 }
  0x56   : > { %1760 = vmatmul.mubr.bf16.gmra.mrb[4].mxu1 %v2093_v13  ;;  %v830_v13 = vrot.slane %v2194_v7, 1  ;;  %v2303_v7 = vmul.u32.u64.low 3817748708, %v1018_v2  ;;  %v2304_v8 = vmul.u32.u64.high 3817748708, %v1018_v2, %v2303_v7  ;;  %v1072_v14 = vshrl.u32 %v2299_v63, 6 }
  0x57   : > { %1832 = vmatmul.mubr.bf16.gmra.mrb[4].mxu0 %v827_v43  ;;  %1763 = vmatprep.mubr.msk.bf16.mxu1 %vm1996_vm0, %v1995_v1  ;;  %v1051_v10 = vmul.u32 72, %v1050_v3  ;;  %v1062_v11 = vmul.u32 72, %v1061_v5  ;;  %v1094_v35 = vshrl.u32 %v2308_v17, 6 }
  0x58   : > { %1835 = vmatprep.mubr.msk.bf16.mxu0 %vm1996_vm0, %v1995_v1  ;;  %v831_v36 = vsel %vm822_vm2, %v828_v12, %v830_v13  ;;  %v1073_v24 = vmul.u32 72, %v1072_v14  ;;  %v1083_v26 = vshrl.u32 %v2304_v8, 6 }
  0x59   : > { %v1052_v21 = vsub.s32 %v1015_v51, %v1051_v10  ;;  %v1063_v23 = vsub.s32 %v1016_v52, %v1062_v11  ;;  %v2322_v40 = vmul.u32.u64.low 3817748708, %v1021_v30  ;;  %v2323_v41 = vmul.u32.u64.high 3817748708, %v1021_v30, %v2322_v40 }
  0x5a   : > { %v1074_v31 = vsub.s32 %v1017_v59, %v1073_v24  ;;  %v1084_v38 = vmul.u32 72, %v1083_v26  ;;  %v1095_v43 = vmul.u32 72, %v1094_v35 }
  0x5b   : > { %vm1123_vm9 = vcmp.ne.s32.totalorder %v1052_v21, 0  ;;  %vm1132_vm10 = vcmp.lt.s32.totalorder %v1052_v21, 0  ;;  %vm1124_vm11 = vcmp.ne.s32.totalorder %v1063_v23, 0  ;;  %vm1133_vm12 = vcmp.lt.s32.totalorder %v1063_v23, 0 }
  0x5c   : > { %v1150_v34 = vadd.s32 72, %v1052_v21  ;;  %vm1141_vm13 = vmand %vm1132_vm10, %vm1123_vm9  ;;  %v1151_v37 = vadd.s32 72, %v1063_v23  ;;  %vm1125_vm15 = vcmp.ne.s32.totalorder %v1074_v31, 0  ;;  %v1116_v52 = vshrl.u32 %v2323_v41, 6 }
  0x5d   : > { %vm1142_vm14 = vmand %vm1133_vm12, %vm1124_vm11 }
  0x5e   : > { %1764 = vmatmul.mubr.bf16.gmra.mrb[8].mxu1 %v2127_v33  ;;  %v1527_v33 = vcombine.low %v2178_v60, %v2178_v60  ;;  %v1029_v60 = vmul.u32 72, %v1028_v53  ;;  %v2326_v15 = vsel %vm1141_vm13, %v1150_v34, %v1052_v21  ;;  %v2328_v12 = vsel %vm1142_vm14, %v1151_v37, %v1063_v23 }
  0x5f   : > { %1836 = vmatmul.mubr.bf16.gmra.mrb[8].mxu0 %v829_v19  ;;  %1767 = vmatprep.mubr.msk.bf16.mxu1 %vm1996_vm0, %v1995_v1  ;;  %v1152_v19 = vadd.s32 72, %v1074_v31  ;;  %v1200_v49 = vsub.s32 0, %v2328_v12 }
  0x60   : > { %1839 = vmatprep.mubr.msk.bf16.mxu0 %vm1996_vm0, %v1995_v1  ;;  %v1030_v0 = vsub.s32 %v1013_v46, %v1029_v60  ;;  %v1189_v46 = vsub.s32 0, %v2326_v15  ;;  %v1117_v60 = vmul.u32 72, %v1116_v52 }
  0x61   : > { %v1602_v55 = vmin.u32 %v1200_v49, %v2328_v12 }
  0x62   : > { %vm1121_vm3 = vcmp.ne.s32.totalorder %v1030_v0, 0  ;;  %vm1130_vm4 = vcmp.lt.s32.totalorder %v1030_v0, 0  ;;  %v1148_v9 = vadd.s32 72, %v1030_v0  ;;  %v1601_v53 = vmin.u32 %v1189_v46, %v2326_v15 }
  0x63   : > { %vm1139_vm7 = vmand %vm1130_vm4, %vm1121_vm3  ;;  %v1118_v8 = vsub.s32 %v1021_v30, %v1117_v60 }
  0x64   : > { %v2310_v22 = vsel %vm1139_vm7, %v1148_v9, %v1030_v0 }
  0x65   : > { %v1167_v29 = vsub.s32 0, %v2310_v22  ;;  %vm1129_vm11 = vcmp.ne.s32.totalorder %v1118_v8, 0  ;;  %vm1138_vm12 = vcmp.lt.s32.totalorder %v1118_v8, 0  ;;  %v1156_v26 = vadd.s32 72, %v1118_v8 }
  0x66   : > { %1768 = vmatmul.mubr.bf16.gmra.mrb[12].mxu1 %v2149_v45  ;;  %v2287_v50 = vmul.u32.u64.low 3817748708, %v1014_v47  ;;  %v2288_v45 = vmul.u32.u64.high 3817748708, %v1014_v47, %v2287_v50  ;;  %vm1147_vm13 = vmand %vm1138_vm12, %vm1129_vm11  ;;  %vm1166_vm14 = vcmp.lt.s32.totalorder %v2310_v22, 0 }
  0x67   : > { %1840 = vmatmul.mubr.bf16.gmra.mrb[12].mxu0 %v831_v36  ;;  %1771 = vmatprep.mubr.msk.bf16.mxu1 %vm1996_vm0, %v1995_v1  ;;  %v1599_v39 = vmin.u32 %v1167_v29, %v2310_v22  ;;  %v1105_v36 = vshrl.u32 %v2316_v28, 6  ;;  %v1096_v50 = vsub.s32 %v1019_v6, %v1095_v43 }
  0x68   : > { %1843 = vmatprep.mubr.msk.bf16.mxu0 %vm1996_vm0, %v1995_v1  ;;  %v1039_v56 = vshrl.u32 %v2288_v45, 6  ;;  %vm1134_vm0 = vcmp.lt.s32.totalorder %v1074_v31, 0 }
  0x69   : > { %vm1143_vm1 = vmand %vm1134_vm0, %vm1125_vm15  ;;  %v1106_v51 = vmul.u32 72, %v1105_v36  ;;  %v1154_v59 = vadd.s32 72, %v1096_v50 }
  0x6a   : > { %v1040_v61 = vmul.u32 72, %v1039_v56  ;;  %v2339_v45 = vsel %vm1143_vm1, %v1152_v19, %v1074_v31 }
  0x6b   : > { %v1211_v56 = vsub.s32 0, %v2339_v45  ;;  %v1107_v57 = vsub.s32 %v1020_v20, %v1106_v51 }
  0x6c   : > { %v1041_v4 = vsub.s32 %v1014_v47, %v1040_v61  ;;  %v2346_v61 = vmul.u32.u64.low 3817748708, %v1601_v53  ;;  %v2347_v62 = vmul.u32.u64.high 3817748708, %v1601_v53, %v2346_v61 }
  0x6d   : > { %vm1137_vm9 = vcmp.lt.s32.totalorder %v1107_v57, 0  ;;  %v1155_v9 = vadd.s32 72, %v1107_v57 }
  0x6e   : > { %1772 = vmatmul.mubr.bf16.gmra.mrb[16].mxu1 %v1527_v33  ;;  %vm1122_vm5 = vcmp.ne.s32.totalorder %v1041_v4, 0  ;;  %vm1131_vm6 = vcmp.lt.s32.totalorder %v1041_v4, 0  ;;  %v1149_v18 = vadd.s32 72, %v1041_v4  ;;  %v1194_v20 = vshrl.u32 %v2347_v62, 3 }
  0x6f   : > { %1844 = vmatmul.mubr.bf16.gmra.mrb[16].mxu0 %v830_v13  ;;  %vm1140_vm8 = vmand %vm1131_vm6, %vm1122_vm5  ;;  %v1085_v13 = vsub.s32 %v1018_v2, %v1084_v38  ;;  %v2331_v33 = vmul.u32.u64.low 3817748708, %v1599_v39  ;;  %v2332_v44 = vmul.u32.u64.high 3817748708, %v1599_v39, %v2331_v33  ;;  %vm1127_vm5 = vcmp.ne.s32.totalorder %v1096_v50, 0 }
  0x70   : > { %v2312_v25 = vsel %vm1140_vm8, %v1149_v18, %v1041_v4  ;;  %vm1136_vm6 = vcmp.lt.s32.totalorder %v1096_v50, 0  ;;  %v2352_v2 = vmul.u32.u64.low 3817748708, %v1602_v55  ;;  %v2353_v3 = vmul.u32.u64.high 3817748708, %v1602_v55, %v2352_v2 }
  0x71   : > { %v1178_v32 = vsub.s32 0, %v2312_v25  ;;  %vm1126_vm2 = vcmp.ne.s32.totalorder %v1085_v13, 0  ;;  %vm1135_vm3 = vcmp.lt.s32.totalorder %v1085_v13, 0  ;;  %v1153_v54 = vadd.s32 72, %v1085_v13  ;;  %vm1145_vm7 = vmand %vm1136_vm6, %vm1127_vm5 }
  0x72   : > { %vm1144_vm4 = vmand %vm1135_vm3, %vm1126_vm2  ;;  %v1172_v58 = vshrl.u32 %v2332_v44, 3  ;;  %v1603_v4 = vmin.u32 %v1211_v56, %v2339_v45  ;;  %vm1128_vm8 = vcmp.ne.s32.totalorder %v1107_v57, 0  ;;  %v2357_v7 = vsel %vm1145_vm7, %v1154_v59, %v1096_v50 }
  0x73   : > { %v1600_v42 = vmin.u32 %v1178_v32, %v2312_v25  ;;  %v2349_v63 = vsel %vm1144_vm4, %v1153_v54, %v1085_v13  ;;  %vm1146_vm10 = vmand %vm1137_vm9, %vm1128_vm8  ;;  %v1233_v16 = vsub.s32 0, %v2357_v7  ;;  %v1205_v24 = vshrl.u32 %v2353_v3, 3 }
  0x74   : > { %v1173_v5 = vmul.u32 9, %v1172_v58  ;;  %v1222_v6 = vsub.s32 0, %v2349_v63  ;;  %v2359_v11 = vmul.u32.u64.low 3817748708, %v1603_v4  ;;  %v2360_v14 = vmul.u32.u64.high 3817748708, %v1603_v4, %v2359_v11 }
  0x75   : > { %v2335_v47 = vmul.u32.u64.low 3817748708, %v1600_v42  ;;  %v2336_v48 = vmul.u32.u64.high 3817748708, %v1600_v42, %v2335_v47  ;;  %v2365_v21 = vsel %vm1146_vm10, %v1155_v9, %v1107_v57  ;;  %v2369_v27 = vmin.u32 %v1233_v16, %v2357_v7 }
  0x76   : > { %v1174_v17 = vsub.s32 %v1599_v39, %v1173_v5  ;;  %v1604_v18 = vmin.u32 %v1222_v6, %v2349_v63  ;;  %v1244_v31 = vsub.s32 0, %v2365_v21  ;;  %v1195_v32 = vmul.u32 9, %v1194_v20 }
  0x77   : > { %v1183_v0 = vshrl.u32 %v2336_v48, 3  ;;  %v1206_v35 = vmul.u32 9, %v1205_v24  ;;  %v1216_v37 = vshrl.u32 %v2360_v14, 3  ;;  %v2377_v38 = vsel %vm1147_vm13, %v1156_v26, %v1118_v8 }
  0x78   : > { %v1175_v28 = vsub.s32 0, %v1174_v17  ;;  %v2371_v29 = vmul.u32.u64.low 3817748708, %v1604_v18  ;;  %v2372_v30 = vmul.u32.u64.high 3817748708, %v1604_v18, %v2371_v29  ;;  %vm1177_vm15 = vcmp.lt.s32.totalorder %v2312_v25, 0 }
  0x79   : > { %v1184_v10 = vmul.u32 9, %v1183_v0  ;;  %v2381_v39 = vmul.u32.u64.low 3817748708, %v2369_v27  ;;  %v2382_v40 = vmul.u32.u64.high 3817748708, %v2369_v27, %v2381_v39  ;;  %v1196_v43 = vsub.s32 %v1601_v53, %v1195_v32 }
  0x7a   : > { %v1176_v41 = vsel %vm1166_vm14, %v1175_v28, %v1174_v17  ;;  %v1255_v22 = vsub.s32 0, %v2377_v38  ;;  %v1207_v13 = vsub.s32 %v1602_v55, %v1206_v35  ;;  %v1217_v36 = vmul.u32 9, %v1216_v37 }
  0x7b   : > { %v1185_v23 = vsub.s32 %v1600_v42, %v1184_v10  ;;  %v2385_v42 = vmin.u32 %v1244_v31, %v2365_v21  ;;  %vm1265_vm0 = vcmp.ne.s32.totalorder %v1176_v41, 0  ;;  %vm1274_vm1 = vcmp.lt.s32.totalorder %v1176_v41, 0 }
  0x7c   : > { %v1227_v33 = vshrl.u32 %v2372_v30, 3  ;;  %v1197_v46 = vsub.s32 0, %v1196_v43  ;;  %v2394_v47 = vmin.u32 %v1255_v22, %v2377_v38  ;;  %v1292_v48 = vadd.s32 9, %v1176_v41  ;;  %vm2398_vm5 = vmand %vm1274_vm1, %vm1265_vm0 }
  0x7d   : > { %v1186_v34 = vsub.s32 0, %v1185_v23  ;;  %v2390_v25 = vmul.u32.u64.low 3817748708, %v2385_v42  ;;  %v2391_v44 = vmul.u32.u64.high 3817748708, %v2385_v42, %v2390_v25  ;;  %vm1188_vm4 = vcmp.lt.s32.totalorder %v2326_v15, 0 }
  0x7e   : > { %v1208_v49 = vsub.s32 0, %v1207_v13  ;;  %v1218_v50 = vsub.s32 %v1603_v4, %v1217_v36  ;;  %vm1199_vm6 = vcmp.lt.s32.totalorder %v2328_v12, 0  ;;  %v1238_v53 = vshrl.u32 %v2382_v40, 3 }
  0x7f   : > { %v1187_v19 = vsel %vm1177_vm15, %v1186_v34, %v1185_v23  ;;  %v1228_v55 = vmul.u32 9, %v1227_v33  ;;  %v1198_v56 = vsel %vm1188_vm4, %v1197_v46, %v1196_v43  ;;  %v1301_v58 = vsel %vm2398_vm5, %v1292_v48, %v1176_v41 }
  0x80   : > { %vm1266_vm2 = vcmp.ne.s32.totalorder %v1187_v19, 0  ;;  %vm1275_vm3 = vcmp.lt.s32.totalorder %v1187_v19, 0  ;;  %v1293_v52 = vadd.s32 9, %v1187_v19  ;;  %v1209_v12 = vsel %vm1199_vm6, %v1208_v49, %v1207_v13 }
  0x81   : > { %vm2404_vm7 = vmand %vm1275_vm3, %vm1266_vm2  ;;  %v2409_v57 = vmul.u32.u64.low 3817748708, %v2394_v47  ;;  %v2410_v15 = vmul.u32.u64.high 3817748708, %v2394_v47, %v2409_v57  ;;  %v1219_v59 = vsub.s32 0, %v1218_v50  ;;  %vm1210_vm8 = vcmp.lt.s32.totalorder %v2339_v45, 0 }
  0x82   : > { %v1302_v60 = vsel %vm2404_vm7, %v1293_v52, %v1187_v19  ;;  %v1239_v61 = vmul.u32 9, %v1238_v53  ;;  %vm1267_vm9 = vcmp.ne.s32.totalorder %v1198_v56, 0  ;;  %vm1276_vm10 = vcmp.lt.s32.totalorder %v1198_v56, 0 }
  0x83   : > { %v1229_v62 = vsub.s32 %v1604_v18, %v1228_v55  ;;  %v1249_v0 = vshrl.u32 %v2391_v44, 3  ;;  %vm1310_vm11 = vcmp.lt.s32.totalorder %v1301_v58, 8  ;;  %vm1268_vm12 = vcmp.ne.s32.totalorder %v1209_v12, 0  ;;  %vm2432_vm15 = vmand %vm1276_vm10, %vm1267_vm9 }
  0x84   : > { %vm1277_vm13 = vcmp.lt.s32.totalorder %v1209_v12, 0  ;;  %v1294_v2 = vadd.s32 9, %v1198_v56  ;;  %v2426_v3 = vsel %vm1210_vm8, %v1219_v59, %v1218_v50  ;;  %vm2428_vm14 = vcmp.lt.s32.totalorder %v1302_v60, 8 }
  0x85   : > { %v1295_v5 = vadd.s32 9, %v1209_v12  ;;  %v1240_v6 = vsub.s32 %v2369_v27, %v1239_v61  ;;  %v1608_v9 = vsel %vm1310_vm11, 1.0, %v1995_v1  ;;  %vm2438_vm0 = vmand %vm1277_vm13, %vm1268_vm12  ;;  %v1230_v11 = vsub.s32 0, %v1229_v62 }
  0x86   : > { %v1250_v14 = vmul.u32 9, %v1249_v0  ;;  %vm1269_vm1 = vcmp.ne.s32.totalorder %v2426_v3, 0  ;;  %vm1278_vm2 = vcmp.lt.s32.totalorder %v2426_v3, 0  ;;  %vm1221_vm3 = vcmp.lt.s32.totalorder %v2349_v63, 0 }
  0x87   : > { %v1260_v18 = vshrl.u32 %v2410_v15, 3  ;;  %v1609_v26 = vsel %vm2428_vm14, 1.0, %v1995_v1  ;;  %v1303_v27 = vsel %vm2432_vm15, %v1294_v2, %v1198_v56  ;;  %v1304_v30 = vsel %vm2438_vm0, %v1295_v5, %v1209_v12  ;;  %vm2460_vm5 = vmand %vm1278_vm2, %vm1269_vm1 }
  0x88   : > { %v1296_v31 = vadd.s32 9, %v2426_v3  ;;  %vm1232_vm4 = vcmp.lt.s32.totalorder %v2357_v7, 0  ;;  %v1241_v32 = vsub.s32 0, %v1240_v6  ;;  %v1231_v40 = vsel %vm1221_vm3, %v1230_v11, %v1229_v62 }
  0x89   : > { %v1251_v41 = vsub.s32 %v2385_v42, %v1250_v14  ;;  %v1261_v43 = vmul.u32 9, %v1260_v18  ;;  %vm1312_vm6 = vcmp.lt.s32.totalorder %v1303_v27, 8  ;;  %vm2472_vm7 = vcmp.lt.s32.totalorder %v1304_v30, 8 }
  0x8a   : > { %v1305_v63 = vsel %vm2460_vm5, %v1296_v31, %v2426_v3  ;;  %vm1270_vm8 = vcmp.ne.s32.totalorder %v1231_v40, 0  ;;  %vm1279_vm9 = vcmp.lt.s32.totalorder %v1231_v40, 0  ;;  %v2481_v42 = vsel %vm1232_vm4, %v1241_v32, %v1240_v6 }
  0x8b   : > { %v1252_v46 = vsub.s32 0, %v1251_v41  ;;  %v1610_v49 = vsel %vm1312_vm6, 1.0, %v1995_v1  ;;  %v1297_v51 = vadd.s32 9, %v1231_v40  ;;  %vm1243_vm10 = vcmp.lt.s32.totalorder %v2365_v21, 0  ;;  %vm2489_vm11 = vmand %vm1279_vm9, %vm1270_vm8 }
  0x8c   : > { %v1262_v52 = vsub.s32 %v2394_v47, %v1261_v43  ;;  %v1611_v15 = vsel %vm2472_vm7, 1.0, %v1995_v1  ;;  %vm2496_vm12 = vcmp.lt.s32.totalorder %v1305_v63, 8  ;;  %vm1271_vm13 = vcmp.ne.s32.totalorder %v2481_v42, 0 }
  0x8d   : > { %vm1280_vm14 = vcmp.lt.s32.totalorder %v2481_v42, 0  ;;  %v1253_v61 = vsel %vm1243_vm10, %v1252_v46, %v1251_v41  ;;  %v1306_v62 = vsel %vm2489_vm11, %v1297_v51, %v1231_v40  ;;  %v1298_v0 = vadd.s32 9, %v2481_v42 }
  0x8e   : > { %vm1254_vm15 = vcmp.lt.s32.totalorder %v2377_v38, 0  ;;  %v1263_v2 = vsub.s32 0, %v1262_v52  ;;  %vm2508_vm0 = vmand %vm1280_vm14, %vm1271_vm13  ;;  %vm1272_vm1 = vcmp.ne.s32.totalorder %v1253_v61, 0  ;;  %vm1281_vm2 = vcmp.lt.s32.totalorder %v1253_v61, 0 }
  0x8f   : > { %vm1315_vm3 = vcmp.lt.s32.totalorder %v1306_v62, 8  ;;  %v1612_v14 = vsel %vm2496_vm12, 1.0, %v1995_v1  ;;  %v1307_v27 = vsel %vm2508_vm0, %v1298_v0, %v2481_v42  ;;  %vm2523_vm4 = vmand %vm1281_vm2, %vm1272_vm1 }
  0x90   : > { %v1264_v18 = vsel %vm1254_vm15, %v1263_v2, %v1262_v52  ;;  %v1613_v30 = vsel %vm1315_vm3, 1.0, %v1995_v1  ;;  %vm1316_vm7 = vcmp.lt.s32.totalorder %v1307_v27, 8 }
  0x91   : > { %vm1273_vm5 = vcmp.ne.s32.totalorder %v1264_v18, 0  ;;  %vm1282_vm6 = vcmp.lt.s32.totalorder %v1264_v18, 0 }
  0x92   : > { %vm2530_vm8 = vmand %vm1282_vm6, %vm1273_vm5 }
 0x121   : > { %v538_v8 = vpop.f32.mrb[0].mxu1 }
 0x122   : > { %v919_v16 = vpop.f32.mrb[0].mxu0  ;;  %v1757_v17 = vpop.f32.mrb[1].mxu1 }
 0x123   : > { %v1847_v20 = vadd.f32 %v919_v16, %v538_v8  ;;  %v1829_v23 = vpop.f32.mrb[1].mxu0  ;;  %v541_v24 = vpop.f32.mrb[2].mxu1  ;;  %v1299_v17 = vadd.s32 9, %v1253_v61 }
 0x124   : > { %v922_v28 = vpop.f32.mrb[2].mxu0  ;;  %v1758_v29 = vpop.f32.mrb[3].mxu1 }
 0x125   : > { %v1337_v34 = vmul.f32 %v1847_v20, %v1608_v9  ;;  %v1848_v35 = vadd.f32 %v922_v28, %v541_v24  ;;  %v1830_v37 = vpop.f32.mrb[3].mxu0 }
 0x126   : > { %v1300_v37 = vadd.s32 9, %v1264_v18 }
 0x127   : > { %v1631_v22 = vpack.c.bf16 %v1848_v35, %v1847_v20  ;;  %v1338_v19 = vmul.f32 %v1848_v35, %v1609_v26  ;;  %v1361_v36 = vmul.f32 %v1847_v20, %v1337_v34 }
 0x129   : > { %1632 = vst [vmem:[%s2470_s21] sm:$0xff] %v1631_v22   ;;  %v1346_v33 = vadd.f32 %v1338_v19, %v1337_v34  ;;  %v1362_v25 = vmul.f32 %v1848_v35, %v1338_v19  ;;  %v546_v44 = vpop.f32.mrb[4].mxu1  ;;  %v1308_v35 = vsel %vm2523_vm4, %v1299_v17, %v1253_v61 }
 0x12a   : > { %v927_v48 = vpop.f32.mrb[4].mxu0  ;;  %v1761_v50 = vpop.f32.mrb[5].mxu1  ;;  %vm1317_vm9 = vcmp.lt.s32.totalorder %v1308_v35, 8 }
 0x12b   : > { %v1370_v53 = vadd.f32 %v1362_v25, %v1361_v36  ;;  %v1849_v54 = vadd.f32 %v927_v48, %v546_v44  ;;  %v1833_v7 = vpop.f32.mrb[5].mxu0  ;;  %v549_v55 = vpop.f32.mrb[6].mxu1  ;;  %v1309_v50 = vsel %vm2530_vm8, %v1300_v37, %v1264_v18  ;;  %v1615_v52 = vsel %vm1317_vm9, 1.0, %v1995_v1 }
 0x12c   : > { %v930_v57 = vpop.f32.mrb[6].mxu0  ;;  %v1762_v58 = vpop.f32.mrb[7].mxu1  ;;  %vm1318_vm10 = vcmp.lt.s32.totalorder %v1309_v50, 8 }
 0x12d   : > { %v1339_v47 = vmul.f32 %v1849_v54, %v1610_v49  ;;  %v1850_v59 = vadd.f32 %v930_v57, %v549_v55  ;;  %v1834_v60 = vpop.f32.mrb[7].mxu0  ;;  %v1616_v62 = vsel %vm1318_vm10, 1.0, %v1995_v1 }
 0x12f   : > { %v1347_v3 = vadd.f32 %v1346_v33, %v1339_v47  ;;  %v1363_v4 = vmul.f32 %v1849_v54, %v1339_v47  ;;  %v1636_v45 = vpack.c.bf16 %v1850_v59, %v1849_v54  ;;  %v1340_v5 = vmul.f32 %v1850_v59, %v1611_v15 }
 0x130   : > { %v1614_v33 = vsel %vm1316_vm7, 1.0, %v1995_v1 }
 0x131   : > { %v1371_v21 = vadd.f32 %v1370_v53, %v1363_v4  ;;  %1648 = vst [vmem:[%s2470_s21 + $0x8] sm:$0xff] %v1636_v45   ;;  %v1348_v8 = vadd.f32 %v1347_v3, %v1340_v5  ;;  %v1364_v9 = vmul.f32 %v1850_v59, %v1340_v5  ;;  %v554_v10 = vpop.f32.mrb[8].mxu1 }
 0x132   : > { %v935_v11 = vpop.f32.mrb[8].mxu0  ;;  %v1765_v16 = vpop.f32.mrb[9].mxu1 }
 0x133   : > { %v1372_v20 = vadd.f32 %v1371_v21, %v1364_v9  ;;  %v1851_v23 = vadd.f32 %v935_v11, %v554_v10  ;;  %v1837_v24 = vpop.f32.mrb[9].mxu0  ;;  %v557_v26 = vpop.f32.mrb[10].mxu1 }
 0x134   : > { %v938_v29 = vpop.f32.mrb[10].mxu0  ;;  %v1766_v38 = vpop.f32.mrb[11].mxu1 }
 0x135   : > { %v1341_v31 = vmul.f32 %v1851_v23, %v1612_v14  ;;  %v1852_v32 = vadd.f32 %v938_v29, %v557_v26  ;;  %v1838_v34 = vpop.f32.mrb[11].mxu0 }
 0x137   : > { %v1349_v39 = vadd.f32 %v1348_v8, %v1341_v31  ;;  %v1365_v40 = vmul.f32 %v1851_v23, %v1341_v31  ;;  %v1641_v41 = vpack.c.bf16 %v1852_v32, %v1851_v23  ;;  %v1342_v43 = vmul.f32 %v1852_v32, %v1613_v30 }
 0x139   : > { %v1373_v19 = vadd.f32 %v1372_v20, %v1365_v40  ;;  %1649 = vst [vmem:[%s2470_s21 + $0x10] sm:$0xff] %v1641_v41   ;;  %v1350_v13 = vadd.f32 %v1349_v39, %v1342_v43  ;;  %v1366_v63 = vmul.f32 %v1852_v32, %v1342_v43  ;;  %v562_v42 = vpop.f32.mrb[12].mxu1 }
 0x13a   : > { %v943_v36 = vpop.f32.mrb[12].mxu0  ;;  %v1769_v25 = vpop.f32.mrb[13].mxu1 }
 0x13b   : > { %v1374_v44 = vadd.f32 %v1373_v19, %v1366_v63  ;;  %v1853_v46 = vadd.f32 %v943_v36, %v562_v42  ;;  %v1841_v48 = vpop.f32.mrb[13].mxu0  ;;  %v565_v49 = vpop.f32.mrb[14].mxu1 }
 0x13c   : > { %v946_v51 = vpop.f32.mrb[14].mxu0  ;;  %v1770_v53 = vpop.f32.mrb[15].mxu1 }
 0x13d   : > { %v1343_v54 = vmul.f32 %v1853_v46, %v1614_v33  ;;  %v1854_v7 = vadd.f32 %v946_v51, %v565_v49  ;;  %v1842_v55 = vpop.f32.mrb[15].mxu0 }
 0x13f   : > { %v1351_v56 = vadd.f32 %v1350_v13, %v1343_v54  ;;  %v1367_v57 = vmul.f32 %v1853_v46, %v1343_v54  ;;  %v1646_v15 = vpack.c.bf16 %v1854_v7, %v1853_v46  ;;  %v1344_v58 = vmul.f32 %v1854_v7, %v1615_v52 }
 0x141   : > { %v1375_v12 = vadd.f32 %v1374_v44, %v1367_v57  ;;  %1650 = vst [vmem:[%s2470_s21 + $0x18] sm:$0xff] %v1646_v15   ;;  %v1352_v47 = vadd.f32 %v1351_v56, %v1344_v58  ;;  %v1368_v59 = vmul.f32 %v1854_v7, %v1344_v58  ;;  %v570_v60 = vpop.f32.mrb[16].mxu1 }
 0x142   : > { %v951_v61 = vpop.f32.mrb[16].mxu0  ;;  %v1773_v0 = vpop.f32.mrb[17].mxu1 }
 0x143   : > { %v1376_v2 = vadd.f32 %v1375_v12, %v1368_v59  ;;  %v1855_v3 = vadd.f32 %v951_v61, %v570_v60  ;;  %v1845_v4 = vpop.f32.mrb[17].mxu0  ;;  %v573_v45 = vpop.f32.mrb[18].mxu1 }
 0x144   : > { %v954_v5 = vpop.f32.mrb[18].mxu0  ;;  %v1774_v6 = vpop.f32.mrb[19].mxu1 }
 0x145   : > { %v1627_v21 = vpack.c.bf16 %v1855_v3, %v1855_v3  ;;  %v1345_v8 = vmul.f32 %v1855_v3, %v1616_v62  ;;  %v1846_v9 = vpop.f32.mrb[19].mxu0 }
 0x147   : > { %1011 = vst [vmem:[%s2470_s21 + $0x20] sm:$0xf] %v1627_v21  ;;  %v1353_v10 = vadd.f32 %v1352_v47, %v1345_v8  ;;  %v1369_v11 = vmul.f32 %v1855_v3, %v1345_v8 }
 0x149   : > { %v1354_v14 = vrot.slane %v1353_v10, 4  ;;  %v1377_v16 = vadd.f32 %v1376_v2, %v1369_v11 }
 0x14b   : > { %v1355_v17 = vadd.f32 %v1354_v14, %v1353_v10  ;;  %v1378_v18 = vrot.slane %v1377_v16, 4 }
 0x14d   : > { %v1356_v1 = vrot.slane %v1355_v17, 2  ;;  %v1379_v20 = vadd.f32 %v1378_v18, %v1377_v16 }
 0x14f   : > { %v1357_v23 = vadd.f32 %v1356_v1, %v1355_v17  ;;  %v1380_v24 = vrot.slane %v1379_v20, 2 }
 0x151   : > { %v1358_v26 = vrot.slane %v1357_v23, 1  ;;  %v1381_v27 = vadd.f32 %v1380_v24, %v1379_v20 }
 0x153   : > { %v1359_v28 = vadd.f32 %v1358_v26, %v1357_v23  ;;  %v1382_v29 = vrot.slane %v1381_v27, 1 }
 0x155   : > { %1360 = vst [vmem:[%s212_s24] sm:$0x1] %v1359_v28  ;;  %v1383_v30 = vadd.f32 %v1382_v29, %v1381_v27 }
 0x157   : > { %1384 = vst [vmem:[%s215_s28] sm:$0x1] %v1383_v30 }
 0x158 PF: > { %s15_s15 = sadd.s32 1, %s1993_s15  }
 0x159   : > { %p12_p5 = scmp.ge.s32.totalorder %s15_s15, 4  }
 0x15b   :  { %14 = sbr.rel (!%p12_p5) target bundleno = 1 (0x1), region = 85 }

// kernel: dcgan_discriminator_forward.7
= control target key start
LH: loop header
LB: loop body
LE: loop exit
PB: predicated region body
PF: predicated region fallthrough
CT: control target
= control target key end

     0   :  { %s1763_s15 = smov 0   ;;  %s2090_s0 = inlined_call_operand.vmem [shape: bf16[2,30,256], index: 0, kind: input, shape index: {}]   ;;  %s2091_s1 = inlined_call_operand.vmem [shape: bf16[4,256,128], index: 1, kind: input, shape index: {}]   ;;  %s2092_s2 = inlined_call_operand.vmem [shape: bf16[48,128], index: 2, kind: output, shape index: {0}]   ;;  %s2093_s3 = inlined_call_operand.vmem [shape: f32[2,1,128], index: 3, kind: output, shape index: {1}]   ;;  %s2094_s4 = inlined_call_operand.vmem [shape: f32[2,1,128], index: 4, kind: output, shape index: {2}]  }
   0x1 LB: > { %s1769_s16 = sadd.s32 4294967295, %s1735_s15   ;;  %p1324_p0 = scmp.ge.s32.totalorder %s1735_s15, 1  ;;  %s1735_s15 = sphi %s1763_s15, %s15_s15  }
   0x2   : > { %p167_p1 = scmp.lt.s32.totalorder %s1735_s15, 3 }
   0x4   : > { %p168_p2 = pnand %p1324_p0, %p167_p1 }
   0x5   : > { %v1653_v0 = vld [vmem:[%s2091_s1 + $0xc0] sm:$0xff] (!%p168_p2)   ;;  %v1657_v4 = vld [vmem:[%s2091_s1 + $0xc8] sm:$0xff] (!%p168_p2)   ;;  %v1661_v8 = vld [vmem:[%s2091_s1 + $0xd0] sm:$0xff] (!%p168_p2)   ;;  %p199_p3 = scmp.lt.s32.totalorder (!%p168_p2), %s1769_s16, 1  ;;  %vm302_vm0 = vsmask.f32 (!%p168_p2), 7424 }
   0x6   : > { %171 = sbr.rel (%p168_p2) target bundleno = 317 (0x13d), region = 28  ;;  %v1654_v1 = vld [vmem:[%s2091_s1 + $0x40] sm:$0xff] (!%p168_p2)   ;;  %1520 = vmatprep.subr.bf16.mxu0 (!%p168_p2), %v1653_v0  ;;  %v1658_v5 = vld [vmem:[%s2091_s1 + $0x48] sm:$0xff] (!%p168_p2)   ;;  %v1662_v9 = vld [vmem:[%s2091_s1 + $0x50] sm:$0xff] (!%p168_p2)   ;;  %vm901_vm1 = vcmask (!%p168_p2), 1044480  }
   0x7   : > { %v1655_v2 = vld [vmem:[%s2091_s1 + $0x80] sm:$0xff] (!%p168_p2)   ;;  %1548 = vmatprep.subr.bf16.mxu1 (!%p168_p2), %v1654_v1  ;;  %v1659_v6 = vld [vmem:[%s2091_s1 + $0x88] sm:$0xff] (!%p168_p2)   ;;  %v1663_v10 = vld [vmem:[%s2091_s1 + $0x90] sm:$0xff] (!%p168_p2)   ;;  %vm676_vm2 = vsmask.f32 (!%p168_p2), 5376 }
   0x8   : > { %v1656_v3 = vld [vmem:[%s2091_s1] sm:$0xff] (!%p168_p2)   ;;  %1521 = vmatpush3.bf16.msra.mxu0 (!%p168_p2), %v1655_v2  ;;  %v1660_v7 = vld [vmem:[%s2091_s1 + $0x8] sm:$0xff] (!%p168_p2)   ;;  %v1664_v11 = vld [vmem:[%s2091_s1 + $0x10] sm:$0xff] (!%p168_p2)  }
   0x9   : > { %1549 = vmatpush3.bf16.msra.mxu1 (!%p168_p2), %v1656_v3  ;;  %1522 = vmatprep.subr.bf16.mxu0 (!%p168_p2), %v1657_v4  ;;  %v1665_v12 = vld [vmem:[%s2091_s1 + $0xd8] sm:$0xff] (!%p168_p2)   ;;  %v1669_v16 = vld [vmem:[%s2091_s1 + $0xe0] sm:$0xff] (!%p168_p2)   ;;  %v1673_v20 = vld [vmem:[%s2091_s1 + $0xe8] sm:$0xff] (!%p168_p2)  }
   0xa   : > { %1550 = vmatprep.subr.bf16.mxu1 (!%p168_p2), %v1658_v5  ;;  %v1666_v13 = vld [vmem:[%s2091_s1 + $0x58] sm:$0xff] (!%p168_p2)   ;;  %v1670_v17 = vld [vmem:[%s2091_s1 + $0x60] sm:$0xff] (!%p168_p2)   ;;  %v1674_v21 = vld [vmem:[%s2091_s1 + $0x68] sm:$0xff] (!%p168_p2)  }
   0xb   : > { %v1667_v14 = vld [vmem:[%s2091_s1 + $0x98] sm:$0xff] (!%p168_p2)   ;;  %v1671_v18 = vld [vmem:[%s2091_s1 + $0xa0] sm:$0xff] (!%p168_p2)   ;;  %v1675_v22 = vld [vmem:[%s2091_s1 + $0xa8] sm:$0xff] (!%p168_p2)  }
   0xc   : > { %1523 = vmatpush3.bf16.msra.mxu0 (!%p168_p2), %v1659_v6  ;;  %v1668_v15 = vld [vmem:[%s2091_s1 + $0x18] sm:$0xff] (!%p168_p2)   ;;  %v1672_v19 = vld [vmem:[%s2091_s1 + $0x20] sm:$0xff] (!%p168_p2)   ;;  %v1676_v23 = vld [vmem:[%s2091_s1 + $0x28] sm:$0xff] (!%p168_p2)  }
   0xd   : > { %1551 = vmatpush3.bf16.msra.mxu1 %v1660_v7  ;;  %1524 = vmatprep.subr.bf16.mxu0 %v1661_v8  ;;  %s1844_s13 = scalar_select %p199_p3, %s1769_s16, 1  ;;  %v1677_v24 = vld [vmem:[%s2091_s1 + $0xf0] sm:$0xff]   ;;  %v1681_v28 = vld [vmem:[%s2091_s1 + $0xf8] sm:$0xff]   ;;  %v1689_v41 = vld [vmem:[%s2091_s1 + $0x140] sm:$0xff]  }
   0xe   : > { %1552 = vmatprep.subr.bf16.mxu1 %v1662_v9  ;;  %v1678_v25 = vld [vmem:[%s2091_s1 + $0x70] sm:$0xff]   ;;  %v1682_v29 = vld [vmem:[%s2091_s1 + $0x78] sm:$0xff]   ;;  %v1690_v46 = vld [vmem:[%s2091_s1 + $0x1c0] sm:$0xff]  }
   0xf   : > { %v1679_v26 = vld [vmem:[%s2091_s1 + $0xb0] sm:$0xff]   ;;  %s1511_s24 = sshll.u32 %s1844_s13, 5  ;;  %v1683_v30 = vld [vmem:[%s2091_s1 + $0xb8] sm:$0xff]   ;;  %v1691_v53 = vld [vmem:[%s2091_s1 + $0x100] sm:$0xff]   ;;  %s212_s19 = scalar_lea.vmem %s2093_s3, %s1844_s13 }
  0x10   : > { %1525 = vmatpush3.bf16.msra.mxu0 %v1663_v10  ;;  %v1680_v27 = vld [vmem:[%s2091_s1 + $0x30] sm:$0xff]   ;;  %s1871_s7 = scalar_lea.vmem %s2090_s0, %s1511_s24  ;;  %v1684_v31 = vld [vmem:[%s2091_s1 + $0x38] sm:$0xff]   ;;  %v1692_v54 = vld [vmem:[%s2091_s1 + $0x180] sm:$0xff]   ;;  %s215_s22 = scalar_lea.vmem %s2094_s4, %s1844_s13 }
  0x11   : > { %1553 = vmatpush3.bf16.msra.mxu1 %v1664_v11  ;;  %1526 = vmatprep.subr.bf16.mxu0 %v1665_v12  ;;  %v217_v32 = vld [vmem:[%s1871_s7] sm:$0xff]  ;;  %v1881_v33 = vld [vmem:[%s1871_s7 + $0x8] sm:$0xff]  ;;  %v1884_v34 = vld [vmem:[%s1871_s7 + $0x10] sm:$0xff] }
  0x12   : > { %1554 = vmatprep.subr.bf16.mxu1 %v1666_v13  ;;  %v252_v35 = vld [vmem:[%s1871_s7 + $0x18] sm:$0x11]  ;;  %v1361_v36 = vcombine.high %v217_v32, %v1881_v33  ;;  %v1360_v37 = vcombine.low %v217_v32, %v1881_v33  ;;  %v1381_v38 = vcombine.high %v1884_v34, %v1884_v34  ;;  %v1694_v57 = vld [vmem:[%s2091_s1 + $0x1c8] sm:$0xff]   ;;  %v1380_v0 = vcombine.low %v1884_v34, %v1884_v34  ;;  %v1698_v3 = vld [vmem:[%s2091_s1 + $0x1d0] sm:$0xff]  }
  0x13   : > { %v1363_v39 = vcombine.high %v1884_v34, %v252_v35  ;;  %v1362_v40 = vcombine.low %v1884_v34, %v252_v35  ;;  %v1693_v61 = vld [vmem:[%s2091_s1 + $0x148] sm:$0xff]   ;;  %v1697_v4 = vld [vmem:[%s2091_s1 + $0x150] sm:$0xff]   ;;  %v1702_v8 = vld [vmem:[%s2091_s1 + $0x1d8] sm:$0xff]  }
  0x14   : > { %1527 = vmatpush3.bf16.msra.mxu0 %v1667_v14  ;;  %v316_v42 = vshrl.u32 %v1361_v36, 16  ;;  %v318_v43 = vshll.u32 %v1361_v36, 16  ;;  %615 = vmatprep.mubr.bf16.mxu1 %v1361_v36  ;;  %v304_v44 = vshrl.u32 %v1360_v37, 16  ;;  %v306_v45 = vshll.u32 %v1360_v37, 16  ;;  %v1696_v62 = vld [vmem:[%s2091_s1 + $0x188] sm:$0xff]   ;;  %v1700_v5 = vld [vmem:[%s2091_s1 + $0x190] sm:$0xff]  }
  0x15   : > { %1555 = vmatpush3.bf16.msra.mxu1 %v1668_v15  ;;  %1528 = vmatprep.subr.bf16.mxu0 %v1669_v16  ;;  %v323_v47 = vshll.u32 %v1363_v39, 16  ;;  %v311_v48 = vshll.u32 %v1362_v40, 16  ;;  %v330_v58 = vshrl.u32 %v1363_v39, 16  ;;  %v1695_v1 = vld [vmem:[%s2091_s1 + $0x108] sm:$0xff]   ;;  %v327_v2 = vshrl.u32 %v1362_v40, 16  ;;  %v1699_v6 = vld [vmem:[%s2091_s1 + $0x110] sm:$0xff]  }
  0x16   : > { %1556 = vmatprep.subr.bf16.mxu1 %v1670_v17  ;;  %v320_v49 = vrot.slane %v318_v43, 1  ;;  %v308_v50 = vrot.slane %v306_v45, 1  ;;  %v1701_v9 = vld [vmem:[%s2091_s1 + $0x158] sm:$0xff]   ;;  %v1706_v12 = vld [vmem:[%s2091_s1 + $0x1e0] sm:$0xff]   ;;  %v1710_v16 = vld [vmem:[%s2091_s1 + $0x1e8] sm:$0xff]  }
  0x17   : > { %v325_v51 = vrot.slane %v323_v47, 1  ;;  %v313_v52 = vrot.slane %v311_v48, 1  ;;  %v1704_v10 = vld [vmem:[%s2091_s1 + $0x198] sm:$0xff]   ;;  %v1705_v13 = vld [vmem:[%s2091_s1 + $0x160] sm:$0xff]   ;;  %v1709_v17 = vld [vmem:[%s2091_s1 + $0x168] sm:$0xff]  }
  0x18   : > { %1529 = vmatpush3.bf16.msra.mxu0 %v1671_v18  ;;  %v321_v55 = vor.u32 %v320_v49, %v316_v42  ;;  %v309_v56 = vor.u32 %v308_v50, %v304_v44  ;;  %v1703_v11 = vld [vmem:[%s2091_s1 + $0x118] sm:$0xff]   ;;  %v1708_v14 = vld [vmem:[%s2091_s1 + $0x1a0] sm:$0xff]   ;;  %v1712_v18 = vld [vmem:[%s2091_s1 + $0x1a8] sm:$0xff]  }
  0x19   : > { %1557 = vmatpush3.bf16.msra.mxu1 %v1672_v19  ;;  %1530 = vmatprep.subr.bf16.mxu0 %v1673_v20  ;;  %v332_v63 = vor.u32 %v330_v58, %v325_v51  ;;  %v329_v7 = vor.u32 %v327_v2, %v313_v52  ;;  %v1707_v15 = vld [vmem:[%s2091_s1 + $0x120] sm:$0xff]   ;;  %v1711_v19 = vld [vmem:[%s2091_s1 + $0x128] sm:$0xff]   ;;  %v1716_v20 = vld [vmem:[%s2091_s1 + $0x1f0] sm:$0xff]  }
  0x1a   : > { %1558 = vmatprep.subr.bf16.mxu1 %v1674_v21  ;;  %v326_v59 = vsel %vm302_vm0, %v321_v55, %v325_v51  ;;  %v314_v60 = vsel %vm302_vm0, %v309_v56, %v313_v52  ;;  %v1715_v21 = vld [vmem:[%s2091_s1 + $0x170] sm:$0xff]   ;;  %v862_v32 = vld [vmem:[%s1871_s7] sm:$0x88]  ;;  %v1721_v35 = vld [vmem:[%s2091_s1 + $0x138] sm:$0xff]  }
  0x1b   : > { %465 = vmatprep.mubr.bf16.mxu0 %v326_v59 }
  0x1c   : > { %1531 = vmatpush3.bf16.msra.mxu0 %v1675_v22  ;;  %v1718_v22 = vld [vmem:[%s2091_s1 + $0x1b0] sm:$0xff]  }
  0x1d   : > { %1559 = vmatpush3.bf16.msra.mxu1 %v1676_v23  ;;  %1532 = vmatprep.subr.bf16.mxu0 %v1677_v24  ;;  %v1717_v23 = vld [vmem:[%s2091_s1 + $0x130] sm:$0xff]   ;;  %v1720_v24 = vld [vmem:[%s2091_s1 + $0x1f8] sm:$0xff]  }
  0x1e   : > { %1560 = vmatprep.subr.bf16.mxu1 %v1678_v25  ;;  %v1719_v25 = vld [vmem:[%s2091_s1 + $0x178] sm:$0xff]  }
  0x20   : > { %1533 = vmatpush3.bf16.msra.mxu0 %v1679_v26  ;;  %v1722_v26 = vld [vmem:[%s2091_s1 + $0x1b8] sm:$0xff]  }
  0x21   : > { %1561 = vmatpush3.bf16.msra.mxu1 %v1680_v27  ;;  %1534 = vmatprep.subr.bf16.mxu0 %v1681_v28  ;;  %v631_v27 = vld [vmem:[%s1871_s7] sm:$0xcc]  ;;  %v632_v28 = vld [vmem:[%s1871_s7 + $0x18] sm:$0x77]  ;;  %s204_s7 = smul.u32 3, %s1769_s16 }
  0x22   : > { %1562 = vmatprep.subr.bf16.mxu1 %v1682_v29  ;;  %v1430_v29 = vcombine.low %v631_v27, %v1881_v33  ;;  %v1432_v36 = vcombine.low %v1884_v34, %v632_v28 }
  0x23   : > { %p2056_p4 = scmp.lt.s32.totalorder %s204_s7, 5 }
  0x24   : > { %1535 = vmatpush3.bf16.msra.mxu0 %v1683_v30  ;;  %v1431_v30 = vcombine.high %v631_v27, %v1881_v33  ;;  %v681_v52 = vshll.u32 %v1430_v29, 16  ;;  %v689_v55 = vshll.u32 %v1432_v36, 16  ;;  %v903_v56 = vrot.slane %v1432_v36, 3 }
  0x25   : > { %1563 = vmatpush3.bf16.msra.mxu1 %v1684_v31  ;;  %1576 = vmatprep.subr.bf16.mxu0 %v1689_v41  ;;  %v1433_v31 = vcombine.high %v1884_v34, %v632_v28  ;;  %s2101_s7 = smov (!%p2056_p4, %s204_s7), 5 }
  0x26   : > { %1604 = vmatprep.subr.bf16.mxu1 %v1690_v46  ;;  %v695_v39 = vshrl.u32 %v1431_v30, 16  ;;  %v698_v40 = vshll.u32 %v1431_v30, 16  ;;  %v678_v46 = vshrl.u32 %v1430_v29, 16  ;;  %s1327_s16 = sshll.u32 %s2101_s7, 2 }
  0x27   : > { %466 = vmatmul.mubr.bf16.vlgmr.msra.gmra.mrb[0].mxu0 %v314_v60  ;;  %v703_v41 = vshrl.u32 %v1433_v31, 16  ;;  %v706_v42 = vshll.u32 %v1433_v31, 16  ;;  %v906_v45 = vrot.slane %v1433_v31, 3  ;;  %v691_v60 = vrot.slane %v689_v55, 3  ;;  %s208_s14 = scalar_lea.vmem %s2092_s2, %s1327_s16 }
  0x28   : > { %616 = vmatmul.mubr.bf16.vlgmr.msra.gmra.mrb[0].mxu1 %v1360_v37  ;;  %1577 = vmatpush3.bf16.msra.mxu0 %v1691_v53  ;;  %v1482_v37 = vcombine.low %v862_v32, %v1881_v33  ;;  %v697_v47 = vrot.slane %v695_v39, 2  ;;  %v700_v48 = vrot.slane %v698_v40, 3  ;;  %v680_v51 = vrot.slane %v678_v46, 2 }
  0x29   : > { %623 = vmatprep.mubr.bf16.mxu1 %v1381_v38  ;;  %1605 = vmatpush3.bf16.msra.mxu1 %v1692_v54  ;;  %v1483_v38 = vcombine.high %v862_v32, %v1881_v33  ;;  %v705_v49 = vrot.slane %v703_v41, 2  ;;  %v708_v50 = vrot.slane %v706_v42, 3  ;;  %v686_v53 = vshrl.u32 %v1432_v36, 16 }
  0x2a   : > { %1606 = vmatprep.subr.bf16.mxu1 %v1694_v57  ;;  %1578 = vmatprep.subr.bf16.mxu0 %v1693_v61  ;;  %v902_v43 = vrot.slane %v1482_v37, 3  ;;  %v701_v33 = vor.u32 %v700_v48, %v697_v47  ;;  %v683_v57 = vrot.slane %v681_v52, 3 }
  0x2b   : > { %473 = vmatprep.mubr.bf16.mxu0 %v332_v63  ;;  %v905_v44 = vrot.slane %v1483_v38, 3  ;;  %v709_v54 = vor.u32 %v708_v50, %v705_v49  ;;  %v688_v58 = vrot.slane %v686_v53, 2 }
  0x2c   : > { %1579 = vmatpush3.bf16.msra.mxu0 %v1695_v1  ;;  %v904_v61 = vsel %vm901_vm1, %v902_v43, %v903_v56  ;;  %v1075_v1 = vlaneseq }
  0x2d   : > { %1607 = vmatpush3.bf16.msra.mxu1 %v1696_v62  ;;  %1580 = vmatprep.subr.bf16.mxu0 %v1697_v4  ;;  %v907_v34 = vsel %vm901_vm1, %v905_v44, %v906_v45  ;;  %v710_v59 = vsel %vm676_vm2, %v701_v33, %v709_v54  ;;  %v684_v62 = vor.u32 %v683_v57, %v680_v51 }
  0x2e   : > { %1608 = vmatprep.subr.bf16.mxu1 %v1698_v3  ;;  %v692_v63 = vor.u32 %v691_v60, %v688_v58  ;;  %v1076_v2 = vshrl.u32 %v1075_v1, 7 }
  0x2f   : > { %474 = vmatmul.mubr.bf16.gmra.mrb[4].mxu0 %v329_v7 }
  0x30   : > { %624 = vmatmul.mubr.bf16.gmra.mrb[4].mxu1 %v1380_v0  ;;  %1581 = vmatpush3.bf16.msra.mxu0 %v1699_v6  ;;  %v693_v0 = vsel %vm676_vm2, %v684_v62, %v692_v63  ;;  %v1077_v3 = vadd.s32 8, %v1076_v2 }
  0x31   : > { %1609 = vmatpush3.bf16.msra.mxu1 %v1700_v5  ;;  %1582 = vmatprep.subr.bf16.mxu0 %v1701_v9  ;;  %v2006_v4 = vmul.u32.u64.low 2863311531, %v1076_v2  ;;  %v2007_v5 = vmul.u32.u64.high 2863311531, %v1076_v2, %v2006_v4 }
  0x32   : > { %1610 = vmatprep.subr.bf16.mxu1 %v1702_v8  ;;  %1040 = vmatprep.mubr.bf16.mxu1 %v907_v34  ;;  %v2009_v6 = vmul.u32.u64.low 2863311531, %v1077_v3  ;;  %v2010_v7 = vmul.u32.u64.high 2863311531, %v1077_v3, %v2009_v6  ;;  %v1078_v8 = vadd.s32 16, %v1076_v2 }
  0x33   : > { %843 = vmatprep.mubr.bf16.mxu0 %v710_v59  ;;  %v1085_v9 = vshrl.u32 %v2007_v5, 4 }
  0x34   : > { %1583 = vmatpush3.bf16.msra.mxu0 %v1703_v11 }
  0x35   : > { %1611 = vmatpush3.bf16.msra.mxu1 %v1704_v10  ;;  %1584 = vmatprep.subr.bf16.mxu0 %v1705_v13  ;;  %v2013_v10 = vmul.u32.u64.low 2863311531, %v1078_v8  ;;  %v2014_v11 = vmul.u32.u64.high 2863311531, %v1078_v8, %v2013_v10  ;;  %v1086_v13 = vmul.u32 24, %v1085_v9 }
  0x36   : > { %1612 = vmatprep.subr.bf16.mxu1 %v1706_v12  ;;  %v1096_v12 = vshrl.u32 %v2010_v7, 4 }
  0x38   : > { %1585 = vmatpush3.bf16.msra.mxu0 %v1707_v15  ;;  %v1087_v15 = vsub.s32 %v1076_v2, %v1086_v13 }
  0x39   : > { %1613 = vmatpush3.bf16.msra.mxu1 %v1708_v14  ;;  %1586 = vmatprep.subr.bf16.mxu0 %v1709_v17  ;;  %v1097_v14 = vmul.u32 24, %v1096_v12 }
  0x3a   : > { %1614 = vmatprep.subr.bf16.mxu1 %v1710_v16  ;;  %v1107_v16 = vshrl.u32 %v2014_v11, 4  ;;  %vm1112_vm3 = vcmp.ne.s32.totalorder %v1087_v15, 0  ;;  %vm1115_vm4 = vcmp.lt.s32.totalorder %v1087_v15, 0 }
  0x3b   : > { %v1098_v17 = vsub.s32 %v1077_v3, %v1097_v14  ;;  %vm1118_vm7 = vmand %vm1115_vm4, %vm1112_vm3 }
  0x3c   : > { %1587 = vmatpush3.bf16.msra.mxu0 %v1711_v19  ;;  %v1121_v19 = vadd.s32 24, %v1087_v15 }
  0x3d   : > { %1615 = vmatpush3.bf16.msra.mxu1 %v1712_v18  ;;  %1588 = vmatprep.subr.bf16.mxu0 %v1715_v21  ;;  %v1108_v18 = vmul.u32 24, %v1107_v16  ;;  %vm1113_vm5 = vcmp.ne.s32.totalorder %v1098_v17, 0  ;;  %vm1116_vm6 = vcmp.lt.s32.totalorder %v1098_v17, 0 }
  0x3e   : > { %1616 = vmatprep.subr.bf16.mxu1 %v1716_v20  ;;  %v1122_v20 = vadd.s32 24, %v1098_v17  ;;  %vm1119_vm8 = vmand %vm1116_vm6, %vm1113_vm5 }
  0x3f   : > { %v1109_v21 = vsub.s32 %v1078_v8, %v1108_v18 }
  0x40   : > { %1589 = vmatpush3.bf16.msra.mxu0 %v1717_v23  ;;  %v2020_v23 = vsel %vm1119_vm8, %v1122_v20, %v1098_v17 }
  0x41   : > { %1617 = vmatpush3.bf16.msra.mxu1 %v1718_v22  ;;  %1590 = vmatprep.subr.bf16.mxu0 %v1719_v25  ;;  %v2018_v22 = vsel %vm1118_vm7, %v1121_v19, %v1087_v15  ;;  %vm1114_vm9 = vcmp.ne.s32.totalorder %v1109_v21, 0  ;;  %vm1117_vm10 = vcmp.lt.s32.totalorder %v1109_v21, 0  ;;  %v1139_v28 = vsub.s32 0, %v2020_v23 }
  0x42   : > { %1618 = vmatprep.subr.bf16.mxu1 %v1720_v24  ;;  %v1128_v24 = vsub.s32 0, %v2018_v22  ;;  %vm1120_vm11 = vmand %vm1117_vm10, %vm1114_vm9  ;;  %vm1127_vm12 = vcmp.lt.s32.totalorder %v2018_v22, 0  ;;  %vm1138_vm13 = vcmp.lt.s32.totalorder %v2020_v23, 0  ;;  %vm1178_vm8 = vcmp.lt.s32.totalorder %v2018_v22, 20 }
  0x43   : > { %v1504_v37 = vmin.u32 %v1139_v28, %v2020_v23  ;;  %vm1179_vm10 = vcmp.lt.s32.totalorder %v2020_v23, 20 }
  0x44   : > { %1591 = vmatpush3.bf16.msra.mxu0 %v1721_v35  ;;  %v1503_v32 = vmin.u32 %v1128_v24, %v2018_v22 }
  0x45   : > { %1619 = vmatpush3.bf16.msra.mxu1 %v1722_v26  ;;  %v1123_v26 = vadd.s32 24, %v1109_v21 }
  0x46   : > { %v2028_v39 = vmul.u32.u64.low 3435973837, %v1503_v32  ;;  %v2029_v40 = vmul.u32.u64.high 3435973837, %v1503_v32, %v2028_v39 }
  0x47   : > { %844 = vmatmul.mubr.bf16.vlgmr.msra.gmra.mrb[8].mxu0 %v693_v0  ;;  %v2025_v36 = vsel %vm1120_vm11, %v1123_v26, %v1109_v21 }
  0x48   : > { %1041 = vmatmul.mubr.bf16.vlgmr.msra.gmra.mrb[8].mxu1 %v904_v61  ;;  %851 = vmatprep.mubr.bf16.mxu0 %v709_v54  ;;  %v1150_v41 = vsub.s32 0, %v2025_v36  ;;  %vm1149_vm2 = vcmp.lt.s32.totalorder %v2025_v36, 0 }
  0x49   : > { %1048 = vmatprep.mubr.bf16.mxu1 %v906_v45  ;;  %v2032_v45 = vmul.u32.u64.low 3435973837, %v1504_v37  ;;  %v2033_v46 = vmul.u32.u64.high 3435973837, %v1504_v37, %v2032_v45 }
  0x4a   : > { %v1505_v51 = vmin.u32 %v1150_v41, %v2025_v36 }
  0x4b   : > { %v1144_v62 = vshrl.u32 %v2033_v46, 2 }
  0x4c   : > { %v2041_v57 = vmul.u32.u64.low 3435973837, %v1505_v51  ;;  %v2042_v58 = vmul.u32.u64.high 3435973837, %v1505_v51, %v2041_v57 }
  0x4d   : > { %v1145_v2 = vmul.u32 5, %v1144_v62 }
  0x4e   : > { %v1155_v4 = vshrl.u32 %v2042_v58, 2 }
  0x4f   : > { %852 = vmatmul.mubr.bf16.gmra.mrb[12].mxu0 %v692_v63  ;;  %v1146_v5 = vsub.s32 %v1504_v37, %v1145_v2 }
  0x50   : > { %1049 = vmatmul.mubr.bf16.gmra.mrb[12].mxu1 %v903_v56  ;;  %v1133_v56 = vshrl.u32 %v2029_v40, 2  ;;  %v1156_v7 = vmul.u32 5, %v1155_v4  ;;  %v1737_v40 = vmov 0.0  }
  0x51   : > { %v1147_v8 = vsub.s32 0, %v1146_v5 }
  0x52   : > { %v1134_v1 = vmul.u32 5, %v1133_v56  ;;  %v1157_v10 = vsub.s32 %v1505_v51, %v1156_v7 }
  0x53   : > { %v1148_v11 = vsel %vm1138_vm13, %v1147_v8, %v1146_v5 }
  0x54   : > { %v1135_v3 = vsub.s32 %v1503_v32, %v1134_v1  ;;  %v1158_v12 = vsub.s32 0, %v1157_v10  ;;  %vm1161_vm0 = vcmp.ne.s32.totalorder %v1148_v11, 0  ;;  %vm1164_vm1 = vcmp.lt.s32.totalorder %v1148_v11, 0 }
  0x55   : > { %v1170_v14 = vadd.s32 5, %v1148_v11  ;;  %vm2052_vm4 = vmand %vm1164_vm1, %vm1161_vm0 }
  0x56   : > { %v1136_v6 = vsub.s32 0, %v1135_v3  ;;  %v1159_v16 = vsel %vm1149_vm2, %v1158_v12, %v1157_v10 }
  0x57   : > { %v1173_v24 = vsel %vm2052_vm4, %v1170_v14, %v1148_v11  ;;  %vm1162_vm5 = vcmp.ne.s32.totalorder %v1159_v16, 0  ;;  %vm1165_vm6 = vcmp.lt.s32.totalorder %v1159_v16, 0  ;;  %v1171_v28 = vadd.s32 5, %v1159_v16 }
  0x58   : > { %v1137_v9 = vsel %vm1127_vm12, %v1136_v6, %v1135_v3  ;;  %vm1176_vm9 = vcmp.lt.s32.totalorder %v1173_v24, 4  ;;  %vm2064_vm11 = vmand %vm1165_vm6, %vm1162_vm5 }
  0x59   : > { %vm1160_vm14 = vcmp.ne.s32.totalorder %v1137_v9, 0  ;;  %vm1163_vm15 = vcmp.lt.s32.totalorder %v1137_v9, 0  ;;  %v1169_v13 = vadd.s32 5, %v1137_v9  ;;  %vm1182_vm13 = vmand %vm1176_vm9, %vm1179_vm10  ;;  %v1174_v39 = vsel %vm2064_vm11, %v1171_v28, %v1159_v16 }
  0x5a   : > { %vm1166_vm3 = vmand %vm1163_vm15, %vm1160_vm14  ;;  %v1507_v46 = vsel %vm1182_vm13, 1.0, %v1737_v40  ;;  %vm1177_vm14 = vcmp.lt.s32.totalorder %v1174_v39, 4  ;;  %vm1180_vm15 = vcmp.lt.s32.totalorder %v2025_v36, 20 }
  0x5b   : > { %v1172_v18 = vsel %vm1166_vm3, %v1169_v13, %v1137_v9  ;;  %vm1183_vm0 = vmand %vm1177_vm14, %vm1180_vm15 }
  0x5c   : > { %vm1175_vm7 = vcmp.lt.s32.totalorder %v1172_v18, 4  ;;  %v1508_v58 = vsel %vm1183_vm0, 1.0, %v1737_v40 }
  0x5d   : > { %vm1181_vm12 = vmand %vm1175_vm7, %vm1178_vm8 }
  0x5e   : > { %v1506_v23 = vsel %vm1181_vm12, 1.0, %v1737_v40 }
  0xfa   : > { %v1536_v38 = vpop.f32.mrb[0].mxu0 }
  0xfb   : > { %v1564_v25 = vpop.f32.mrb[0].mxu1  ;;  %v1537_v42 = vpop.f32.mrb[1].mxu0 }
  0xfc   : > { %v1565_v27 = vpop.f32.mrb[1].mxu1  ;;  %v1538_v43 = vadd.f32 %v1537_v42, %v1536_v38  ;;  %v1539_v44 = vpop.f32.mrb[2].mxu0 }
  0xfd   : > { %v1566_v29 = vadd.f32 %v1565_v27, %v1564_v25  ;;  %v1567_v30 = vpop.f32.mrb[2].mxu1  ;;  %v1540_v47 = vpop.f32.mrb[3].mxu0 }
  0xfe   : > { %v1568_v31 = vpop.f32.mrb[3].mxu1  ;;  %v1541_v50 = vadd.f32 %v1540_v47, %v1539_v44 }
  0xff   : > { %v1569_v35 = vadd.f32 %v1568_v31, %v1567_v30  ;;  %v2035_v49 = vadd.f32 %v1566_v29, %v1538_v43 }
 0x101   : > { %v2038_v33 = vadd.f32 %v1569_v35, %v1541_v50 }
 0x102   : > { %v1542_v55 = vpop.f32.mrb[4].mxu0 }
 0x103   : > { %v1570_v48 = vpop.f32.mrb[4].mxu1  ;;  %v1543_v59 = vpop.f32.mrb[5].mxu0 }
 0x104   : > { %v1571_v34 = vpop.f32.mrb[5].mxu1  ;;  %v1544_v60 = vadd.f32 %v1543_v59, %v1542_v55  ;;  %v1545_v61 = vpop.f32.mrb[6].mxu0 }
 0x105   : > { %v1572_v52 = vadd.f32 %v1571_v34, %v1570_v48  ;;  %v1573_v53 = vpop.f32.mrb[6].mxu1  ;;  %v1546_v63 = vpop.f32.mrb[7].mxu0 }
 0x106   : > { %v1574_v54 = vpop.f32.mrb[7].mxu1 }
 0x107   : > { %v2045_v0 = vadd.f32 %v1572_v52, %v1544_v60 }
 0x11a   : > { %v1592_v26 = vpop.f32.mrb[8].mxu0 }
 0x11b   : > { %v1620_v17 = vpop.f32.mrb[8].mxu1  ;;  %v1593_v29 = vpop.f32.mrb[9].mxu0 }
 0x11c   : > { %v1621_v19 = vpop.f32.mrb[9].mxu1  ;;  %v1594_v31 = vadd.f32 %v1593_v29, %v1592_v26  ;;  %v1595_v32 = vpop.f32.mrb[10].mxu0 }
 0x11d   : > { %v1622_v20 = vadd.f32 %v1621_v19, %v1620_v17  ;;  %v1623_v21 = vpop.f32.mrb[10].mxu1  ;;  %v1596_v35 = vpop.f32.mrb[11].mxu0 }
 0x11e   : > { %v1624_v25 = vpop.f32.mrb[11].mxu1  ;;  %v859_v22 = vadd.f32 %v1594_v31, %v2035_v49  ;;  %v1597_v37 = vadd.f32 %v1596_v35, %v1595_v32 }
 0x11f   : > { %v1625_v27 = vadd.f32 %v1624_v25, %v1623_v21 }
 0x120   : > { %v1056_v42 = vadd.f32 %v1622_v20, %v859_v22  ;;  %v860_v43 = vadd.f32 %v1597_v37, %v2038_v33 }
 0x122   : > { %v1190_v48 = vmul.f32 %v1506_v23, %v1056_v42  ;;  %v1057_v49 = vadd.f32 %v1625_v27, %v860_v43  ;;  %v1598_v50 = vpop.f32.mrb[12].mxu0 }
 0x123   : > { %v1626_v38 = vpop.f32.mrb[12].mxu1  ;;  %v1599_v34 = vpop.f32.mrb[13].mxu0 }
 0x124   : > { %v1627_v41 = vpop.f32.mrb[13].mxu1  ;;  %v1518_v51 = vpack.c.bf16 %v1057_v49, %v1056_v42  ;;  %v1191_v52 = vmul.f32 %v1507_v46, %v1057_v49  ;;  %v1600_v53 = vadd.f32 %v1599_v34, %v1598_v50  ;;  %v1601_v33 = vpop.f32.mrb[14].mxu0  ;;  %v1202_v55 = vmul.f32 %v1190_v48, %v1056_v42 }
 0x125   : > { %v1628_v44 = vadd.f32 %v1627_v41, %v1626_v38  ;;  %v1629_v45 = vpop.f32.mrb[14].mxu1  ;;  %v1602_v54 = vpop.f32.mrb[15].mxu0 }
 0x126   : > { %v1630_v47 = vpop.f32.mrb[15].mxu1  ;;  %1519 = vst [vmem:[%s208_s14] sm:$0xff] %v1518_v51   ;;  %v1193_v56 = vadd.f32 %v1191_v52, %v1190_v48  ;;  %v1203_v57 = vmul.f32 %v1191_v52, %v1057_v49  ;;  %v861_v36 = vadd.f32 %v1600_v53, %v2045_v0 }
 0x128   : > { %v1205_v59 = vadd.f32 %v1203_v57, %v1202_v55  ;;  %v1058_v60 = vadd.f32 %v1628_v44, %v861_v36 }
 0x12a   : > { %v1514_v61 = vpack.c.bf16 %v1058_v60, %v1058_v60  ;;  %v1192_v62 = vmul.f32 %v1508_v58, %v1058_v60 }
 0x12c   : > { %1074 = vst [vmem:[%s208_s14 + $0x8] sm:$0xf] %v1514_v61  ;;  %v1194_v63 = vadd.f32 %v1193_v56, %v1192_v62  ;;  %v1204_v1 = vmul.f32 %v1192_v62, %v1058_v60 }
 0x12e   : > { %v1195_v2 = vrot.slane %v1194_v63, 4  ;;  %v1206_v3 = vadd.f32 %v1205_v59, %v1204_v1 }
 0x130   : > { %v1196_v4 = vadd.f32 %v1195_v2, %v1194_v63  ;;  %v1207_v5 = vrot.slane %v1206_v3, 4 }
 0x132   : > { %v1197_v6 = vrot.slane %v1196_v4, 2  ;;  %v1208_v7 = vadd.f32 %v1207_v5, %v1206_v3 }
 0x134   : > { %v1198_v8 = vadd.f32 %v1197_v6, %v1196_v4  ;;  %v1209_v9 = vrot.slane %v1208_v7, 2 }
 0x136   : > { %v1199_v10 = vrot.slane %v1198_v8, 1  ;;  %v1210_v0 = vadd.f32 %v1209_v9, %v1208_v7 }
 0x138   : > { %v1200_v11 = vadd.f32 %v1199_v10, %v1198_v8  ;;  %v1211_v12 = vrot.slane %v1210_v0, 1 }
 0x13a   : > { %1201 = vst [vmem:[%s212_s19] sm:$0x1] %v1200_v11  ;;  %v1212_v13 = vadd.f32 %v1211_v12, %v1210_v0 }
 0x13c   : > { %1213 = vst [vmem:[%s215_s22] sm:$0x1] %v1212_v13 }
 0x13d PF: > { %s15_s15 = sadd.s32 1, %s1735_s15  }
 0x13e   : > { %p12_p5 = scmp.ge.s32.totalorder %s15_s15, 4  }
 0x140   :  { %14 = sbr.rel (!%p12_p5) target bundleno = 1 (0x1), region = 85 }

</bundles_post_ra>
